<compile_context>
chip_gen: v5e
topology: v5e:2x2
jax: 0.10.0
libtpu: 0.0.40
codegen_flags: <defaults>
</compile_context>

<pallas_src>
import functools
import math

import jax
import jax.numpy as jnp
from jax.experimental import pallas as pl
from jax.experimental.pallas import tpu as pltpu

# ---------------- configuration (small, consistent with the module) ----------
DATA_SIZE = 3        # data_size
LATENT_SIZE = 4      # latent_size
CONTEXT_SIZE = 8     # context_size
HIDDEN_SIZE = 32     # hidden_size (also ResMLP dim_hidden)
N_PARAMS = 5         # n_params
SEQ_LEN = 8          # T
BATCH = 2            # batch_size
NOISE_STD = 0.1
LEAKY_SLOPE = 0.01   # nn.LeakyReLU default
LN_EPS = 1e-5        # nn.LayerNorm default


# ---------------- deterministic parameter init --------------------------------
def _init(key, shape, scale):
    return (scale * jax.random.normal(key, shape, dtype=jnp.float32)).astype(jnp.float32)


def init_params(key):
    ks = iter(jax.random.split(key, 64))
    H, D, C, L, P = HIDDEN_SIZE, DATA_SIZE, CONTEXT_SIZE, LATENT_SIZE, N_PARAMS
    p = {}

    def lin(fan_in, w_shape, b_shape):
        s = 1.0 / math.sqrt(fan_in)
        return _init(next(ks), w_shape, s), _init(next(ks), b_shape, s)

    # Encoder: GRU(data_size -> hidden) + Linear(hidden -> context)
    # weights stored transposed (in, out); gate order r, z, n.
    p['gru_wih'], p['gru_bih'] = lin(D, (D, 3 * H), (1, 3 * H))
    p['gru_whh'], p['gru_bhh'] = lin(H, (H, 3 * H), (1, 3 * H))
    p['enc_w'], p['enc_b'] = lin(H, (H, C), (1, C))
    # qz0_net: Linear(context -> 2*latent)
    p['qz0_w'], p['qz0_b'] = lin(C, (C, 2 * L), (1, 2 * L))
    # f_net: Linear(L+C -> H), Softplus, Linear(H -> H), Softplus, Linear(H -> L)
    sf = 1.0 / math.sqrt(L + C)
    p['f_w1y'] = _init(next(ks), (L, H), sf)
    p['f_w1c'] = _init(next(ks), (C, H), sf)
    p['f_b1'] = _init(next(ks), (1, H), sf)
    p['f_w2'], p['f_b2'] = lin(H, (H, H), (1, H))
    p['f_w3'], p['f_b3'] = lin(H, (H, L), (1, L))
    # h_net: Linear(L -> H), Softplus, Linear(H -> H), Softplus, Linear(H -> L)
    p['h_w1'], p['h_b1'] = lin(L, (L, H), (1, H))
    p['h_w2'], p['h_b2'] = lin(H, (H, H), (1, H))
    p['h_w3'], p['h_b3'] = lin(H, (H, L), (1, L))
    # g_nets: latent_size copies of Linear(1->H), Softplus, Linear(H->1), Sigmoid
    # stacked along the latent axis.
    p['g_w1'] = _init(next(ks), (L, H), 1.0)
    p['g_b1'] = _init(next(ks), (L, H), 1.0)
    p['g_w2'] = _init(next(ks), (L, H), 1.0 / math.sqrt(H))
    p['g_b2'] = _init(next(ks), (1, L), 1.0 / math.sqrt(H))
    # projector: Linear(latent -> data)
    p['proj_w'], p['proj_b'] = lin(L, (L, D), (1, D))
    # param_mlp (ResMLP): pre_skip L->H->H->L + LayerNorm(L), +skip, post_skip L->H->P
    p['m_w1'], p['m_b1'] = lin(L, (L, H), (1, H))
    p['m_w2'], p['m_b2'] = lin(H, (H, H), (1, H))
    p['m_w3'], p['m_b3'] = lin(H, (H, L), (1, L))
    p['m_lnw'] = jnp.ones((1, L), jnp.float32)
    p['m_lnb'] = jnp.zeros((1, L), jnp.float32)
    p['m_w4'], p['m_b4'] = lin(L, (L, H), (1, H))
    p['m_w5'], p['m_b5'] = lin(H, (H, P), (1, P))
    # prior z0
    p['pz0_mean'] = jnp.zeros((1, L), jnp.float32)
    p['pz0_logstd'] = jnp.zeros((1, L), jnp.float32)
    return p


# ---------------- fused forward (single pallas_call) --------------------------
def latent_sde_forward(p, xs, ts, key, noise_std):
    T, B, D = xs.shape
    L, H, C, P = LATENT_SIZE, HIDDEN_SIZE, CONTEXT_SIZE, N_PARAMS
    S = T - 1
    GW = 2 * H + L * H           # fused first-layer width  [f | h | g-hidden] = 192
    G2W = 2 * H + L              # fused second-layer width [f | h | g-out]    = 68
    f32 = jnp.float32

    # ---- RNG (z0 reparameterization noise + Brownian increments) ----
    k_z0, k_bm = jax.random.split(key)
    eps0 = jax.random.normal(k_z0, (B, L), dtype=f32)
    dts = (ts[1:] - ts[:-1]).astype(f32)                             # (S,)
    eps = jax.random.normal(k_bm, (S, B, L), dtype=f32)
    eps_scaled = jnp.sqrt(dts)[:, None, None] * eps                  # dW ~ N(0, dt)

    # ---- pack f_net / h_net / g_nets into block-diagonal stacked weights ----
    eyeL = jnp.eye(L, dtype=f32)
    # g layer 1 as (L, L*H): row l carries g_w1[l] in cols [l*H, (l+1)*H)
    G1 = (eyeL[:, :, None] * p['g_w1'][None, :, :]).reshape(L, L * H)
    # g layer 2 as (L*H, L): col l carries g_w2[l] in rows [l*H, (l+1)*H)
    G2 = (eyeL[:, None, :] * p['g_w2'][:, :, None]).reshape(L * H, L)
    W1_all = jnp.concatenate([p['f_w1y'], p['h_w1'], G1], axis=1)    # (L, GW)
    b1_all = jnp.concatenate([p['f_b1'], p['h_b1'],
                              p['g_b1'].reshape(1, L * H)], axis=1)  # (1, GW)
    Zhh = jnp.zeros((H, H), f32)
    Zhl = jnp.zeros((H, L), f32)
    Zgh = jnp.zeros((L * H, H), f32)
    W2_all = jnp.concatenate([
        jnp.concatenate([p['f_w2'], Zhh, Zhl], axis=1),
        jnp.concatenate([Zhh, p['h_w2'], Zhl], axis=1),
        jnp.concatenate([Zgh, Zgh, G2], axis=1)], axis=0)            # (GW, G2W)
    b2_all = jnp.concatenate([p['f_b2'], p['h_b2'], p['g_b2']], axis=1)   # (1, G2W)
    W3_fh = jnp.concatenate([
        jnp.concatenate([p['f_w3'], Zhl], axis=1),
        jnp.concatenate([Zhl, p['h_w3']], axis=1)], axis=0)          # (2H, 2L)
    b3_fh = jnp.concatenate([p['f_b3'], p['h_b3']], axis=1)          # (1, 2L)
    # zero-pad f_w1c so ctx @ fw1c_pad lands only on the f-block of layer 1.
    fw1c_pad = jnp.concatenate([p['f_w1c'], jnp.zeros((C, GW - H), f32)], axis=1)

    # constants baked into the kernel (Python floats at trace time)
    log_const = float(math.log(noise_std) + 0.5 * math.log(2.0 * math.pi))
    inv_std = float(1.0 / noise_std)
    inv_nxs = float(1.0 / (T * B * D))
    inv_lr = float(1.0 / (S * B))      # log_ratio.mean(0).mean(0), as in the module
    inv_kl = float(1.0 / (B * L))

    def kernel(xs_ref, eps0_ref, epss_ref, dts_ref,
               wih, whh, bih, bhh, encw, encb, qz0w, qz0b,
               fw1c_p, w1a, b1a, w2a, b2a, w3a, b3a,
               projw, projb,
               mw1, mb1, mw2, mb2, mw3, mb3, mlnw, mlnb, mw4, mb4, mw5, mb5,
               pz0m, pz0ls,
               xs_out_ref, pp_ref, scal_ref,
               hs_scr, zs_scr):
        def mm(a, w):
            return jnp.dot(a, w, preferred_element_type=jnp.float32)

        def mm3(a, w):  # (T,B,K) @ (K,N) -> (T,B,N)
            return jax.lax.dot_general(a, w, (((2,), (0,)), ((), ())),
                                       preferred_element_type=jnp.float32)

        xs_v = xs_ref[...]                                   # (T, B, D)

        # ---- GRU encoder over the time-reversed sequence ----
        # hoisted: input projections for all T time steps in one matmul
        gi_all = mm3(xs_v, wih[...]) + bih[...]              # (T, B, 3H)
        W_hh = whh[...]
        b_hh = bhh[...]
        h = jnp.zeros((B, H), jnp.float32)
        for t in range(T):                                   # static unroll (T=8)
            gi = gi_all[T - 1 - t]                           # reversed input order
            gh = mm(h, W_hh) + b_hh
            r = jax.nn.sigmoid(gi[:, :H] + gh[:, :H])
            z = jax.nn.sigmoid(gi[:, H:2 * H] + gh[:, H:2 * H])
            n = jnp.tanh(gi[:, 2 * H:] + r * gh[:, 2 * H:])
            h = (1.0 - z) * n + z * h
            hs_scr[T - 1 - t] = h                            # flip back in place
        # context linear for all T in one matmul
        ctx = mm3(hs_scr[...], encw[...]) + encb[...]        # (T, B, C)

        # ---- qz0_net + reparameterized z0 sample ----
        q = mm(ctx[0], qz0w[...]) + qz0b[...]                # (B, 2L)
        qz0_mean = q[:, :L]
        qz0_logstd = q[:, L:]
        z0 = qz0_mean + jnp.exp(qz0_logstd) * eps0_ref[...]

        # ---- hoisted: context term + bias of the fused first layer, all steps ----
        cb_all = mm3(ctx, fw1c_p[...]) + b1a[...]            # (T, B, GW)

        W1 = w1a[...]
        W2 = w2a[...]
        b2 = b2a[...]
        W3 = w3a[...]
        b3 = b3a[...]

        # ---- Euler-Maruyama integration with logqp path term ----
        y = z0
        zs_scr[0] = z0
        lr_sum = jnp.zeros((B, 1), jnp.float32)
        for s in range(S):                                   # static unroll (S=7)
            dt = dts_ref[s]                                  # scalar read from SMEM
            # ctx index s+1 reproduces searchsorted(ts, ts[s], right=True)
            a1 = jax.nn.softplus(mm(y, W1) + cb_all[s + 1])  # (B, GW) = [f1|h1|g_hid]
            a2 = mm(a1, W2) + b2                             # (B, 2H+L)
            fh2 = jax.nn.softplus(a2[:, :2 * H])             # [f2 | h2]
            g_out = jax.nn.sigmoid(a2[:, 2 * H:])            # (B, L) diagonal diffusion
            fh3 = mm(fh2, W3) + b3                           # (B, 2L) = [f_out | h_out]
            f_out = fh3[:, :L]
            h_out = fh3[:, L:]
            # logqp path increment: 0.5 * || (f - h) / g ||^2 * dt
            u = (f_out - h_out) * pl.reciprocal(g_out, approx=True)
            lr_sum = lr_sum + jnp.sum(u * u, axis=1, keepdims=True) * (0.5 * dt)
            # Euler-Maruyama step (eps already scaled by sqrt(dt))
            y = y + f_out * dt + g_out * epss_ref[s]
            zs_scr[s + 1] = y

        # ---- projector + Gaussian log-likelihood (mean over all elements) ----
        xhat = mm3(zs_scr[...], projw[...]) + projb[...]     # (T, B, D)
        xs_out_ref[...] = xhat
        diff = (xs_v - xhat) * inv_std
        lp = -0.5 * diff * diff - log_const
        scal_ref[0] = jnp.sum(lp) * inv_nxs                  # log_pxs

        # ---- KL(q(z0) || p(z0)) + path term -> single scalar ----
        pm = pz0m[...]
        pls = pz0ls[...]
        kl = (pls - qz0_logstd
              + (jnp.exp(2.0 * qz0_logstd) + (qz0_mean - pm) ** 2)
              / (2.0 * jnp.exp(2.0 * pls)) - 0.5)            # (B, L)
        scal_ref[1] = jnp.sum(kl) * inv_kl + jnp.sum(lr_sum) * inv_lr

        # ---- ResMLP head (param_mlp, include_prior_drift=False) ----
        def leaky(x):
            return jnp.where(x > 0, x, LEAKY_SLOPE * x)

        x1 = leaky(mm(z0, mw1[...]) + mb1[...])
        x2 = leaky(mm(x1, mw2[...]) + mb2[...])
        x3 = mm(x2, mw3[...]) + mb3[...]
        mu = jnp.mean(x3, axis=-1, keepdims=True)
        var = jnp.mean((x3 - mu) ** 2, axis=-1, keepdims=True)
        xn = (x3 - mu) * jax.lax.rsqrt(var + LN_EPS) * mlnw[...] + mlnb[...]
        xr = xn + z0
        y4 = leaky(mm(xr, mw4[...]) + mb4[...])
        pp_ref[...] = mm(y4, mw5[...]) + mb5[...]

    VM = pl.BlockSpec(memory_space=pltpu.MemorySpace.VMEM)
    SM = pl.BlockSpec(memory_space=pltpu.MemorySpace.SMEM)

    xhat, param_pred, scal = pl.pallas_call(
        kernel,
        out_shape=(jax.ShapeDtypeStruct((T, B, D), jnp.float32),   # _xs
                   jax.ShapeDtypeStruct((B, P), jnp.float32),      # param_pred
                   jax.ShapeDtypeStruct((2,), jnp.float32)),       # [log_pxs, logqp]
        in_specs=[VM, VM, VM, SM] + [VM] * 31,
        out_specs=(VM, VM, SM),
        scratch_shapes=[pltpu.VMEM((T, B, H), jnp.float32),        # GRU hidden states
                        pltpu.VMEM((T, B, L), jnp.float32)],       # latent trajectory
    )(xs, eps0, eps_scaled, dts,
      p['gru_wih'], p['gru_whh'], p['gru_bih'], p['gru_bhh'],
      p['enc_w'], p['enc_b'], p['qz0_w'], p['qz0_b'],
      fw1c_pad, W1_all, b1_all, W2_all, b2_all, W3_fh, b3_fh,
      p['proj_w'], p['proj_b'],
      p['m_w1'], p['m_b1'], p['m_w2'], p['m_b2'], p['m_w3'], p['m_b3'],
      p['m_lnw'], p['m_lnb'], p['m_w4'], p['m_b4'], p['m_w5'], p['m_b5'],
      p['pz0_mean'], p['pz0_logstd'])

    return scal[0], scal[1], param_pred, xhat


if __name__ == "__main__":
    key = jax.random.PRNGKey(0)
    k_param, k_x, k_fwd = jax.random.split(key, 3)
    params = init_params(k_param)
    xs = jax.random.normal(k_x, (SEQ_LEN, BATCH, DATA_SIZE), dtype=jnp.float32)
    ts = jnp.linspace(0.0, 0.01 * (SEQ_LEN - 1), SEQ_LEN, dtype=jnp.float32)

    fwd = jax.jit(functools.partial(latent_sde_forward, noise_std=NOISE_STD))
    log_pxs, logqp, param_pred, xs_hat = jax.block_until_ready(
        fwd(params, xs, ts, k_fwd))

    assert xs_hat.shape == (SEQ_LEN, BATCH, DATA_SIZE)
    assert param_pred.shape == (BATCH, N_PARAMS)
    assert log_pxs.shape == () and logqp.shape == ()
    assert bool(jnp.isfinite(log_pxs)) and bool(jnp.isfinite(logqp))
    assert bool(jnp.all(jnp.isfinite(param_pred))) and bool(jnp.all(jnp.isfinite(xs_hat)))
    print("KERNEL_OK")
</pallas_src>

<mosaic_0001>
module attributes {stable_mosaic.version = 11 : i64} {
  func.func @kernel(%arg0: memref<8x2x3xf32, #tpu.memory_space<vmem>>, %arg1: memref<2x4xf32, #tpu.memory_space<vmem>>, %arg2: memref<7x2x4xf32, #tpu.memory_space<vmem>>, %arg3: memref<7xf32, #tpu.memory_space<smem>>, %arg4: memref<3x96xf32, #tpu.memory_space<vmem>>, %arg5: memref<32x96xf32, #tpu.memory_space<vmem>>, %arg6: memref<1x96xf32, #tpu.memory_space<vmem>>, %arg7: memref<1x96xf32, #tpu.memory_space<vmem>>, %arg8: memref<32x8xf32, #tpu.memory_space<vmem>>, %arg9: memref<1x8xf32, #tpu.memory_space<vmem>>, %arg10: memref<8x8xf32, #tpu.memory_space<vmem>>, %arg11: memref<1x8xf32, #tpu.memory_space<vmem>>, %arg12: memref<8x192xf32, #tpu.memory_space<vmem>>, %arg13: memref<4x192xf32, #tpu.memory_space<vmem>>, %arg14: memref<1x192xf32, #tpu.memory_space<vmem>>, %arg15: memref<192x68xf32, #tpu.memory_space<vmem>>, %arg16: memref<1x68xf32, #tpu.memory_space<vmem>>, %arg17: memref<64x8xf32, #tpu.memory_space<vmem>>, %arg18: memref<1x8xf32, #tpu.memory_space<vmem>>, %arg19: memref<4x3xf32, #tpu.memory_space<vmem>>, %arg20: memref<1x3xf32, #tpu.memory_space<vmem>>, %arg21: memref<4x32xf32, #tpu.memory_space<vmem>>, %arg22: memref<1x32xf32, #tpu.memory_space<vmem>>, %arg23: memref<32x32xf32, #tpu.memory_space<vmem>>, %arg24: memref<1x32xf32, #tpu.memory_space<vmem>>, %arg25: memref<32x4xf32, #tpu.memory_space<vmem>>, %arg26: memref<1x4xf32, #tpu.memory_space<vmem>>, %arg27: memref<1x4xf32, #tpu.memory_space<vmem>>, %arg28: memref<1x4xf32, #tpu.memory_space<vmem>>, %arg29: memref<4x32xf32, #tpu.memory_space<vmem>>, %arg30: memref<1x32xf32, #tpu.memory_space<vmem>>, %arg31: memref<32x5xf32, #tpu.memory_space<vmem>>, %arg32: memref<1x5xf32, #tpu.memory_space<vmem>>, %arg33: memref<1x4xf32, #tpu.memory_space<vmem>>, %arg34: memref<1x4xf32, #tpu.memory_space<vmem>>, %arg35: memref<8x2x3xf32, #tpu.memory_space<vmem>>, %arg36: memref<2x5xf32, #tpu.memory_space<vmem>>, %arg37: memref<2xf32, #tpu.memory_space<smem>>, %arg38: memref<8x2x32xf32, #tpu.memory_space<vmem>>, %arg39: memref<8x2x4xf32, #tpu.memory_space<vmem>>) attributes {dimension_semantics = [], scalar_prefetch = 0 : i64, scratch_operands = 2 : i64, tpu.core_type = #tpu.core_type<tc>} {
    %c0 = arith.constant 0 : index
    %c0_0 = arith.constant 0 : index
    %c0_1 = arith.constant 0 : index
    %0 = vector.load %arg0[%c0, %c0_0, %c0_1] : memref<8x2x3xf32, #tpu.memory_space<vmem>>, vector<8x2x3xf32>
    %c0_2 = arith.constant 0 : index
    %c0_3 = arith.constant 0 : index
    %1 = vector.load %arg4[%c0_2, %c0_3] : memref<3x96xf32, #tpu.memory_space<vmem>>, vector<3x96xf32>
    %cst = arith.constant dense<0.000000e+00> : vector<8x2x96xf32>
    %2 = tpu.matmul %0, %1, %cst {dimension_numbers = #tpu.dot_dimension_numbers<[2], [0], [0, 1], [1], [0, 0, 0, 1, 1, 1], [], []>} : vector<8x2x3xf32>, vector<3x96xf32>, vector<8x2x96xf32> -> vector<8x2x96xf32>
    %c0_4 = arith.constant 0 : index
    %c0_5 = arith.constant 0 : index
    %3 = vector.load %arg6[%c0_4, %c0_5] : memref<1x96xf32, #tpu.memory_space<vmem>>, vector<1x96xf32>
    %4 = vector.shape_cast %3 : vector<1x96xf32> to vector<1x1x96xf32>
    %5 = vector.broadcast %4 : vector<1x1x96xf32> to vector<8x2x96xf32>
    %6 = arith.addf %2, %5 : vector<8x2x96xf32>
    %c0_6 = arith.constant 0 : index
    %c0_7 = arith.constant 0 : index
    %7 = vector.load %arg5[%c0_6, %c0_7] : memref<32x96xf32, #tpu.memory_space<vmem>>, vector<32x96xf32>
    %c0_8 = arith.constant 0 : index
    %c0_9 = arith.constant 0 : index
    %8 = vector.load %arg7[%c0_8, %c0_9] : memref<1x96xf32, #tpu.memory_space<vmem>>, vector<1x96xf32>
    %cst_10 = arith.constant 0.000000e+00 : f32
    %9 = vector.broadcast %cst_10 : f32 to vector<2x32xf32>
    %10 = vector.extract_strided_slice %6 {offsets = [7, 0, 0], sizes = [1, 2, 96], strides = [1, 1, 1]} : vector<8x2x96xf32> to vector<1x2x96xf32>
    %11 = vector.shape_cast %10 : vector<1x2x96xf32> to vector<2x96xf32>
    %cst_11 = arith.constant dense<0.000000e+00> : vector<2x96xf32>
    %12 = tpu.matmul %9, %7, %cst_11 {dimension_numbers = #tpu.dot_dimension_numbers<[1], [0], [0], [1], [0, 0, 1, 1], [], []>} : vector<2x32xf32>, vector<32x96xf32>, vector<2x96xf32> -> vector<2x96xf32>
    %13 = vector.broadcast %8 : vector<1x96xf32> to vector<2x96xf32>
    %14 = arith.addf %12, %13 : vector<2x96xf32>
    %15 = vector.extract_strided_slice %11 {offsets = [0, 0], sizes = [2, 32], strides = [1, 1]} : vector<2x96xf32> to vector<2x32xf32>
    %16 = vector.extract_strided_slice %14 {offsets = [0, 0], sizes = [2, 32], strides = [1, 1]} : vector<2x96xf32> to vector<2x32xf32>
    %17 = arith.addf %15, %16 : vector<2x32xf32>
    %18 = arith.negf %17 : vector<2x32xf32>
    %19 = math.exp %18 : vector<2x32xf32>
    %cst_12 = arith.constant 1.000000e+00 : f32
    %20 = vector.broadcast %cst_12 : f32 to vector<2x32xf32>
    %21 = arith.addf %20, %19 : vector<2x32xf32>
    %22 = arith.divf %20, %21 : vector<2x32xf32>
    %23 = vector.extract_strided_slice %11 {offsets = [0, 32], sizes = [2, 32], strides = [1, 1]} : vector<2x96xf32> to vector<2x32xf32>
    %24 = vector.extract_strided_slice %14 {offsets = [0, 32], sizes = [2, 32], strides = [1, 1]} : vector<2x96xf32> to vector<2x32xf32>
    %25 = arith.addf %23, %24 : vector<2x32xf32>
    %26 = arith.negf %25 : vector<2x32xf32>
    %27 = math.exp %26 : vector<2x32xf32>
    %cst_13 = arith.constant 1.000000e+00 : f32
    %28 = vector.broadcast %cst_13 : f32 to vector<2x32xf32>
    %29 = arith.addf %28, %27 : vector<2x32xf32>
    %30 = arith.divf %28, %29 : vector<2x32xf32>
    %31 = vector.extract_strided_slice %11 {offsets = [0, 64], sizes = [2, 32], strides = [1, 1]} : vector<2x96xf32> to vector<2x32xf32>
    %32 = vector.extract_strided_slice %14 {offsets = [0, 64], sizes = [2, 32], strides = [1, 1]} : vector<2x96xf32> to vector<2x32xf32>
    %33 = arith.mulf %22, %32 : vector<2x32xf32>
    %34 = arith.addf %31, %33 : vector<2x32xf32>
    %35 = math.tanh %34 : vector<2x32xf32>
    %cst_14 = arith.constant 1.000000e+00 : f32
    %36 = vector.broadcast %cst_14 : f32 to vector<2x32xf32>
    %37 = arith.subf %36, %30 : vector<2x32xf32>
    %38 = arith.mulf %37, %35 : vector<2x32xf32>
    %39 = arith.mulf %30, %9 : vector<2x32xf32>
    %40 = arith.addf %38, %39 : vector<2x32xf32>
    %c7 = arith.constant 7 : index
    %c0_15 = arith.constant 0 : index
    %c0_16 = arith.constant 0 : index
    %41 = vector.load %arg38[%c7, %c0_15, %c0_16] : memref<8x2x32xf32, #tpu.memory_space<vmem>>, vector<1x2x32xf32>
    %42 = vector.shape_cast %41 : vector<1x2x32xf32> to vector<2x32xf32>
    %43 = vector.shape_cast %40 : vector<2x32xf32> to vector<1x2x32xf32>
    tpu.vector_store %arg38[%c7, %c0_15, %c0_16], %43 {strides = array<i32>} : memref<8x2x32xf32, #tpu.memory_space<vmem>>, vector<1x2x32xf32>,
    %44 = vector.extract_strided_slice %6 {offsets = [6, 0, 0], sizes = [1, 2, 96], strides = [1, 1, 1]} : vector<8x2x96xf32> to vector<1x2x96xf32>
    %45 = vector.shape_cast %44 : vector<1x2x96xf32> to vector<2x96xf32>
    %cst_17 = arith.constant dense<0.000000e+00> : vector<2x96xf32>
    %46 = tpu.matmul %40, %7, %cst_17 {dimension_numbers = #tpu.dot_dimension_numbers<[1], [0], [0], [1], [0, 0, 1, 1], [], []>} : vector<2x32xf32>, vector<32x96xf32>, vector<2x96xf32> -> vector<2x96xf32>
    %47 = vector.broadcast %8 : vector<1x96xf32> to vector<2x96xf32>
    %48 = arith.addf %46, %47 : vector<2x96xf32>
    %49 = vector.extract_strided_slice %45 {offsets = [0, 0], sizes = [2, 32], strides = [1, 1]} : vector<2x96xf32> to vector<2x32xf32>
    %50 = vector.extract_strided_slice %48 {offsets = [0, 0], sizes = [2, 32], strides = [1, 1]} : vector<2x96xf32> to vector<2x32xf32>
    %51 = arith.addf %49, %50 : vector<2x32xf32>
    %52 = arith.negf %51 : vector<2x32xf32>
    %53 = math.exp %52 : vector<2x32xf32>
    %cst_18 = arith.constant 1.000000e+00 : f32
    %54 = vector.broadcast %cst_18 : f32 to vector<2x32xf32>
    %55 = arith.addf %54, %53 : vector<2x32xf32>
    %56 = arith.divf %54, %55 : vector<2x32xf32>
    %57 = vector.extract_strided_slice %45 {offsets = [0, 32], sizes = [2, 32], strides = [1, 1]} : vector<2x96xf32> to vector<2x32xf32>
    %58 = vector.extract_strided_slice %48 {offsets = [0, 32], sizes = [2, 32], strides = [1, 1]} : vector<2x96xf32> to vector<2x32xf32>
    %59 = arith.addf %57, %58 : vector<2x32xf32>
    %60 = arith.negf %59 : vector<2x32xf32>
    %61 = math.exp %60 : vector<2x32xf32>
    %cst_19 = arith.constant 1.000000e+00 : f32
    %62 = vector.broadcast %cst_19 : f32 to vector<2x32xf32>
    %63 = arith.addf %62, %61 : vector<2x32xf32>
    %64 = arith.divf %62, %63 : vector<2x32xf32>
    %65 = vector.extract_strided_slice %45 {offsets = [0, 64], sizes = [2, 32], strides = [1, 1]} : vector<2x96xf32> to vector<2x32xf32>
    %66 = vector.extract_strided_slice %48 {offsets = [0, 64], sizes = [2, 32], strides = [1, 1]} : vector<2x96xf32> to vector<2x32xf32>
    %67 = arith.mulf %56, %66 : vector<2x32xf32>
    %68 = arith.addf %65, %67 : vector<2x32xf32>
    %69 = math.tanh %68 : vector<2x32xf32>
    %cst_20 = arith.constant 1.000000e+00 : f32
    %70 = vector.broadcast %cst_20 : f32 to vector<2x32xf32>
    %71 = arith.subf %70, %64 : vector<2x32xf32>
    %72 = arith.mulf %71, %69 : vector<2x32xf32>
    %73 = arith.mulf %64, %40 : vector<2x32xf32>
    %74 = arith.addf %72, %73 : vector<2x32xf32>
    %c6 = arith.constant 6 : index
    %c0_21 = arith.constant 0 : index
    %c0_22 = arith.constant 0 : index
    %75 = vector.load %arg38[%c6, %c0_21, %c0_22] : memref<8x2x32xf32, #tpu.memory_space<vmem>>, vector<1x2x32xf32>
    %76 = vector.shape_cast %75 : vector<1x2x32xf32> to vector<2x32xf32>
    %77 = vector.shape_cast %74 : vector<2x32xf32> to vector<1x2x32xf32>
    tpu.vector_store %arg38[%c6, %c0_21, %c0_22], %77 {strides = array<i32>} : memref<8x2x32xf32, #tpu.memory_space<vmem>>, vector<1x2x32xf32>,
    %78 = vector.extract_strided_slice %6 {offsets = [5, 0, 0], sizes = [1, 2, 96], strides = [1, 1, 1]} : vector<8x2x96xf32> to vector<1x2x96xf32>
    %79 = vector.shape_cast %78 : vector<1x2x96xf32> to vector<2x96xf32>
    %cst_23 = arith.constant dense<0.000000e+00> : vector<2x96xf32>
    %80 = tpu.matmul %74, %7, %cst_23 {dimension_numbers = #tpu.dot_dimension_numbers<[1], [0], [0], [1], [0, 0, 1, 1], [], []>} : vector<2x32xf32>, vector<32x96xf32>, vector<2x96xf32> -> vector<2x96xf32>
    %81 = vector.broadcast %8 : vector<1x96xf32> to vector<2x96xf32>
    %82 = arith.addf %80, %81 : vector<2x96xf32>
    %83 = vector.extract_strided_slice %79 {offsets = [0, 0], sizes = [2, 32], strides = [1, 1]} : vector<2x96xf32> to vector<2x32xf32>
    %84 = vector.extract_strided_slice %82 {offsets = [0, 0], sizes = [2, 32], strides = [1, 1]} : vector<2x96xf32> to vector<2x32xf32>
    %85 = arith.addf %83, %84 : vector<2x32xf32>
    %86 = arith.negf %85 : vector<2x32xf32>
    %87 = math.exp %86 : vector<2x32xf32>
    %cst_24 = arith.constant 1.000000e+00 : f32
    %88 = vector.broadcast %cst_24 : f32 to vector<2x32xf32>
    %89 = arith.addf %88, %87 : vector<2x32xf32>
    %90 = arith.divf %88, %89 : vector<2x32xf32>
    %91 = vector.extract_strided_slice %79 {offsets = [0, 32], sizes = [2, 32], strides = [1, 1]} : vector<2x96xf32> to vector<2x32xf32>
    %92 = vector.extract_strided_slice %82 {offsets = [0, 32], sizes = [2, 32], strides = [1, 1]} : vector<2x96xf32> to vector<2x32xf32>
    %93 = arith.addf %91, %92 : vector<2x32xf32>
    %94 = arith.negf %93 : vector<2x32xf32>
    %95 = math.exp %94 : vector<2x32xf32>
    %cst_25 = arith.constant 1.000000e+00 : f32
    %96 = vector.broadcast %cst_25 : f32 to vector<2x32xf32>
    %97 = arith.addf %96, %95 : vector<2x32xf32>
    %98 = arith.divf %96, %97 : vector<2x32xf32>
    %99 = vector.extract_strided_slice %79 {offsets = [0, 64], sizes = [2, 32], strides = [1, 1]} : vector<2x96xf32> to vector<2x32xf32>
    %100 = vector.extract_strided_slice %82 {offsets = [0, 64], sizes = [2, 32], strides = [1, 1]} : vector<2x96xf32> to vector<2x32xf32>
    %101 = arith.mulf %90, %100 : vector<2x32xf32>
    %102 = arith.addf %99, %101 : vector<2x32xf32>
    %103 = math.tanh %102 : vector<2x32xf32>
    %cst_26 = arith.constant 1.000000e+00 : f32
    %104 = vector.broadcast %cst_26 : f32 to vector<2x32xf32>
    %105 = arith.subf %104, %98 : vector<2x32xf32>
    %106 = arith.mulf %105, %103 : vector<2x32xf32>
    %107 = arith.mulf %98, %74 : vector<2x32xf32>
    %108 = arith.addf %106, %107 : vector<2x32xf32>
    %c5 = arith.constant 5 : index
    %c0_27 = arith.constant 0 : index
    %c0_28 = arith.constant 0 : index
    %109 = vector.load %arg38[%c5, %c0_27, %c0_28] : memref<8x2x32xf32, #tpu.memory_space<vmem>>, vector<1x2x32xf32>
    %110 = vector.shape_cast %109 : vector<1x2x32xf32> to vector<2x32xf32>
    %111 = vector.shape_cast %108 : vector<2x32xf32> to vector<1x2x32xf32>
    tpu.vector_store %arg38[%c5, %c0_27, %c0_28], %111 {strides = array<i32>} : memref<8x2x32xf32, #tpu.memory_space<vmem>>, vector<1x2x32xf32>,
    %112 = vector.extract_strided_slice %6 {offsets = [4, 0, 0], sizes = [1, 2, 96], strides = [1, 1, 1]} : vector<8x2x96xf32> to vector<1x2x96xf32>
    %113 = vector.shape_cast %112 : vector<1x2x96xf32> to vector<2x96xf32>
    %cst_29 = arith.constant dense<0.000000e+00> : vector<2x96xf32>
    %114 = tpu.matmul %108, %7, %cst_29 {dimension_numbers = #tpu.dot_dimension_numbers<[1], [0], [0], [1], [0, 0, 1, 1], [], []>} : vector<2x32xf32>, vector<32x96xf32>, vector<2x96xf32> -> vector<2x96xf32>
    %115 = vector.broadcast %8 : vector<1x96xf32> to vector<2x96xf32>
    %116 = arith.addf %114, %115 : vector<2x96xf32>
    %117 = vector.extract_strided_slice %113 {offsets = [0, 0], sizes = [2, 32], strides = [1, 1]} : vector<2x96xf32> to vector<2x32xf32>
    %118 = vector.extract_strided_slice %116 {offsets = [0, 0], sizes = [2, 32], strides = [1, 1]} : vector<2x96xf32> to vector<2x32xf32>
    %119 = arith.addf %117, %118 : vector<2x32xf32>
    %120 = arith.negf %119 : vector<2x32xf32>
    %121 = math.exp %120 : vector<2x32xf32>
    %cst_30 = arith.constant 1.000000e+00 : f32
    %122 = vector.broadcast %cst_30 : f32 to vector<2x32xf32>
    %123 = arith.addf %122, %121 : vector<2x32xf32>
    %124 = arith.divf %122, %123 : vector<2x32xf32>
    %125 = vector.extract_strided_slice %113 {offsets = [0, 32], sizes = [2, 32], strides = [1, 1]} : vector<2x96xf32> to vector<2x32xf32>
    %126 = vector.extract_strided_slice %116 {offsets = [0, 32], sizes = [2, 32], strides = [1, 1]} : vector<2x96xf32> to vector<2x32xf32>
    %127 = arith.addf %125, %126 : vector<2x32xf32>
    %128 = arith.negf %127 : vector<2x32xf32>
    %129 = math.exp %128 : vector<2x32xf32>
    %cst_31 = arith.constant 1.000000e+00 : f32
    %130 = vector.broadcast %cst_31 : f32 to vector<2x32xf32>
    %131 = arith.addf %130, %129 : vector<2x32xf32>
    %132 = arith.divf %130, %131 : vector<2x32xf32>
    %133 = vector.extract_strided_slice %113 {offsets = [0, 64], sizes = [2, 32], strides = [1, 1]} : vector<2x96xf32> to vector<2x32xf32>
    %134 = vector.extract_strided_slice %116 {offsets = [0, 64], sizes = [2, 32], strides = [1, 1]} : vector<2x96xf32> to vector<2x32xf32>
    %135 = arith.mulf %124, %134 : vector<2x32xf32>
    %136 = arith.addf %133, %135 : vector<2x32xf32>
    %137 = math.tanh %136 : vector<2x32xf32>
    %cst_32 = arith.constant 1.000000e+00 : f32
    %138 = vector.broadcast %cst_32 : f32 to vector<2x32xf32>
    %139 = arith.subf %138, %132 : vector<2x32xf32>
    %140 = arith.mulf %139, %137 : vector<2x32xf32>
    %141 = arith.mulf %132, %108 : vector<2x32xf32>
    %142 = arith.addf %140, %141 : vector<2x32xf32>
    %c4 = arith.constant 4 : index
    %c0_33 = arith.constant 0 : index
    %c0_34 = arith.constant 0 : index
    %143 = vector.load %arg38[%c4, %c0_33, %c0_34] : memref<8x2x32xf32, #tpu.memory_space<vmem>>, vector<1x2x32xf32>
    %144 = vector.shape_cast %143 : vector<1x2x32xf32> to vector<2x32xf32>
    %145 = vector.shape_cast %142 : vector<2x32xf32> to vector<1x2x32xf32>
    tpu.vector_store %arg38[%c4, %c0_33, %c0_34], %145 {strides = array<i32>} : memref<8x2x32xf32, #tpu.memory_space<vmem>>, vector<1x2x32xf32>,
    %146 = vector.extract_strided_slice %6 {offsets = [3, 0, 0], sizes = [1, 2, 96], strides = [1, 1, 1]} : vector<8x2x96xf32> to vector<1x2x96xf32>
    %147 = vector.shape_cast %146 : vector<1x2x96xf32> to vector<2x96xf32>
    %cst_35 = arith.constant dense<0.000000e+00> : vector<2x96xf32>
    %148 = tpu.matmul %142, %7, %cst_35 {dimension_numbers = #tpu.dot_dimension_numbers<[1], [0], [0], [1], [0, 0, 1, 1], [], []>} : vector<2x32xf32>, vector<32x96xf32>, vector<2x96xf32> -> vector<2x96xf32>
    %149 = vector.broadcast %8 : vector<1x96xf32> to vector<2x96xf32>
    %150 = arith.addf %148, %149 : vector<2x96xf32>
    %151 = vector.extract_strided_slice %147 {offsets = [0, 0], sizes = [2, 32], strides = [1, 1]} : vector<2x96xf32> to vector<2x32xf32>
    %152 = vector.extract_strided_slice %150 {offsets = [0, 0], sizes = [2, 32], strides = [1, 1]} : vector<2x96xf32> to vector<2x32xf32>
    %153 = arith.addf %151, %152 : vector<2x32xf32>
    %154 = arith.negf %153 : vector<2x32xf32>
    %155 = math.exp %154 : vector<2x32xf32>
    %cst_36 = arith.constant 1.000000e+00 : f32
    %156 = vector.broadcast %cst_36 : f32 to vector<2x32xf32>
    %157 = arith.addf %156, %155 : vector<2x32xf32>
    %158 = arith.divf %156, %157 : vector<2x32xf32>
    %159 = vector.extract_strided_slice %147 {offsets = [0, 32], sizes = [2, 32], strides = [1, 1]} : vector<2x96xf32> to vector<2x32xf32>
    %160 = vector.extract_strided_slice %150 {offsets = [0, 32], sizes = [2, 32], strides = [1, 1]} : vector<2x96xf32> to vector<2x32xf32>
    %161 = arith.addf %159, %160 : vector<2x32xf32>
    %162 = arith.negf %161 : vector<2x32xf32>
    %163 = math.exp %162 : vector<2x32xf32>
    %cst_37 = arith.constant 1.000000e+00 : f32
    %164 = vector.broadcast %cst_37 : f32 to vector<2x32xf32>
    %165 = arith.addf %164, %163 : vector<2x32xf32>
    %166 = arith.divf %164, %165 : vector<2x32xf32>
    %167 = vector.extract_strided_slice %147 {offsets = [0, 64], sizes = [2, 32], strides = [1, 1]} : vector<2x96xf32> to vector<2x32xf32>
    %168 = vector.extract_strided_slice %150 {offsets = [0, 64], sizes = [2, 32], strides = [1, 1]} : vector<2x96xf32> to vector<2x32xf32>
    %169 = arith.mulf %158, %168 : vector<2x32xf32>
    %170 = arith.addf %167, %169 : vector<2x32xf32>
    %171 = math.tanh %170 : vector<2x32xf32>
    %cst_38 = arith.constant 1.000000e+00 : f32
    %172 = vector.broadcast %cst_38 : f32 to vector<2x32xf32>
    %173 = arith.subf %172, %166 : vector<2x32xf32>
    %174 = arith.mulf %173, %171 : vector<2x32xf32>
    %175 = arith.mulf %166, %142 : vector<2x32xf32>
    %176 = arith.addf %174, %175 : vector<2x32xf32>
    %c3 = arith.constant 3 : index
    %c0_39 = arith.constant 0 : index
    %c0_40 = arith.constant 0 : index
    %177 = vector.load %arg38[%c3, %c0_39, %c0_40] : memref<8x2x32xf32, #tpu.memory_space<vmem>>, vector<1x2x32xf32>
    %178 = vector.shape_cast %177 : vector<1x2x32xf32> to vector<2x32xf32>
    %179 = vector.shape_cast %176 : vector<2x32xf32> to vector<1x2x32xf32>
    tpu.vector_store %arg38[%c3, %c0_39, %c0_40], %179 {strides = array<i32>} : memref<8x2x32xf32, #tpu.memory_space<vmem>>, vector<1x2x32xf32>,
    %180 = vector.extract_strided_slice %6 {offsets = [2, 0, 0], sizes = [1, 2, 96], strides = [1, 1, 1]} : vector<8x2x96xf32> to vector<1x2x96xf32>
    %181 = vector.shape_cast %180 : vector<1x2x96xf32> to vector<2x96xf32>
    %cst_41 = arith.constant dense<0.000000e+00> : vector<2x96xf32>
    %182 = tpu.matmul %176, %7, %cst_41 {dimension_numbers = #tpu.dot_dimension_numbers<[1], [0], [0], [1], [0, 0, 1, 1], [], []>} : vector<2x32xf32>, vector<32x96xf32>, vector<2x96xf32> -> vector<2x96xf32>
    %183 = vector.broadcast %8 : vector<1x96xf32> to vector<2x96xf32>
    %184 = arith.addf %182, %183 : vector<2x96xf32>
    %185 = vector.extract_strided_slice %181 {offsets = [0, 0], sizes = [2, 32], strides = [1, 1]} : vector<2x96xf32> to vector<2x32xf32>
    %186 = vector.extract_strided_slice %184 {offsets = [0, 0], sizes = [2, 32], strides = [1, 1]} : vector<2x96xf32> to vector<2x32xf32>
    %187 = arith.addf %185, %186 : vector<2x32xf32>
    %188 = arith.negf %187 : vector<2x32xf32>
    %189 = math.exp %188 : vector<2x32xf32>
    %cst_42 = arith.constant 1.000000e+00 : f32
    %190 = vector.broadcast %cst_42 : f32 to vector<2x32xf32>
    %191 = arith.addf %190, %189 : vector<2x32xf32>
    %192 = arith.divf %190, %191 : vector<2x32xf32>
    %193 = vector.extract_strided_slice %181 {offsets = [0, 32], sizes = [2, 32], strides = [1, 1]} : vector<2x96xf32> to vector<2x32xf32>
    %194 = vector.extract_strided_slice %184 {offsets = [0, 32], sizes = [2, 32], strides = [1, 1]} : vector<2x96xf32> to vector<2x32xf32>
    %195 = arith.addf %193, %194 : vector<2x32xf32>
    %196 = arith.negf %195 : vector<2x32xf32>
    %197 = math.exp %196 : vector<2x32xf32>
    %cst_43 = arith.constant 1.000000e+00 : f32
    %198 = vector.broadcast %cst_43 : f32 to vector<2x32xf32>
    %199 = arith.addf %198, %197 : vector<2x32xf32>
    %200 = arith.divf %198, %199 : vector<2x32xf32>
    %201 = vector.extract_strided_slice %181 {offsets = [0, 64], sizes = [2, 32], strides = [1, 1]} : vector<2x96xf32> to vector<2x32xf32>
    %202 = vector.extract_strided_slice %184 {offsets = [0, 64], sizes = [2, 32], strides = [1, 1]} : vector<2x96xf32> to vector<2x32xf32>
    %203 = arith.mulf %192, %202 : vector<2x32xf32>
    %204 = arith.addf %201, %203 : vector<2x32xf32>
    %205 = math.tanh %204 : vector<2x32xf32>
    %cst_44 = arith.constant 1.000000e+00 : f32
    %206 = vector.broadcast %cst_44 : f32 to vector<2x32xf32>
    %207 = arith.subf %206, %200 : vector<2x32xf32>
    %208 = arith.mulf %207, %205 : vector<2x32xf32>
    %209 = arith.mulf %200, %176 : vector<2x32xf32>
    %210 = arith.addf %208, %209 : vector<2x32xf32>
    %c2 = arith.constant 2 : index
    %c0_45 = arith.constant 0 : index
    %c0_46 = arith.constant 0 : index
    %211 = vector.load %arg38[%c2, %c0_45, %c0_46] : memref<8x2x32xf32, #tpu.memory_space<vmem>>, vector<1x2x32xf32>
    %212 = vector.shape_cast %211 : vector<1x2x32xf32> to vector<2x32xf32>
    %213 = vector.shape_cast %210 : vector<2x32xf32> to vector<1x2x32xf32>
    tpu.vector_store %arg38[%c2, %c0_45, %c0_46], %213 {strides = array<i32>} : memref<8x2x32xf32, #tpu.memory_space<vmem>>, vector<1x2x32xf32>,
    %214 = vector.extract_strided_slice %6 {offsets = [1, 0, 0], sizes = [1, 2, 96], strides = [1, 1, 1]} : vector<8x2x96xf32> to vector<1x2x96xf32>
    %215 = vector.shape_cast %214 : vector<1x2x96xf32> to vector<2x96xf32>
    %cst_47 = arith.constant dense<0.000000e+00> : vector<2x96xf32>
    %216 = tpu.matmul %210, %7, %cst_47 {dimension_numbers = #tpu.dot_dimension_numbers<[1], [0], [0], [1], [0, 0, 1, 1], [], []>} : vector<2x32xf32>, vector<32x96xf32>, vector<2x96xf32> -> vector<2x96xf32>
    %217 = vector.broadcast %8 : vector<1x96xf32> to vector<2x96xf32>
    %218 = arith.addf %216, %217 : vector<2x96xf32>
    %219 = vector.extract_strided_slice %215 {offsets = [0, 0], sizes = [2, 32], strides = [1, 1]} : vector<2x96xf32> to vector<2x32xf32>
    %220 = vector.extract_strided_slice %218 {offsets = [0, 0], sizes = [2, 32], strides = [1, 1]} : vector<2x96xf32> to vector<2x32xf32>
    %221 = arith.addf %219, %220 : vector<2x32xf32>
    %222 = arith.negf %221 : vector<2x32xf32>
    %223 = math.exp %222 : vector<2x32xf32>
    %cst_48 = arith.constant 1.000000e+00 : f32
    %224 = vector.broadcast %cst_48 : f32 to vector<2x32xf32>
    %225 = arith.addf %224, %223 : vector<2x32xf32>
    %226 = arith.divf %224, %225 : vector<2x32xf32>
    %227 = vector.extract_strided_slice %215 {offsets = [0, 32], sizes = [2, 32], strides = [1, 1]} : vector<2x96xf32> to vector<2x32xf32>
    %228 = vector.extract_strided_slice %218 {offsets = [0, 32], sizes = [2, 32], strides = [1, 1]} : vector<2x96xf32> to vector<2x32xf32>
    %229 = arith.addf %227, %228 : vector<2x32xf32>
    %230 = arith.negf %229 : vector<2x32xf32>
    %231 = math.exp %230 : vector<2x32xf32>
    %cst_49 = arith.constant 1.000000e+00 : f32
    %232 = vector.broadcast %cst_49 : f32 to vector<2x32xf32>
    %233 = arith.addf %232, %231 : vector<2x32xf32>
    %234 = arith.divf %232, %233 : vector<2x32xf32>
    %235 = vector.extract_strided_slice %215 {offsets = [0, 64], sizes = [2, 32], strides = [1, 1]} : vector<2x96xf32> to vector<2x32xf32>
    %236 = vector.extract_strided_slice %218 {offsets = [0, 64], sizes = [2, 32], strides = [1, 1]} : vector<2x96xf32> to vector<2x32xf32>
    %237 = arith.mulf %226, %236 : vector<2x32xf32>
    %238 = arith.addf %235, %237 : vector<2x32xf32>
    %239 = math.tanh %238 : vector<2x32xf32>
    %cst_50 = arith.constant 1.000000e+00 : f32
    %240 = vector.broadcast %cst_50 : f32 to vector<2x32xf32>
    %241 = arith.subf %240, %234 : vector<2x32xf32>
    %242 = arith.mulf %241, %239 : vector<2x32xf32>
    %243 = arith.mulf %234, %210 : vector<2x32xf32>
    %244 = arith.addf %242, %243 : vector<2x32xf32>
    %c1 = arith.constant 1 : index
    %c0_51 = arith.constant 0 : index
    %c0_52 = arith.constant 0 : index
    %245 = vector.load %arg38[%c1, %c0_51, %c0_52] : memref<8x2x32xf32, #tpu.memory_space<vmem>>, vector<1x2x32xf32>
    %246 = vector.shape_cast %245 : vector<1x2x32xf32> to vector<2x32xf32>
    %247 = vector.shape_cast %244 : vector<2x32xf32> to vector<1x2x32xf32>
    tpu.vector_store %arg38[%c1, %c0_51, %c0_52], %247 {strides = array<i32>} : memref<8x2x32xf32, #tpu.memory_space<vmem>>, vector<1x2x32xf32>,
    %248 = vector.extract_strided_slice %6 {offsets = [0, 0, 0], sizes = [1, 2, 96], strides = [1, 1, 1]} : vector<8x2x96xf32> to vector<1x2x96xf32>
    %249 = vector.shape_cast %248 : vector<1x2x96xf32> to vector<2x96xf32>
    %cst_53 = arith.constant dense<0.000000e+00> : vector<2x96xf32>
    %250 = tpu.matmul %244, %7, %cst_53 {dimension_numbers = #tpu.dot_dimension_numbers<[1], [0], [0], [1], [0, 0, 1, 1], [], []>} : vector<2x32xf32>, vector<32x96xf32>, vector<2x96xf32> -> vector<2x96xf32>
    %251 = vector.broadcast %8 : vector<1x96xf32> to vector<2x96xf32>
    %252 = arith.addf %250, %251 : vector<2x96xf32>
    %253 = vector.extract_strided_slice %249 {offsets = [0, 0], sizes = [2, 32], strides = [1, 1]} : vector<2x96xf32> to vector<2x32xf32>
    %254 = vector.extract_strided_slice %252 {offsets = [0, 0], sizes = [2, 32], strides = [1, 1]} : vector<2x96xf32> to vector<2x32xf32>
    %255 = arith.addf %253, %254 : vector<2x32xf32>
    %256 = arith.negf %255 : vector<2x32xf32>
    %257 = math.exp %256 : vector<2x32xf32>
    %cst_54 = arith.constant 1.000000e+00 : f32
    %258 = vector.broadcast %cst_54 : f32 to vector<2x32xf32>
    %259 = arith.addf %258, %257 : vector<2x32xf32>
    %260 = arith.divf %258, %259 : vector<2x32xf32>
    %261 = vector.extract_strided_slice %249 {offsets = [0, 32], sizes = [2, 32], strides = [1, 1]} : vector<2x96xf32> to vector<2x32xf32>
    %262 = vector.extract_strided_slice %252 {offsets = [0, 32], sizes = [2, 32], strides = [1, 1]} : vector<2x96xf32> to vector<2x32xf32>
    %263 = arith.addf %261, %262 : vector<2x32xf32>
    %264 = arith.negf %263 : vector<2x32xf32>
    %265 = math.exp %264 : vector<2x32xf32>
    %cst_55 = arith.constant 1.000000e+00 : f32
    %266 = vector.broadcast %cst_55 : f32 to vector<2x32xf32>
    %267 = arith.addf %266, %265 : vector<2x32xf32>
    %268 = arith.divf %266, %267 : vector<2x32xf32>
    %269 = vector.extract_strided_slice %249 {offsets = [0, 64], sizes = [2, 32], strides = [1, 1]} : vector<2x96xf32> to vector<2x32xf32>
    %270 = vector.extract_strided_slice %252 {offsets = [0, 64], sizes = [2, 32], strides = [1, 1]} : vector<2x96xf32> to vector<2x32xf32>
    %271 = arith.mulf %260, %270 : vector<2x32xf32>
    %272 = arith.addf %269, %271 : vector<2x32xf32>
    %273 = math.tanh %272 : vector<2x32xf32>
    %cst_56 = arith.constant 1.000000e+00 : f32
    %274 = vector.broadcast %cst_56 : f32 to vector<2x32xf32>
    %275 = arith.subf %274, %268 : vector<2x32xf32>
    %276 = arith.mulf %275, %273 : vector<2x32xf32>
    %277 = arith.mulf %268, %244 : vector<2x32xf32>
    %278 = arith.addf %276, %277 : vector<2x32xf32>
    %c0_57 = arith.constant 0 : index
    %c0_58 = arith.constant 0 : index
    %c0_59 = arith.constant 0 : index
    %279 = vector.load %arg38[%c0_57, %c0_58, %c0_59] : memref<8x2x32xf32, #tpu.memory_space<vmem>>, vector<1x2x32xf32>
    %280 = vector.shape_cast %279 : vector<1x2x32xf32> to vector<2x32xf32>
    %281 = vector.shape_cast %278 : vector<2x32xf32> to vector<1x2x32xf32>
    tpu.vector_store %arg38[%c0_57, %c0_58, %c0_59], %281 {strides = array<i32>} : memref<8x2x32xf32, #tpu.memory_space<vmem>>, vector<1x2x32xf32>,
    %c0_60 = arith.constant 0 : index
    %c0_61 = arith.constant 0 : index
    %c0_62 = arith.constant 0 : index
    %282 = vector.load %arg38[%c0_60, %c0_61, %c0_62] : memref<8x2x32xf32, #tpu.memory_space<vmem>>, vector<8x2x32xf32>
    %c0_63 = arith.constant 0 : index
    %c0_64 = arith.constant 0 : index
    %283 = vector.load %arg8[%c0_63, %c0_64] : memref<32x8xf32, #tpu.memory_space<vmem>>, vector<32x8xf32>
    %cst_65 = arith.constant dense<0.000000e+00> : vector<8x2x8xf32>
    %284 = tpu.matmul %282, %283, %cst_65 {dimension_numbers = #tpu.dot_dimension_numbers<[2], [0], [0, 1], [1], [0, 0, 0, 1, 1, 1], [], []>} : vector<8x2x32xf32>, vector<32x8xf32>, vector<8x2x8xf32> -> vector<8x2x8xf32>
    %c0_66 = arith.constant 0 : index
    %c0_67 = arith.constant 0 : index
    %285 = vector.load %arg9[%c0_66, %c0_67] : memref<1x8xf32, #tpu.memory_space<vmem>>, vector<1x8xf32>
    %286 = vector.shape_cast %285 : vector<1x8xf32> to vector<1x1x8xf32>
    %287 = vector.broadcast %286 : vector<1x1x8xf32> to vector<8x2x8xf32>
    %288 = arith.addf %284, %287 : vector<8x2x8xf32>
    %289 = vector.extract_strided_slice %288 {offsets = [0, 0, 0], sizes = [1, 2, 8], strides = [1, 1, 1]} : vector<8x2x8xf32> to vector<1x2x8xf32>
    %290 = vector.shape_cast %289 : vector<1x2x8xf32> to vector<2x8xf32>
    %c0_68 = arith.constant 0 : index
    %c0_69 = arith.constant 0 : index
    %291 = vector.load %arg10[%c0_68, %c0_69] : memref<8x8xf32, #tpu.memory_space<vmem>>, vector<8x8xf32>
    %cst_70 = arith.constant dense<0.000000e+00> : vector<2x8xf32>
    %292 = tpu.matmul %290, %291, %cst_70 {dimension_numbers = #tpu.dot_dimension_numbers<[1], [0], [0], [1], [0, 0, 1, 1], [], []>} : vector<2x8xf32>, vector<8x8xf32>, vector<2x8xf32> -> vector<2x8xf32>
    %c0_71 = arith.constant 0 : index
    %c0_72 = arith.constant 0 : index
    %293 = vector.load %arg11[%c0_71, %c0_72] : memref<1x8xf32, #tpu.memory_space<vmem>>, vector<1x8xf32>
    %294 = vector.broadcast %293 : vector<1x8xf32> to vector<2x8xf32>
    %295 = arith.addf %292, %294 : vector<2x8xf32>
    %296 = vector.extract_strided_slice %295 {offsets = [0, 0], sizes = [2, 4], strides = [1, 1]} : vector<2x8xf32> to vector<2x4xf32>
    %297 = vector.extract_strided_slice %295 {offsets = [0, 4], sizes = [2, 4], strides = [1, 1]} : vector<2x8xf32> to vector<2x4xf32>
    %298 = math.exp %297 : vector<2x4xf32>
    %c0_73 = arith.constant 0 : index
    %c0_74 = arith.constant 0 : index
    %299 = vector.load %arg1[%c0_73, %c0_74] : memref<2x4xf32, #tpu.memory_space<vmem>>, vector<2x4xf32>
    %300 = arith.mulf %298, %299 : vector<2x4xf32>
    %301 = arith.addf %296, %300 : vector<2x4xf32>
    %c0_75 = arith.constant 0 : index
    %c0_76 = arith.constant 0 : index
    %302 = vector.load %arg12[%c0_75, %c0_76] : memref<8x192xf32, #tpu.memory_space<vmem>>, vector<8x192xf32>
    %cst_77 = arith.constant dense<0.000000e+00> : vector<8x2x192xf32>
    %303 = tpu.matmul %288, %302, %cst_77 {dimension_numbers = #tpu.dot_dimension_numbers<[2], [0], [0, 1], [1], [0, 0, 0, 1, 1, 1], [], []>} : vector<8x2x8xf32>, vector<8x192xf32>, vector<8x2x192xf32> -> vector<8x2x192xf32>
    %c0_78 = arith.constant 0 : index
    %c0_79 = arith.constant 0 : index
    %304 = vector.load %arg14[%c0_78, %c0_79] : memref<1x192xf32, #tpu.memory_space<vmem>>, vector<1x192xf32>
    %305 = vector.shape_cast %304 : vector<1x192xf32> to vector<1x1x192xf32>
    %306 = vector.broadcast %305 : vector<1x1x192xf32> to vector<8x2x192xf32>
    %307 = arith.addf %303, %306 : vector<8x2x192xf32>
    %c0_80 = arith.constant 0 : index
    %c0_81 = arith.constant 0 : index
    %308 = vector.load %arg13[%c0_80, %c0_81] : memref<4x192xf32, #tpu.memory_space<vmem>>, vector<4x192xf32>
    %c0_82 = arith.constant 0 : index
    %c0_83 = arith.constant 0 : index
    %309 = vector.load %arg15[%c0_82, %c0_83] : memref<192x68xf32, #tpu.memory_space<vmem>>, vector<192x68xf32>
    %c0_84 = arith.constant 0 : index
    %c0_85 = arith.constant 0 : index
    %310 = vector.load %arg16[%c0_84, %c0_85] : memref<1x68xf32, #tpu.memory_space<vmem>>, vector<1x68xf32>
    %c0_86 = arith.constant 0 : index
    %c0_87 = arith.constant 0 : index
    %311 = vector.load %arg17[%c0_86, %c0_87] : memref<64x8xf32, #tpu.memory_space<vmem>>, vector<64x8xf32>
    %c0_88 = arith.constant 0 : index
    %c0_89 = arith.constant 0 : index
    %312 = vector.load %arg18[%c0_88, %c0_89] : memref<1x8xf32, #tpu.memory_space<vmem>>, vector<1x8xf32>
    %c0_90 = arith.constant 0 : index
    %c0_91 = arith.constant 0 : index
    %c0_92 = arith.constant 0 : index
    %313 = vector.load %arg39[%c0_90, %c0_91, %c0_92] : memref<8x2x4xf32, #tpu.memory_space<vmem>>, vector<1x2x4xf32>
    %314 = vector.shape_cast %313 : vector<1x2x4xf32> to vector<2x4xf32>
    %315 = vector.shape_cast %301 : vector<2x4xf32> to vector<1x2x4xf32>
    tpu.vector_store %arg39[%c0_90, %c0_91, %c0_92], %315 {strides = array<i32>} : memref<8x2x4xf32, #tpu.memory_space<vmem>>, vector<1x2x4xf32>,
    %cst_93 = arith.constant 0.000000e+00 : f32
    %316 = vector.broadcast %cst_93 : f32 to vector<2x1xf32>
    %c0_94 = arith.constant 0 : index
    %317 = memref.load %arg3[%c0_94] : memref<7xf32, #tpu.memory_space<smem>>
    %cst_95 = arith.constant dense<0.000000e+00> : vector<2x192xf32>
    %318 = tpu.matmul %301, %308, %cst_95 {dimension_numbers = #tpu.dot_dimension_numbers<[1], [0], [0], [1], [0, 0, 1, 1], [], []>} : vector<2x4xf32>, vector<4x192xf32>, vector<2x192xf32> -> vector<2x192xf32>
    %319 = vector.extract_strided_slice %307 {offsets = [1, 0, 0], sizes = [1, 2, 192], strides = [1, 1, 1]} : vector<8x2x192xf32> to vector<1x2x192xf32>
    %320 = vector.shape_cast %319 : vector<1x2x192xf32> to vector<2x192xf32>
    %321 = arith.addf %318, %320 : vector<2x192xf32>
    %cst_96 = arith.constant 0.000000e+00 : f32
    %322 = vector.broadcast %cst_96 : f32 to vector<2x192xf32>
    %323 = arith.maximumf %321, %322 : vector<2x192xf32>
    %324 = vector.broadcast %cst_96 : f32 to vector<2x192xf32>
    %325 = arith.subf %321, %324 : vector<2x192xf32>
    %326 = arith.cmpf one, %325, %325 : vector<2x192xf32>
    %327 = vector.broadcast %cst_96 : f32 to vector<2x192xf32>
    %328 = arith.addf %321, %327 : vector<2x192xf32>
    %329 = math.absf %325 : vector<2x192xf32>
    %cst_97 = arith.constant 0.000000e+00 : f32
    %330 = vector.broadcast %cst_97 : f32 to vector<2x192xf32>
    %331 = arith.subf %330, %329 : vector<2x192xf32>
    %332 = math.exp %331 : vector<2x192xf32>
    %333 = math.log1p %332 : vector<2x192xf32>
    %334 = arith.addf %323, %333 : vector<2x192xf32>
    %335 = arith.select %326, %328, %334 : vector<2x192xi1>, vector<2x192xf32>
    %cst_98 = arith.constant dense<0.000000e+00> : vector<2x68xf32>
    %336 = tpu.matmul %335, %309, %cst_98 {dimension_numbers = #tpu.dot_dimension_numbers<[1], [0], [0], [1], [0, 0, 1, 1], [], []>} : vector<2x192xf32>, vector<192x68xf32>, vector<2x68xf32> -> vector<2x68xf32>
    %337 = vector.broadcast %310 : vector<1x68xf32> to vector<2x68xf32>
    %338 = arith.addf %336, %337 : vector<2x68xf32>
    %339 = vector.extract_strided_slice %338 {offsets = [0, 0], sizes = [2, 64], strides = [1, 1]} : vector<2x68xf32> to vector<2x64xf32>
    %cst_99 = arith.constant 0.000000e+00 : f32
    %340 = vector.broadcast %cst_99 : f32 to vector<2x64xf32>
    %341 = arith.maximumf %339, %340 : vector<2x64xf32>
    %342 = vector.broadcast %cst_99 : f32 to vector<2x64xf32>
    %343 = arith.subf %339, %342 : vector<2x64xf32>
    %344 = arith.cmpf one, %343, %343 : vector<2x64xf32>
    %345 = vector.broadcast %cst_99 : f32 to vector<2x64xf32>
    %346 = arith.addf %339, %345 : vector<2x64xf32>
    %347 = math.absf %343 : vector<2x64xf32>
    %cst_100 = arith.constant 0.000000e+00 : f32
    %348 = vector.broadcast %cst_100 : f32 to vector<2x64xf32>
    %349 = arith.subf %348, %347 : vector<2x64xf32>
    %350 = math.exp %349 : vector<2x64xf32>
    %351 = math.log1p %350 : vector<2x64xf32>
    %352 = arith.addf %341, %351 : vector<2x64xf32>
    %353 = arith.select %344, %346, %352 : vector<2x64xi1>, vector<2x64xf32>
    %354 = vector.extract_strided_slice %338 {offsets = [0, 64], sizes = [2, 4], strides = [1, 1]} : vector<2x68xf32> to vector<2x4xf32>
    %355 = arith.negf %354 : vector<2x4xf32>
    %356 = math.exp %355 : vector<2x4xf32>
    %cst_101 = arith.constant 1.000000e+00 : f32
    %357 = vector.broadcast %cst_101 : f32 to vector<2x4xf32>
    %358 = arith.addf %357, %356 : vector<2x4xf32>
    %359 = arith.divf %357, %358 : vector<2x4xf32>
    %cst_102 = arith.constant dense<0.000000e+00> : vector<2x8xf32>
    %360 = tpu.matmul %353, %311, %cst_102 {dimension_numbers = #tpu.dot_dimension_numbers<[1], [0], [0], [1], [0, 0, 1, 1], [], []>} : vector<2x64xf32>, vector<64x8xf32>, vector<2x8xf32> -> vector<2x8xf32>
    %361 = vector.broadcast %312 : vector<1x8xf32> to vector<2x8xf32>
    %362 = arith.addf %360, %361 : vector<2x8xf32>
    %363 = vector.extract_strided_slice %362 {offsets = [0, 0], sizes = [2, 4], strides = [1, 1]} : vector<2x8xf32> to vector<2x4xf32>
    %364 = vector.extract_strided_slice %362 {offsets = [0, 4], sizes = [2, 4], strides = [1, 1]} : vector<2x8xf32> to vector<2x4xf32>
    %365 = arith.subf %363, %364 : vector<2x4xf32>
    %366 = tpu.reciprocal %359 {approx = true} : vector<2x4xf32> -> vector<2x4xf32>
    %367 = arith.mulf %365, %366 : vector<2x4xf32>
    %368 = arith.mulf %367, %367 : vector<2x4xf32>
    %cst_103 = arith.constant dense<0.000000e+00> : vector<2xf32>
    %369 = vector.multi_reduction <add>, %368, %cst_103 [1] : vector<2x4xf32> to vector<2xf32>
    %370 = vector.shape_cast %369 : vector<2xf32> to vector<2x1xf32>
    %cst_104 = arith.constant 5.000000e-01 : f32
    %371 = arith.mulf %cst_104, %317 : f32
    %372 = vector.broadcast %371 : f32 to vector<2x1xf32>
    %373 = arith.mulf %370, %372 : vector<2x1xf32>
    %374 = arith.addf %316, %373 : vector<2x1xf32>
    %375 = vector.broadcast %317 : f32 to vector<2x4xf32>
    %376 = arith.mulf %363, %375 : vector<2x4xf32>
    %377 = arith.addf %301, %376 : vector<2x4xf32>
    %c0_105 = arith.constant 0 : index
    %c0_106 = arith.constant 0 : index
    %c0_107 = arith.constant 0 : index
    %378 = vector.load %arg2[%c0_105, %c0_106, %c0_107] : memref<7x2x4xf32, #tpu.memory_space<vmem>>, vector<1x2x4xf32>
    %379 = vector.shape_cast %378 : vector<1x2x4xf32> to vector<2x4xf32>
    %380 = arith.mulf %359, %379 : vector<2x4xf32>
    %381 = arith.addf %377, %380 : vector<2x4xf32>
    %c1_108 = arith.constant 1 : index
    %c0_109 = arith.constant 0 : index
    %c0_110 = arith.constant 0 : index
    %382 = vector.load %arg39[%c1_108, %c0_109, %c0_110] : memref<8x2x4xf32, #tpu.memory_space<vmem>>, vector<1x2x4xf32>
    %383 = vector.shape_cast %382 : vector<1x2x4xf32> to vector<2x4xf32>
    %384 = vector.shape_cast %381 : vector<2x4xf32> to vector<1x2x4xf32>
    tpu.vector_store %arg39[%c1_108, %c0_109, %c0_110], %384 {strides = array<i32>} : memref<8x2x4xf32, #tpu.memory_space<vmem>>, vector<1x2x4xf32>,
    %c1_111 = arith.constant 1 : index
    %385 = memref.load %arg3[%c1_111] : memref<7xf32, #tpu.memory_space<smem>>
    %cst_112 = arith.constant dense<0.000000e+00> : vector<2x192xf32>
    %386 = tpu.matmul %381, %308, %cst_112 {dimension_numbers = #tpu.dot_dimension_numbers<[1], [0], [0], [1], [0, 0, 1, 1], [], []>} : vector<2x4xf32>, vector<4x192xf32>, vector<2x192xf32> -> vector<2x192xf32>
    %387 = vector.extract_strided_slice %307 {offsets = [2, 0, 0], sizes = [1, 2, 192], strides = [1, 1, 1]} : vector<8x2x192xf32> to vector<1x2x192xf32>
    %388 = vector.shape_cast %387 : vector<1x2x192xf32> to vector<2x192xf32>
    %389 = arith.addf %386, %388 : vector<2x192xf32>
    %cst_113 = arith.constant 0.000000e+00 : f32
    %390 = vector.broadcast %cst_113 : f32 to vector<2x192xf32>
    %391 = arith.maximumf %389, %390 : vector<2x192xf32>
    %392 = vector.broadcast %cst_113 : f32 to vector<2x192xf32>
    %393 = arith.subf %389, %392 : vector<2x192xf32>
    %394 = arith.cmpf one, %393, %393 : vector<2x192xf32>
    %395 = vector.broadcast %cst_113 : f32 to vector<2x192xf32>
    %396 = arith.addf %389, %395 : vector<2x192xf32>
    %397 = math.absf %393 : vector<2x192xf32>
    %cst_114 = arith.constant 0.000000e+00 : f32
    %398 = vector.broadcast %cst_114 : f32 to vector<2x192xf32>
    %399 = arith.subf %398, %397 : vector<2x192xf32>
    %400 = math.exp %399 : vector<2x192xf32>
    %401 = math.log1p %400 : vector<2x192xf32>
    %402 = arith.addf %391, %401 : vector<2x192xf32>
    %403 = arith.select %394, %396, %402 : vector<2x192xi1>, vector<2x192xf32>
    %cst_115 = arith.constant dense<0.000000e+00> : vector<2x68xf32>
    %404 = tpu.matmul %403, %309, %cst_115 {dimension_numbers = #tpu.dot_dimension_numbers<[1], [0], [0], [1], [0, 0, 1, 1], [], []>} : vector<2x192xf32>, vector<192x68xf32>, vector<2x68xf32> -> vector<2x68xf32>
    %405 = vector.broadcast %310 : vector<1x68xf32> to vector<2x68xf32>
    %406 = arith.addf %404, %405 : vector<2x68xf32>
    %407 = vector.extract_strided_slice %406 {offsets = [0, 0], sizes = [2, 64], strides = [1, 1]} : vector<2x68xf32> to vector<2x64xf32>
    %cst_116 = arith.constant 0.000000e+00 : f32
    %408 = vector.broadcast %cst_116 : f32 to vector<2x64xf32>
    %409 = arith.maximumf %407, %408 : vector<2x64xf32>
    %410 = vector.broadcast %cst_116 : f32 to vector<2x64xf32>
    %411 = arith.subf %407, %410 : vector<2x64xf32>
    %412 = arith.cmpf one, %411, %411 : vector<2x64xf32>
    %413 = vector.broadcast %cst_116 : f32 to vector<2x64xf32>
    %414 = arith.addf %407, %413 : vector<2x64xf32>
    %415 = math.absf %411 : vector<2x64xf32>
    %cst_117 = arith.constant 0.000000e+00 : f32
    %416 = vector.broadcast %cst_117 : f32 to vector<2x64xf32>
    %417 = arith.subf %416, %415 : vector<2x64xf32>
    %418 = math.exp %417 : vector<2x64xf32>
    %419 = math.log1p %418 : vector<2x64xf32>
    %420 = arith.addf %409, %419 : vector<2x64xf32>
    %421 = arith.select %412, %414, %420 : vector<2x64xi1>, vector<2x64xf32>
    %422 = vector.extract_strided_slice %406 {offsets = [0, 64], sizes = [2, 4], strides = [1, 1]} : vector<2x68xf32> to vector<2x4xf32>
    %423 = arith.negf %422 : vector<2x4xf32>
    %424 = math.exp %423 : vector<2x4xf32>
    %cst_118 = arith.constant 1.000000e+00 : f32
    %425 = vector.broadcast %cst_118 : f32 to vector<2x4xf32>
    %426 = arith.addf %425, %424 : vector<2x4xf32>
    %427 = arith.divf %425, %426 : vector<2x4xf32>
    %cst_119 = arith.constant dense<0.000000e+00> : vector<2x8xf32>
    %428 = tpu.matmul %421, %311, %cst_119 {dimension_numbers = #tpu.dot_dimension_numbers<[1], [0], [0], [1], [0, 0, 1, 1], [], []>} : vector<2x64xf32>, vector<64x8xf32>, vector<2x8xf32> -> vector<2x8xf32>
    %429 = vector.broadcast %312 : vector<1x8xf32> to vector<2x8xf32>
    %430 = arith.addf %428, %429 : vector<2x8xf32>
    %431 = vector.extract_strided_slice %430 {offsets = [0, 0], sizes = [2, 4], strides = [1, 1]} : vector<2x8xf32> to vector<2x4xf32>
    %432 = vector.extract_strided_slice %430 {offsets = [0, 4], sizes = [2, 4], strides = [1, 1]} : vector<2x8xf32> to vector<2x4xf32>
    %433 = arith.subf %431, %432 : vector<2x4xf32>
    %434 = tpu.reciprocal %427 {approx = true} : vector<2x4xf32> -> vector<2x4xf32>
    %435 = arith.mulf %433, %434 : vector<2x4xf32>
    %436 = arith.mulf %435, %435 : vector<2x4xf32>
    %cst_120 = arith.constant dense<0.000000e+00> : vector<2xf32>
    %437 = vector.multi_reduction <add>, %436, %cst_120 [1] : vector<2x4xf32> to vector<2xf32>
    %438 = vector.shape_cast %437 : vector<2xf32> to vector<2x1xf32>
    %cst_121 = arith.constant 5.000000e-01 : f32
    %439 = arith.mulf %cst_121, %385 : f32
    %440 = vector.broadcast %439 : f32 to vector<2x1xf32>
    %441 = arith.mulf %438, %440 : vector<2x1xf32>
    %442 = arith.addf %374, %441 : vector<2x1xf32>
    %443 = vector.broadcast %385 : f32 to vector<2x4xf32>
    %444 = arith.mulf %431, %443 : vector<2x4xf32>
    %445 = arith.addf %381, %444 : vector<2x4xf32>
    %c1_122 = arith.constant 1 : index
    %c0_123 = arith.constant 0 : index
    %c0_124 = arith.constant 0 : index
    %446 = vector.load %arg2[%c1_122, %c0_123, %c0_124] : memref<7x2x4xf32, #tpu.memory_space<vmem>>, vector<1x2x4xf32>
    %447 = vector.shape_cast %446 : vector<1x2x4xf32> to vector<2x4xf32>
    %448 = arith.mulf %427, %447 : vector<2x4xf32>
    %449 = arith.addf %445, %448 : vector<2x4xf32>
    %c2_125 = arith.constant 2 : index
    %c0_126 = arith.constant 0 : index
    %c0_127 = arith.constant 0 : index
    %450 = vector.load %arg39[%c2_125, %c0_126, %c0_127] : memref<8x2x4xf32, #tpu.memory_space<vmem>>, vector<1x2x4xf32>
    %451 = vector.shape_cast %450 : vector<1x2x4xf32> to vector<2x4xf32>
    %452 = vector.shape_cast %449 : vector<2x4xf32> to vector<1x2x4xf32>
    tpu.vector_store %arg39[%c2_125, %c0_126, %c0_127], %452 {strides = array<i32>} : memref<8x2x4xf32, #tpu.memory_space<vmem>>, vector<1x2x4xf32>,
    %c2_128 = arith.constant 2 : index
    %453 = memref.load %arg3[%c2_128] : memref<7xf32, #tpu.memory_space<smem>>
    %cst_129 = arith.constant dense<0.000000e+00> : vector<2x192xf32>
    %454 = tpu.matmul %449, %308, %cst_129 {dimension_numbers = #tpu.dot_dimension_numbers<[1], [0], [0], [1], [0, 0, 1, 1], [], []>} : vector<2x4xf32>, vector<4x192xf32>, vector<2x192xf32> -> vector<2x192xf32>
    %455 = vector.extract_strided_slice %307 {offsets = [3, 0, 0], sizes = [1, 2, 192], strides = [1, 1, 1]} : vector<8x2x192xf32> to vector<1x2x192xf32>
    %456 = vector.shape_cast %455 : vector<1x2x192xf32> to vector<2x192xf32>
    %457 = arith.addf %454, %456 : vector<2x192xf32>
    %cst_130 = arith.constant 0.000000e+00 : f32
    %458 = vector.broadcast %cst_130 : f32 to vector<2x192xf32>
    %459 = arith.maximumf %457, %458 : vector<2x192xf32>
    %460 = vector.broadcast %cst_130 : f32 to vector<2x192xf32>
    %461 = arith.subf %457, %460 : vector<2x192xf32>
    %462 = arith.cmpf one, %461, %461 : vector<2x192xf32>
    %463 = vector.broadcast %cst_130 : f32 to vector<2x192xf32>
    %464 = arith.addf %457, %463 : vector<2x192xf32>
    %465 = math.absf %461 : vector<2x192xf32>
    %cst_131 = arith.constant 0.000000e+00 : f32
    %466 = vector.broadcast %cst_131 : f32 to vector<2x192xf32>
    %467 = arith.subf %466, %465 : vector<2x192xf32>
    %468 = math.exp %467 : vector<2x192xf32>
    %469 = math.log1p %468 : vector<2x192xf32>
    %470 = arith.addf %459, %469 : vector<2x192xf32>
    %471 = arith.select %462, %464, %470 : vector<2x192xi1>, vector<2x192xf32>
    %cst_132 = arith.constant dense<0.000000e+00> : vector<2x68xf32>
    %472 = tpu.matmul %471, %309, %cst_132 {dimension_numbers = #tpu.dot_dimension_numbers<[1], [0], [0], [1], [0, 0, 1, 1], [], []>} : vector<2x192xf32>, vector<192x68xf32>, vector<2x68xf32> -> vector<2x68xf32>
    %473 = vector.broadcast %310 : vector<1x68xf32> to vector<2x68xf32>
    %474 = arith.addf %472, %473 : vector<2x68xf32>
    %475 = vector.extract_strided_slice %474 {offsets = [0, 0], sizes = [2, 64], strides = [1, 1]} : vector<2x68xf32> to vector<2x64xf32>
    %cst_133 = arith.constant 0.000000e+00 : f32
    %476 = vector.broadcast %cst_133 : f32 to vector<2x64xf32>
    %477 = arith.maximumf %475, %476 : vector<2x64xf32>
    %478 = vector.broadcast %cst_133 : f32 to vector<2x64xf32>
    %479 = arith.subf %475, %478 : vector<2x64xf32>
    %480 = arith.cmpf one, %479, %479 : vector<2x64xf32>
    %481 = vector.broadcast %cst_133 : f32 to vector<2x64xf32>
    %482 = arith.addf %475, %481 : vector<2x64xf32>
    %483 = math.absf %479 : vector<2x64xf32>
    %cst_134 = arith.constant 0.000000e+00 : f32
    %484 = vector.broadcast %cst_134 : f32 to vector<2x64xf32>
    %485 = arith.subf %484, %483 : vector<2x64xf32>
    %486 = math.exp %485 : vector<2x64xf32>
    %487 = math.log1p %486 : vector<2x64xf32>
    %488 = arith.addf %477, %487 : vector<2x64xf32>
    %489 = arith.select %480, %482, %488 : vector<2x64xi1>, vector<2x64xf32>
    %490 = vector.extract_strided_slice %474 {offsets = [0, 64], sizes = [2, 4], strides = [1, 1]} : vector<2x68xf32> to vector<2x4xf32>
    %491 = arith.negf %490 : vector<2x4xf32>
    %492 = math.exp %491 : vector<2x4xf32>
    %cst_135 = arith.constant 1.000000e+00 : f32
    %493 = vector.broadcast %cst_135 : f32 to vector<2x4xf32>
    %494 = arith.addf %493, %492 : vector<2x4xf32>
    %495 = arith.divf %493, %494 : vector<2x4xf32>
    %cst_136 = arith.constant dense<0.000000e+00> : vector<2x8xf32>
    %496 = tpu.matmul %489, %311, %cst_136 {dimension_numbers = #tpu.dot_dimension_numbers<[1], [0], [0], [1], [0, 0, 1, 1], [], []>} : vector<2x64xf32>, vector<64x8xf32>, vector<2x8xf32> -> vector<2x8xf32>
    %497 = vector.broadcast %312 : vector<1x8xf32> to vector<2x8xf32>
    %498 = arith.addf %496, %497 : vector<2x8xf32>
    %499 = vector.extract_strided_slice %498 {offsets = [0, 0], sizes = [2, 4], strides = [1, 1]} : vector<2x8xf32> to vector<2x4xf32>
    %500 = vector.extract_strided_slice %498 {offsets = [0, 4], sizes = [2, 4], strides = [1, 1]} : vector<2x8xf32> to vector<2x4xf32>
    %501 = arith.subf %499, %500 : vector<2x4xf32>
    %502 = tpu.reciprocal %495 {approx = true} : vector<2x4xf32> -> vector<2x4xf32>
    %503 = arith.mulf %501, %502 : vector<2x4xf32>
    %504 = arith.mulf %503, %503 : vector<2x4xf32>
    %cst_137 = arith.constant dense<0.000000e+00> : vector<2xf32>
    %505 = vector.multi_reduction <add>, %504, %cst_137 [1] : vector<2x4xf32> to vector<2xf32>
    %506 = vector.shape_cast %505 : vector<2xf32> to vector<2x1xf32>
    %cst_138 = arith.constant 5.000000e-01 : f32
    %507 = arith.mulf %cst_138, %453 : f32
    %508 = vector.broadcast %507 : f32 to vector<2x1xf32>
    %509 = arith.mulf %506, %508 : vector<2x1xf32>
    %510 = arith.addf %442, %509 : vector<2x1xf32>
    %511 = vector.broadcast %453 : f32 to vector<2x4xf32>
    %512 = arith.mulf %499, %511 : vector<2x4xf32>
    %513 = arith.addf %449, %512 : vector<2x4xf32>
    %c2_139 = arith.constant 2 : index
    %c0_140 = arith.constant 0 : index
    %c0_141 = arith.constant 0 : index
    %514 = vector.load %arg2[%c2_139, %c0_140, %c0_141] : memref<7x2x4xf32, #tpu.memory_space<vmem>>, vector<1x2x4xf32>
    %515 = vector.shape_cast %514 : vector<1x2x4xf32> to vector<2x4xf32>
    %516 = arith.mulf %495, %515 : vector<2x4xf32>
    %517 = arith.addf %513, %516 : vector<2x4xf32>
    %c3_142 = arith.constant 3 : index
    %c0_143 = arith.constant 0 : index
    %c0_144 = arith.constant 0 : index
    %518 = vector.load %arg39[%c3_142, %c0_143, %c0_144] : memref<8x2x4xf32, #tpu.memory_space<vmem>>, vector<1x2x4xf32>
    %519 = vector.shape_cast %518 : vector<1x2x4xf32> to vector<2x4xf32>
    %520 = vector.shape_cast %517 : vector<2x4xf32> to vector<1x2x4xf32>
    tpu.vector_store %arg39[%c3_142, %c0_143, %c0_144], %520 {strides = array<i32>} : memref<8x2x4xf32, #tpu.memory_space<vmem>>, vector<1x2x4xf32>,
    %c3_145 = arith.constant 3 : index
    %521 = memref.load %arg3[%c3_145] : memref<7xf32, #tpu.memory_space<smem>>
    %cst_146 = arith.constant dense<0.000000e+00> : vector<2x192xf32>
    %522 = tpu.matmul %517, %308, %cst_146 {dimension_numbers = #tpu.dot_dimension_numbers<[1], [0], [0], [1], [0, 0, 1, 1], [], []>} : vector<2x4xf32>, vector<4x192xf32>, vector<2x192xf32> -> vector<2x192xf32>
    %523 = vector.extract_strided_slice %307 {offsets = [4, 0, 0], sizes = [1, 2, 192], strides = [1, 1, 1]} : vector<8x2x192xf32> to vector<1x2x192xf32>
    %524 = vector.shape_cast %523 : vector<1x2x192xf32> to vector<2x192xf32>
    %525 = arith.addf %522, %524 : vector<2x192xf32>
    %cst_147 = arith.constant 0.000000e+00 : f32
    %526 = vector.broadcast %cst_147 : f32 to vector<2x192xf32>
    %527 = arith.maximumf %525, %526 : vector<2x192xf32>
    %528 = vector.broadcast %cst_147 : f32 to vector<2x192xf32>
    %529 = arith.subf %525, %528 : vector<2x192xf32>
    %530 = arith.cmpf one, %529, %529 : vector<2x192xf32>
    %531 = vector.broadcast %cst_147 : f32 to vector<2x192xf32>
    %532 = arith.addf %525, %531 : vector<2x192xf32>
    %533 = math.absf %529 : vector<2x192xf32>
    %cst_148 = arith.constant 0.000000e+00 : f32
    %534 = vector.broadcast %cst_148 : f32 to vector<2x192xf32>
    %535 = arith.subf %534, %533 : vector<2x192xf32>
    %536 = math.exp %535 : vector<2x192xf32>
    %537 = math.log1p %536 : vector<2x192xf32>
    %538 = arith.addf %527, %537 : vector<2x192xf32>
    %539 = arith.select %530, %532, %538 : vector<2x192xi1>, vector<2x192xf32>
    %cst_149 = arith.constant dense<0.000000e+00> : vector<2x68xf32>
    %540 = tpu.matmul %539, %309, %cst_149 {dimension_numbers = #tpu.dot_dimension_numbers<[1], [0], [0], [1], [0, 0, 1, 1], [], []>} : vector<2x192xf32>, vector<192x68xf32>, vector<2x68xf32> -> vector<2x68xf32>
    %541 = vector.broadcast %310 : vector<1x68xf32> to vector<2x68xf32>
    %542 = arith.addf %540, %541 : vector<2x68xf32>
    %543 = vector.extract_strided_slice %542 {offsets = [0, 0], sizes = [2, 64], strides = [1, 1]} : vector<2x68xf32> to vector<2x64xf32>
    %cst_150 = arith.constant 0.000000e+00 : f32
    %544 = vector.broadcast %cst_150 : f32 to vector<2x64xf32>
    %545 = arith.maximumf %543, %544 : vector<2x64xf32>
    %546 = vector.broadcast %cst_150 : f32 to vector<2x64xf32>
    %547 = arith.subf %543, %546 : vector<2x64xf32>
    %548 = arith.cmpf one, %547, %547 : vector<2x64xf32>
    %549 = vector.broadcast %cst_150 : f32 to vector<2x64xf32>
    %550 = arith.addf %543, %549 : vector<2x64xf32>
    %551 = math.absf %547 : vector<2x64xf32>
    %cst_151 = arith.constant 0.000000e+00 : f32
    %552 = vector.broadcast %cst_151 : f32 to vector<2x64xf32>
    %553 = arith.subf %552, %551 : vector<2x64xf32>
    %554 = math.exp %553 : vector<2x64xf32>
    %555 = math.log1p %554 : vector<2x64xf32>
    %556 = arith.addf %545, %555 : vector<2x64xf32>
    %557 = arith.select %548, %550, %556 : vector<2x64xi1>, vector<2x64xf32>
    %558 = vector.extract_strided_slice %542 {offsets = [0, 64], sizes = [2, 4], strides = [1, 1]} : vector<2x68xf32> to vector<2x4xf32>
    %559 = arith.negf %558 : vector<2x4xf32>
    %560 = math.exp %559 : vector<2x4xf32>
    %cst_152 = arith.constant 1.000000e+00 : f32
    %561 = vector.broadcast %cst_152 : f32 to vector<2x4xf32>
    %562 = arith.addf %561, %560 : vector<2x4xf32>
    %563 = arith.divf %561, %562 : vector<2x4xf32>
    %cst_153 = arith.constant dense<0.000000e+00> : vector<2x8xf32>
    %564 = tpu.matmul %557, %311, %cst_153 {dimension_numbers = #tpu.dot_dimension_numbers<[1], [0], [0], [1], [0, 0, 1, 1], [], []>} : vector<2x64xf32>, vector<64x8xf32>, vector<2x8xf32> -> vector<2x8xf32>
    %565 = vector.broadcast %312 : vector<1x8xf32> to vector<2x8xf32>
    %566 = arith.addf %564, %565 : vector<2x8xf32>
    %567 = vector.extract_strided_slice %566 {offsets = [0, 0], sizes = [2, 4], strides = [1, 1]} : vector<2x8xf32> to vector<2x4xf32>
    %568 = vector.extract_strided_slice %566 {offsets = [0, 4], sizes = [2, 4], strides = [1, 1]} : vector<2x8xf32> to vector<2x4xf32>
    %569 = arith.subf %567, %568 : vector<2x4xf32>
    %570 = tpu.reciprocal %563 {approx = true} : vector<2x4xf32> -> vector<2x4xf32>
    %571 = arith.mulf %569, %570 : vector<2x4xf32>
    %572 = arith.mulf %571, %571 : vector<2x4xf32>
    %cst_154 = arith.constant dense<0.000000e+00> : vector<2xf32>
    %573 = vector.multi_reduction <add>, %572, %cst_154 [1] : vector<2x4xf32> to vector<2xf32>
    %574 = vector.shape_cast %573 : vector<2xf32> to vector<2x1xf32>
    %cst_155 = arith.constant 5.000000e-01 : f32
    %575 = arith.mulf %cst_155, %521 : f32
    %576 = vector.broadcast %575 : f32 to vector<2x1xf32>
    %577 = arith.mulf %574, %576 : vector<2x1xf32>
    %578 = arith.addf %510, %577 : vector<2x1xf32>
    %579 = vector.broadcast %521 : f32 to vector<2x4xf32>
    %580 = arith.mulf %567, %579 : vector<2x4xf32>
    %581 = arith.addf %517, %580 : vector<2x4xf32>
    %c3_156 = arith.constant 3 : index
    %c0_157 = arith.constant 0 : index
    %c0_158 = arith.constant 0 : index
    %582 = vector.load %arg2[%c3_156, %c0_157, %c0_158] : memref<7x2x4xf32, #tpu.memory_space<vmem>>, vector<1x2x4xf32>
    %583 = vector.shape_cast %582 : vector<1x2x4xf32> to vector<2x4xf32>
    %584 = arith.mulf %563, %583 : vector<2x4xf32>
    %585 = arith.addf %581, %584 : vector<2x4xf32>
    %c4_159 = arith.constant 4 : index
    %c0_160 = arith.constant 0 : index
    %c0_161 = arith.constant 0 : index
    %586 = vector.load %arg39[%c4_159, %c0_160, %c0_161] : memref<8x2x4xf32, #tpu.memory_space<vmem>>, vector<1x2x4xf32>
    %587 = vector.shape_cast %586 : vector<1x2x4xf32> to vector<2x4xf32>
    %588 = vector.shape_cast %585 : vector<2x4xf32> to vector<1x2x4xf32>
    tpu.vector_store %arg39[%c4_159, %c0_160, %c0_161], %588 {strides = array<i32>} : memref<8x2x4xf32, #tpu.memory_space<vmem>>, vector<1x2x4xf32>,
    %c4_162 = arith.constant 4 : index
    %589 = memref.load %arg3[%c4_162] : memref<7xf32, #tpu.memory_space<smem>>
    %cst_163 = arith.constant dense<0.000000e+00> : vector<2x192xf32>
    %590 = tpu.matmul %585, %308, %cst_163 {dimension_numbers = #tpu.dot_dimension_numbers<[1], [0], [0], [1], [0, 0, 1, 1], [], []>} : vector<2x4xf32>, vector<4x192xf32>, vector<2x192xf32> -> vector<2x192xf32>
    %591 = vector.extract_strided_slice %307 {offsets = [5, 0, 0], sizes = [1, 2, 192], strides = [1, 1, 1]} : vector<8x2x192xf32> to vector<1x2x192xf32>
    %592 = vector.shape_cast %591 : vector<1x2x192xf32> to vector<2x192xf32>
    %593 = arith.addf %590, %592 : vector<2x192xf32>
    %cst_164 = arith.constant 0.000000e+00 : f32
    %594 = vector.broadcast %cst_164 : f32 to vector<2x192xf32>
    %595 = arith.maximumf %593, %594 : vector<2x192xf32>
    %596 = vector.broadcast %cst_164 : f32 to vector<2x192xf32>
    %597 = arith.subf %593, %596 : vector<2x192xf32>
    %598 = arith.cmpf one, %597, %597 : vector<2x192xf32>
    %599 = vector.broadcast %cst_164 : f32 to vector<2x192xf32>
    %600 = arith.addf %593, %599 : vector<2x192xf32>
    %601 = math.absf %597 : vector<2x192xf32>
    %cst_165 = arith.constant 0.000000e+00 : f32
    %602 = vector.broadcast %cst_165 : f32 to vector<2x192xf32>
    %603 = arith.subf %602, %601 : vector<2x192xf32>
    %604 = math.exp %603 : vector<2x192xf32>
    %605 = math.log1p %604 : vector<2x192xf32>
    %606 = arith.addf %595, %605 : vector<2x192xf32>
    %607 = arith.select %598, %600, %606 : vector<2x192xi1>, vector<2x192xf32>
    %cst_166 = arith.constant dense<0.000000e+00> : vector<2x68xf32>
    %608 = tpu.matmul %607, %309, %cst_166 {dimension_numbers = #tpu.dot_dimension_numbers<[1], [0], [0], [1], [0, 0, 1, 1], [], []>} : vector<2x192xf32>, vector<192x68xf32>, vector<2x68xf32> -> vector<2x68xf32>
    %609 = vector.broadcast %310 : vector<1x68xf32> to vector<2x68xf32>
    %610 = arith.addf %608, %609 : vector<2x68xf32>
    %611 = vector.extract_strided_slice %610 {offsets = [0, 0], sizes = [2, 64], strides = [1, 1]} : vector<2x68xf32> to vector<2x64xf32>
    %cst_167 = arith.constant 0.000000e+00 : f32
    %612 = vector.broadcast %cst_167 : f32 to vector<2x64xf32>
    %613 = arith.maximumf %611, %612 : vector<2x64xf32>
    %614 = vector.broadcast %cst_167 : f32 to vector<2x64xf32>
    %615 = arith.subf %611, %614 : vector<2x64xf32>
    %616 = arith.cmpf one, %615, %615 : vector<2x64xf32>
    %617 = vector.broadcast %cst_167 : f32 to vector<2x64xf32>
    %618 = arith.addf %611, %617 : vector<2x64xf32>
    %619 = math.absf %615 : vector<2x64xf32>
    %cst_168 = arith.constant 0.000000e+00 : f32
    %620 = vector.broadcast %cst_168 : f32 to vector<2x64xf32>
    %621 = arith.subf %620, %619 : vector<2x64xf32>
    %622 = math.exp %621 : vector<2x64xf32>
    %623 = math.log1p %622 : vector<2x64xf32>
    %624 = arith.addf %613, %623 : vector<2x64xf32>
    %625 = arith.select %616, %618, %624 : vector<2x64xi1>, vector<2x64xf32>
    %626 = vector.extract_strided_slice %610 {offsets = [0, 64], sizes = [2, 4], strides = [1, 1]} : vector<2x68xf32> to vector<2x4xf32>
    %627 = arith.negf %626 : vector<2x4xf32>
    %628 = math.exp %627 : vector<2x4xf32>
    %cst_169 = arith.constant 1.000000e+00 : f32
    %629 = vector.broadcast %cst_169 : f32 to vector<2x4xf32>
    %630 = arith.addf %629, %628 : vector<2x4xf32>
    %631 = arith.divf %629, %630 : vector<2x4xf32>
    %cst_170 = arith.constant dense<0.000000e+00> : vector<2x8xf32>
    %632 = tpu.matmul %625, %311, %cst_170 {dimension_numbers = #tpu.dot_dimension_numbers<[1], [0], [0], [1], [0, 0, 1, 1], [], []>} : vector<2x64xf32>, vector<64x8xf32>, vector<2x8xf32> -> vector<2x8xf32>
    %633 = vector.broadcast %312 : vector<1x8xf32> to vector<2x8xf32>
    %634 = arith.addf %632, %633 : vector<2x8xf32>
    %635 = vector.extract_strided_slice %634 {offsets = [0, 0], sizes = [2, 4], strides = [1, 1]} : vector<2x8xf32> to vector<2x4xf32>
    %636 = vector.extract_strided_slice %634 {offsets = [0, 4], sizes = [2, 4], strides = [1, 1]} : vector<2x8xf32> to vector<2x4xf32>
    %637 = arith.subf %635, %636 : vector<2x4xf32>
    %638 = tpu.reciprocal %631 {approx = true} : vector<2x4xf32> -> vector<2x4xf32>
    %639 = arith.mulf %637, %638 : vector<2x4xf32>
    %640 = arith.mulf %639, %639 : vector<2x4xf32>
    %cst_171 = arith.constant dense<0.000000e+00> : vector<2xf32>
    %641 = vector.multi_reduction <add>, %640, %cst_171 [1] : vector<2x4xf32> to vector<2xf32>
    %642 = vector.shape_cast %641 : vector<2xf32> to vector<2x1xf32>
    %cst_172 = arith.constant 5.000000e-01 : f32
    %643 = arith.mulf %cst_172, %589 : f32
    %644 = vector.broadcast %643 : f32 to vector<2x1xf32>
    %645 = arith.mulf %642, %644 : vector<2x1xf32>
    %646 = arith.addf %578, %645 : vector<2x1xf32>
    %647 = vector.broadcast %589 : f32 to vector<2x4xf32>
    %648 = arith.mulf %635, %647 : vector<2x4xf32>
    %649 = arith.addf %585, %648 : vector<2x4xf32>
    %c4_173 = arith.constant 4 : index
    %c0_174 = arith.constant 0 : index
    %c0_175 = arith.constant 0 : index
    %650 = vector.load %arg2[%c4_173, %c0_174, %c0_175] : memref<7x2x4xf32, #tpu.memory_space<vmem>>, vector<1x2x4xf32>
    %651 = vector.shape_cast %650 : vector<1x2x4xf32> to vector<2x4xf32>
    %652 = arith.mulf %631, %651 : vector<2x4xf32>
    %653 = arith.addf %649, %652 : vector<2x4xf32>
    %c5_176 = arith.constant 5 : index
    %c0_177 = arith.constant 0 : index
    %c0_178 = arith.constant 0 : index
    %654 = vector.load %arg39[%c5_176, %c0_177, %c0_178] : memref<8x2x4xf32, #tpu.memory_space<vmem>>, vector<1x2x4xf32>
    %655 = vector.shape_cast %654 : vector<1x2x4xf32> to vector<2x4xf32>
    %656 = vector.shape_cast %653 : vector<2x4xf32> to vector<1x2x4xf32>
    tpu.vector_store %arg39[%c5_176, %c0_177, %c0_178], %656 {strides = array<i32>} : memref<8x2x4xf32, #tpu.memory_space<vmem>>, vector<1x2x4xf32>,
    %c5_179 = arith.constant 5 : index
    %657 = memref.load %arg3[%c5_179] : memref<7xf32, #tpu.memory_space<smem>>
    %cst_180 = arith.constant dense<0.000000e+00> : vector<2x192xf32>
    %658 = tpu.matmul %653, %308, %cst_180 {dimension_numbers = #tpu.dot_dimension_numbers<[1], [0], [0], [1], [0, 0, 1, 1], [], []>} : vector<2x4xf32>, vector<4x192xf32>, vector<2x192xf32> -> vector<2x192xf32>
    %659 = vector.extract_strided_slice %307 {offsets = [6, 0, 0], sizes = [1, 2, 192], strides = [1, 1, 1]} : vector<8x2x192xf32> to vector<1x2x192xf32>
    %660 = vector.shape_cast %659 : vector<1x2x192xf32> to vector<2x192xf32>
    %661 = arith.addf %658, %660 : vector<2x192xf32>
    %cst_181 = arith.constant 0.000000e+00 : f32
    %662 = vector.broadcast %cst_181 : f32 to vector<2x192xf32>
    %663 = arith.maximumf %661, %662 : vector<2x192xf32>
    %664 = vector.broadcast %cst_181 : f32 to vector<2x192xf32>
    %665 = arith.subf %661, %664 : vector<2x192xf32>
    %666 = arith.cmpf one, %665, %665 : vector<2x192xf32>
    %667 = vector.broadcast %cst_181 : f32 to vector<2x192xf32>
    %668 = arith.addf %661, %667 : vector<2x192xf32>
    %669 = math.absf %665 : vector<2x192xf32>
    %cst_182 = arith.constant 0.000000e+00 : f32
    %670 = vector.broadcast %cst_182 : f32 to vector<2x192xf32>
    %671 = arith.subf %670, %669 : vector<2x192xf32>
    %672 = math.exp %671 : vector<2x192xf32>
    %673 = math.log1p %672 : vector<2x192xf32>
    %674 = arith.addf %663, %673 : vector<2x192xf32>
    %675 = arith.select %666, %668, %674 : vector<2x192xi1>, vector<2x192xf32>
    %cst_183 = arith.constant dense<0.000000e+00> : vector<2x68xf32>
    %676 = tpu.matmul %675, %309, %cst_183 {dimension_numbers = #tpu.dot_dimension_numbers<[1], [0], [0], [1], [0, 0, 1, 1], [], []>} : vector<2x192xf32>, vector<192x68xf32>, vector<2x68xf32> -> vector<2x68xf32>
    %677 = vector.broadcast %310 : vector<1x68xf32> to vector<2x68xf32>
    %678 = arith.addf %676, %677 : vector<2x68xf32>
    %679 = vector.extract_strided_slice %678 {offsets = [0, 0], sizes = [2, 64], strides = [1, 1]} : vector<2x68xf32> to vector<2x64xf32>
    %cst_184 = arith.constant 0.000000e+00 : f32
    %680 = vector.broadcast %cst_184 : f32 to vector<2x64xf32>
    %681 = arith.maximumf %679, %680 : vector<2x64xf32>
    %682 = vector.broadcast %cst_184 : f32 to vector<2x64xf32>
    %683 = arith.subf %679, %682 : vector<2x64xf32>
    %684 = arith.cmpf one, %683, %683 : vector<2x64xf32>
    %685 = vector.broadcast %cst_184 : f32 to vector<2x64xf32>
    %686 = arith.addf %679, %685 : vector<2x64xf32>
    %687 = math.absf %683 : vector<2x64xf32>
    %cst_185 = arith.constant 0.000000e+00 : f32
    %688 = vector.broadcast %cst_185 : f32 to vector<2x64xf32>
    %689 = arith.subf %688, %687 : vector<2x64xf32>
    %690 = math.exp %689 : vector<2x64xf32>
    %691 = math.log1p %690 : vector<2x64xf32>
    %692 = arith.addf %681, %691 : vector<2x64xf32>
    %693 = arith.select %684, %686, %692 : vector<2x64xi1>, vector<2x64xf32>
    %694 = vector.extract_strided_slice %678 {offsets = [0, 64], sizes = [2, 4], strides = [1, 1]} : vector<2x68xf32> to vector<2x4xf32>
    %695 = arith.negf %694 : vector<2x4xf32>
    %696 = math.exp %695 : vector<2x4xf32>
    %cst_186 = arith.constant 1.000000e+00 : f32
    %697 = vector.broadcast %cst_186 : f32 to vector<2x4xf32>
    %698 = arith.addf %697, %696 : vector<2x4xf32>
    %699 = arith.divf %697, %698 : vector<2x4xf32>
    %cst_187 = arith.constant dense<0.000000e+00> : vector<2x8xf32>
    %700 = tpu.matmul %693, %311, %cst_187 {dimension_numbers = #tpu.dot_dimension_numbers<[1], [0], [0], [1], [0, 0, 1, 1], [], []>} : vector<2x64xf32>, vector<64x8xf32>, vector<2x8xf32> -> vector<2x8xf32>
    %701 = vector.broadcast %312 : vector<1x8xf32> to vector<2x8xf32>
    %702 = arith.addf %700, %701 : vector<2x8xf32>
    %703 = vector.extract_strided_slice %702 {offsets = [0, 0], sizes = [2, 4], strides = [1, 1]} : vector<2x8xf32> to vector<2x4xf32>
    %704 = vector.extract_strided_slice %702 {offsets = [0, 4], sizes = [2, 4], strides = [1, 1]} : vector<2x8xf32> to vector<2x4xf32>
    %705 = arith.subf %703, %704 : vector<2x4xf32>
    %706 = tpu.reciprocal %699 {approx = true} : vector<2x4xf32> -> vector<2x4xf32>
    %707 = arith.mulf %705, %706 : vector<2x4xf32>
    %708 = arith.mulf %707, %707 : vector<2x4xf32>
    %cst_188 = arith.constant dense<0.000000e+00> : vector<2xf32>
    %709 = vector.multi_reduction <add>, %708, %cst_188 [1] : vector<2x4xf32> to vector<2xf32>
    %710 = vector.shape_cast %709 : vector<2xf32> to vector<2x1xf32>
    %cst_189 = arith.constant 5.000000e-01 : f32
    %711 = arith.mulf %cst_189, %657 : f32
    %712 = vector.broadcast %711 : f32 to vector<2x1xf32>
    %713 = arith.mulf %710, %712 : vector<2x1xf32>
    %714 = arith.addf %646, %713 : vector<2x1xf32>
    %715 = vector.broadcast %657 : f32 to vector<2x4xf32>
    %716 = arith.mulf %703, %715 : vector<2x4xf32>
    %717 = arith.addf %653, %716 : vector<2x4xf32>
    %c5_190 = arith.constant 5 : index
    %c0_191 = arith.constant 0 : index
    %c0_192 = arith.constant 0 : index
    %718 = vector.load %arg2[%c5_190, %c0_191, %c0_192] : memref<7x2x4xf32, #tpu.memory_space<vmem>>, vector<1x2x4xf32>
    %719 = vector.shape_cast %718 : vector<1x2x4xf32> to vector<2x4xf32>
    %720 = arith.mulf %699, %719 : vector<2x4xf32>
    %721 = arith.addf %717, %720 : vector<2x4xf32>
    %c6_193 = arith.constant 6 : index
    %c0_194 = arith.constant 0 : index
    %c0_195 = arith.constant 0 : index
    %722 = vector.load %arg39[%c6_193, %c0_194, %c0_195] : memref<8x2x4xf32, #tpu.memory_space<vmem>>, vector<1x2x4xf32>
    %723 = vector.shape_cast %722 : vector<1x2x4xf32> to vector<2x4xf32>
    %724 = vector.shape_cast %721 : vector<2x4xf32> to vector<1x2x4xf32>
    tpu.vector_store %arg39[%c6_193, %c0_194, %c0_195], %724 {strides = array<i32>} : memref<8x2x4xf32, #tpu.memory_space<vmem>>, vector<1x2x4xf32>,
    %c6_196 = arith.constant 6 : index
    %725 = memref.load %arg3[%c6_196] : memref<7xf32, #tpu.memory_space<smem>>
    %cst_197 = arith.constant dense<0.000000e+00> : vector<2x192xf32>
    %726 = tpu.matmul %721, %308, %cst_197 {dimension_numbers = #tpu.dot_dimension_numbers<[1], [0], [0], [1], [0, 0, 1, 1], [], []>} : vector<2x4xf32>, vector<4x192xf32>, vector<2x192xf32> -> vector<2x192xf32>
    %727 = vector.extract_strided_slice %307 {offsets = [7, 0, 0], sizes = [1, 2, 192], strides = [1, 1, 1]} : vector<8x2x192xf32> to vector<1x2x192xf32>
    %728 = vector.shape_cast %727 : vector<1x2x192xf32> to vector<2x192xf32>
    %729 = arith.addf %726, %728 : vector<2x192xf32>
    %cst_198 = arith.constant 0.000000e+00 : f32
    %730 = vector.broadcast %cst_198 : f32 to vector<2x192xf32>
    %731 = arith.maximumf %729, %730 : vector<2x192xf32>
    %732 = vector.broadcast %cst_198 : f32 to vector<2x192xf32>
    %733 = arith.subf %729, %732 : vector<2x192xf32>
    %734 = arith.cmpf one, %733, %733 : vector<2x192xf32>
    %735 = vector.broadcast %cst_198 : f32 to vector<2x192xf32>
    %736 = arith.addf %729, %735 : vector<2x192xf32>
    %737 = math.absf %733 : vector<2x192xf32>
    %cst_199 = arith.constant 0.000000e+00 : f32
    %738 = vector.broadcast %cst_199 : f32 to vector<2x192xf32>
    %739 = arith.subf %738, %737 : vector<2x192xf32>
    %740 = math.exp %739 : vector<2x192xf32>
    %741 = math.log1p %740 : vector<2x192xf32>
    %742 = arith.addf %731, %741 : vector<2x192xf32>
    %743 = arith.select %734, %736, %742 : vector<2x192xi1>, vector<2x192xf32>
    %cst_200 = arith.constant dense<0.000000e+00> : vector<2x68xf32>
    %744 = tpu.matmul %743, %309, %cst_200 {dimension_numbers = #tpu.dot_dimension_numbers<[1], [0], [0], [1], [0, 0, 1, 1], [], []>} : vector<2x192xf32>, vector<192x68xf32>, vector<2x68xf32> -> vector<2x68xf32>
    %745 = vector.broadcast %310 : vector<1x68xf32> to vector<2x68xf32>
    %746 = arith.addf %744, %745 : vector<2x68xf32>
    %747 = vector.extract_strided_slice %746 {offsets = [0, 0], sizes = [2, 64], strides = [1, 1]} : vector<2x68xf32> to vector<2x64xf32>
    %cst_201 = arith.constant 0.000000e+00 : f32
    %748 = vector.broadcast %cst_201 : f32 to vector<2x64xf32>
    %749 = arith.maximumf %747, %748 : vector<2x64xf32>
    %750 = vector.broadcast %cst_201 : f32 to vector<2x64xf32>
    %751 = arith.subf %747, %750 : vector<2x64xf32>
    %752 = arith.cmpf one, %751, %751 : vector<2x64xf32>
    %753 = vector.broadcast %cst_201 : f32 to vector<2x64xf32>
    %754 = arith.addf %747, %753 : vector<2x64xf32>
    %755 = math.absf %751 : vector<2x64xf32>
    %cst_202 = arith.constant 0.000000e+00 : f32
    %756 = vector.broadcast %cst_202 : f32 to vector<2x64xf32>
    %757 = arith.subf %756, %755 : vector<2x64xf32>
    %758 = math.exp %757 : vector<2x64xf32>
    %759 = math.log1p %758 : vector<2x64xf32>
    %760 = arith.addf %749, %759 : vector<2x64xf32>
    %761 = arith.select %752, %754, %760 : vector<2x64xi1>, vector<2x64xf32>
    %762 = vector.extract_strided_slice %746 {offsets = [0, 64], sizes = [2, 4], strides = [1, 1]} : vector<2x68xf32> to vector<2x4xf32>
    %763 = arith.negf %762 : vector<2x4xf32>
    %764 = math.exp %763 : vector<2x4xf32>
    %cst_203 = arith.constant 1.000000e+00 : f32
    %765 = vector.broadcast %cst_203 : f32 to vector<2x4xf32>
    %766 = arith.addf %765, %764 : vector<2x4xf32>
    %767 = arith.divf %765, %766 : vector<2x4xf32>
    %cst_204 = arith.constant dense<0.000000e+00> : vector<2x8xf32>
    %768 = tpu.matmul %761, %311, %cst_204 {dimension_numbers = #tpu.dot_dimension_numbers<[1], [0], [0], [1], [0, 0, 1, 1], [], []>} : vector<2x64xf32>, vector<64x8xf32>, vector<2x8xf32> -> vector<2x8xf32>
    %769 = vector.broadcast %312 : vector<1x8xf32> to vector<2x8xf32>
    %770 = arith.addf %768, %769 : vector<2x8xf32>
    %771 = vector.extract_strided_slice %770 {offsets = [0, 0], sizes = [2, 4], strides = [1, 1]} : vector<2x8xf32> to vector<2x4xf32>
    %772 = vector.extract_strided_slice %770 {offsets = [0, 4], sizes = [2, 4], strides = [1, 1]} : vector<2x8xf32> to vector<2x4xf32>
    %773 = arith.subf %771, %772 : vector<2x4xf32>
    %774 = tpu.reciprocal %767 {approx = true} : vector<2x4xf32> -> vector<2x4xf32>
    %775 = arith.mulf %773, %774 : vector<2x4xf32>
    %776 = arith.mulf %775, %775 : vector<2x4xf32>
    %cst_205 = arith.constant dense<0.000000e+00> : vector<2xf32>
    %777 = vector.multi_reduction <add>, %776, %cst_205 [1] : vector<2x4xf32> to vector<2xf32>
    %778 = vector.shape_cast %777 : vector<2xf32> to vector<2x1xf32>
    %cst_206 = arith.constant 5.000000e-01 : f32
    %779 = arith.mulf %cst_206, %725 : f32
    %780 = vector.broadcast %779 : f32 to vector<2x1xf32>
    %781 = arith.mulf %778, %780 : vector<2x1xf32>
    %782 = arith.addf %714, %781 : vector<2x1xf32>
    %783 = vector.broadcast %725 : f32 to vector<2x4xf32>
    %784 = arith.mulf %771, %783 : vector<2x4xf32>
    %785 = arith.addf %721, %784 : vector<2x4xf32>
    %c6_207 = arith.constant 6 : index
    %c0_208 = arith.constant 0 : index
    %c0_209 = arith.constant 0 : index
    %786 = vector.load %arg2[%c6_207, %c0_208, %c0_209] : memref<7x2x4xf32, #tpu.memory_space<vmem>>, vector<1x2x4xf32>
    %787 = vector.shape_cast %786 : vector<1x2x4xf32> to vector<2x4xf32>
    %788 = arith.mulf %767, %787 : vector<2x4xf32>
    %789 = arith.addf %785, %788 : vector<2x4xf32>
    %c7_210 = arith.constant 7 : index
    %c0_211 = arith.constant 0 : index
    %c0_212 = arith.constant 0 : index
    %790 = vector.load %arg39[%c7_210, %c0_211, %c0_212] : memref<8x2x4xf32, #tpu.memory_space<vmem>>, vector<1x2x4xf32>
    %791 = vector.shape_cast %790 : vector<1x2x4xf32> to vector<2x4xf32>
    %792 = vector.shape_cast %789 : vector<2x4xf32> to vector<1x2x4xf32>
    tpu.vector_store %arg39[%c7_210, %c0_211, %c0_212], %792 {strides = array<i32>} : memref<8x2x4xf32, #tpu.memory_space<vmem>>, vector<1x2x4xf32>,
    %c0_213 = arith.constant 0 : index
    %c0_214 = arith.constant 0 : index
    %c0_215 = arith.constant 0 : index
    %793 = vector.load %arg39[%c0_213, %c0_214, %c0_215] : memref<8x2x4xf32, #tpu.memory_space<vmem>>, vector<8x2x4xf32>
    %c0_216 = arith.constant 0 : index
    %c0_217 = arith.constant 0 : index
    %794 = vector.load %arg19[%c0_216, %c0_217] : memref<4x3xf32, #tpu.memory_space<vmem>>, vector<4x3xf32>
    %cst_218 = arith.constant dense<0.000000e+00> : vector<8x2x3xf32>
    %795 = tpu.matmul %793, %794, %cst_218 {dimension_numbers = #tpu.dot_dimension_numbers<[2], [0], [0, 1], [1], [0, 0, 0, 1, 1, 1], [], []>} : vector<8x2x4xf32>, vector<4x3xf32>, vector<8x2x3xf32> -> vector<8x2x3xf32>
    %c0_219 = arith.constant 0 : index
    %c0_220 = arith.constant 0 : index
    %796 = vector.load %arg20[%c0_219, %c0_220] : memref<1x3xf32, #tpu.memory_space<vmem>>, vector<1x3xf32>
    %797 = vector.shape_cast %796 : vector<1x3xf32> to vector<1x1x3xf32>
    %798 = vector.broadcast %797 : vector<1x1x3xf32> to vector<8x2x3xf32>
    %799 = arith.addf %795, %798 : vector<8x2x3xf32>
    %c0_221 = arith.constant 0 : index
    %c0_222 = arith.constant 0 : index
    %c0_223 = arith.constant 0 : index
    %800 = vector.load %arg35[%c0_221, %c0_222, %c0_223] : memref<8x2x3xf32, #tpu.memory_space<vmem>>, vector<8x2x3xf32>
    tpu.vector_store %arg35[%c0_221, %c0_222, %c0_223], %799 {strides = array<i32>} : memref<8x2x3xf32, #tpu.memory_space<vmem>>, vector<8x2x3xf32>,
    %801 = arith.subf %0, %799 : vector<8x2x3xf32>
    %cst_224 = arith.constant 1.000000e+01 : f32
    %802 = vector.broadcast %cst_224 : f32 to vector<8x2x3xf32>
    %803 = arith.mulf %801, %802 : vector<8x2x3xf32>
    %cst_225 = arith.constant -5.000000e-01 : f32
    %804 = vector.broadcast %cst_225 : f32 to vector<8x2x3xf32>
    %805 = arith.mulf %804, %803 : vector<8x2x3xf32>
    %806 = arith.mulf %805, %803 : vector<8x2x3xf32>
    %cst_226 = arith.constant -1.38364661 : f32
    %807 = vector.broadcast %cst_226 : f32 to vector<8x2x3xf32>
    %808 = arith.subf %806, %807 : vector<8x2x3xf32>
    %809 = vector.shape_cast %808 : vector<8x2x3xf32> to vector<1x8x2x3xf32>
    %cst_227 = arith.constant dense<0.000000e+00> : vector<1xf32>
    %810 = vector.multi_reduction <add>, %809, %cst_227 [1, 2, 3] : vector<1x8x2x3xf32> to vector<1xf32>
    %811 = vector.shape_cast %810 : vector<1xf32> to vector<1x1x1x1xf32>
    %812 = vector.extract %811[0, 0, 0, 0] : f32 from vector<1x1x1x1xf32>
    %cst_228 = arith.constant 0.020833334 : f32
    %813 = arith.mulf %812, %cst_228 : f32
    %c0_229 = arith.constant 0 : index
    %814 = memref.load %arg37[%c0_229] : memref<2xf32, #tpu.memory_space<smem>>
    memref.store %813, %arg37[%c0_229] : memref<2xf32, #tpu.memory_space<smem>>
    %c0_230 = arith.constant 0 : index
    %c0_231 = arith.constant 0 : index
    %815 = vector.load %arg33[%c0_230, %c0_231] : memref<1x4xf32, #tpu.memory_space<vmem>>, vector<1x4xf32>
    %c0_232 = arith.constant 0 : index
    %c0_233 = arith.constant 0 : index
    %816 = vector.load %arg34[%c0_232, %c0_233] : memref<1x4xf32, #tpu.memory_space<vmem>>, vector<1x4xf32>
    %817 = vector.broadcast %816 : vector<1x4xf32> to vector<2x4xf32>
    %818 = arith.subf %817, %297 : vector<2x4xf32>
    %cst_234 = arith.constant 2.000000e+00 : f32
    %819 = vector.broadcast %cst_234 : f32 to vector<2x4xf32>
    %820 = arith.mulf %819, %297 : vector<2x4xf32>
    %821 = math.exp %820 : vector<2x4xf32>
    %822 = vector.broadcast %815 : vector<1x4xf32> to vector<2x4xf32>
    %823 = arith.subf %296, %822 : vector<2x4xf32>
    %824 = arith.mulf %823, %823 : vector<2x4xf32>
    %825 = arith.addf %821, %824 : vector<2x4xf32>
    %cst_235 = arith.constant 2.000000e+00 : f32
    %826 = vector.broadcast %cst_235 : f32 to vector<1x4xf32>
    %827 = arith.mulf %826, %816 : vector<1x4xf32>
    %828 = math.exp %827 : vector<1x4xf32>
    %cst_236 = arith.constant 2.000000e+00 : f32
    %829 = vector.broadcast %cst_236 : f32 to vector<1x4xf32>
    %830 = arith.mulf %829, %828 : vector<1x4xf32>
    %831 = vector.broadcast %830 : vector<1x4xf32> to vector<2x4xf32>
    %832 = arith.divf %825, %831 : vector<2x4xf32>
    %833 = arith.addf %818, %832 : vector<2x4xf32>
    %cst_237 = arith.constant 5.000000e-01 : f32
    %834 = vector.broadcast %cst_237 : f32 to vector<2x4xf32>
    %835 = arith.subf %833, %834 : vector<2x4xf32>
    %836 = vector.shape_cast %835 : vector<2x4xf32> to vector<1x2x4xf32>
    %cst_238 = arith.constant dense<0.000000e+00> : vector<1xf32>
    %837 = vector.multi_reduction <add>, %836, %cst_238 [1, 2] : vector<1x2x4xf32> to vector<1xf32>
    %838 = vector.shape_cast %837 : vector<1xf32> to vector<1x1x1xf32>
    %839 = vector.extract %838[0, 0, 0] : f32 from vector<1x1x1xf32>
    %cst_239 = arith.constant 1.250000e-01 : f32
    %840 = arith.mulf %839, %cst_239 : f32
    %841 = vector.shape_cast %782 : vector<2x1xf32> to vector<1x2x1xf32>
    %cst_240 = arith.constant dense<0.000000e+00> : vector<1xf32>
    %842 = vector.multi_reduction <add>, %841, %cst_240 [1, 2] : vector<1x2x1xf32> to vector<1xf32>
    %843 = vector.shape_cast %842 : vector<1xf32> to vector<1x1x1xf32>
    %844 = vector.extract %843[0, 0, 0] : f32 from vector<1x1x1xf32>
    %cst_241 = arith.constant 0.0714285746 : f32
    %845 = arith.mulf %844, %cst_241 : f32
    %846 = arith.addf %840, %845 : f32
    %c1_242 = arith.constant 1 : index
    %847 = memref.load %arg37[%c1_242] : memref<2xf32, #tpu.memory_space<smem>>
    memref.store %846, %arg37[%c1_242] : memref<2xf32, #tpu.memory_space<smem>>
    %c0_243 = arith.constant 0 : index
    %c0_244 = arith.constant 0 : index
    %848 = vector.load %arg21[%c0_243, %c0_244] : memref<4x32xf32, #tpu.memory_space<vmem>>, vector<4x32xf32>
    %cst_245 = arith.constant dense<0.000000e+00> : vector<2x32xf32>
    %849 = tpu.matmul %301, %848, %cst_245 {dimension_numbers = #tpu.dot_dimension_numbers<[1], [0], [0], [1], [0, 0, 1, 1], [], []>} : vector<2x4xf32>, vector<4x32xf32>, vector<2x32xf32> -> vector<2x32xf32>
    %c0_246 = arith.constant 0 : index
    %c0_247 = arith.constant 0 : index
    %850 = vector.load %arg22[%c0_246, %c0_247] : memref<1x32xf32, #tpu.memory_space<vmem>>, vector<1x32xf32>
    %851 = vector.broadcast %850 : vector<1x32xf32> to vector<2x32xf32>
    %852 = arith.addf %849, %851 : vector<2x32xf32>
    %cst_248 = arith.constant 0.000000e+00 : f32
    %853 = vector.broadcast %cst_248 : f32 to vector<2x32xf32>
    %854 = arith.cmpf ogt, %852, %853 : vector<2x32xf32>
    %cst_249 = arith.constant 0.00999999977 : f32
    %855 = vector.broadcast %cst_249 : f32 to vector<2x32xf32>
    %856 = arith.mulf %855, %852 : vector<2x32xf32>
    %857 = arith.select %854, %852, %856 : vector<2x32xi1>, vector<2x32xf32>
    %c0_250 = arith.constant 0 : index
    %c0_251 = arith.constant 0 : index
    %858 = vector.load %arg23[%c0_250, %c0_251] : memref<32x32xf32, #tpu.memory_space<vmem>>, vector<32x32xf32>
    %cst_252 = arith.constant dense<0.000000e+00> : vector<2x32xf32>
    %859 = tpu.matmul %857, %858, %cst_252 {dimension_numbers = #tpu.dot_dimension_numbers<[1], [0], [0], [1], [0, 0, 1, 1], [], []>} : vector<2x32xf32>, vector<32x32xf32>, vector<2x32xf32> -> vector<2x32xf32>
    %c0_253 = arith.constant 0 : index
    %c0_254 = arith.constant 0 : index
    %860 = vector.load %arg24[%c0_253, %c0_254] : memref<1x32xf32, #tpu.memory_space<vmem>>, vector<1x32xf32>
    %861 = vector.broadcast %860 : vector<1x32xf32> to vector<2x32xf32>
    %862 = arith.addf %859, %861 : vector<2x32xf32>
    %cst_255 = arith.constant 0.000000e+00 : f32
    %863 = vector.broadcast %cst_255 : f32 to vector<2x32xf32>
    %864 = arith.cmpf ogt, %862, %863 : vector<2x32xf32>
    %cst_256 = arith.constant 0.00999999977 : f32
    %865 = vector.broadcast %cst_256 : f32 to vector<2x32xf32>
    %866 = arith.mulf %865, %862 : vector<2x32xf32>
    %867 = arith.select %864, %862, %866 : vector<2x32xi1>, vector<2x32xf32>
    %c0_257 = arith.constant 0 : index
    %c0_258 = arith.constant 0 : index
    %868 = vector.load %arg25[%c0_257, %c0_258] : memref<32x4xf32, #tpu.memory_space<vmem>>, vector<32x4xf32>
    %cst_259 = arith.constant dense<0.000000e+00> : vector<2x4xf32>
    %869 = tpu.matmul %867, %868, %cst_259 {dimension_numbers = #tpu.dot_dimension_numbers<[1], [0], [0], [1], [0, 0, 1, 1], [], []>} : vector<2x32xf32>, vector<32x4xf32>, vector<2x4xf32> -> vector<2x4xf32>
    %c0_260 = arith.constant 0 : index
    %c0_261 = arith.constant 0 : index
    %870 = vector.load %arg26[%c0_260, %c0_261] : memref<1x4xf32, #tpu.memory_space<vmem>>, vector<1x4xf32>
    %871 = vector.broadcast %870 : vector<1x4xf32> to vector<2x4xf32>
    %872 = arith.addf %869, %871 : vector<2x4xf32>
    %cst_262 = arith.constant dense<0.000000e+00> : vector<2xf32>
    %873 = vector.multi_reduction <add>, %872, %cst_262 [1] : vector<2x4xf32> to vector<2xf32>
    %874 = vector.shape_cast %873 : vector<2xf32> to vector<2x1xf32>
    %cst_263 = arith.constant 4.000000e+00 : f32
    %875 = vector.broadcast %cst_263 : f32 to vector<2x1xf32>
    %876 = arith.divf %874, %875 : vector<2x1xf32>
    %877 = vector.broadcast %876 : vector<2x1xf32> to vector<2x4xf32>
    %878 = arith.subf %872, %877 : vector<2x4xf32>
    %879 = arith.mulf %878, %878 : vector<2x4xf32>
    %cst_264 = arith.constant dense<0.000000e+00> : vector<2xf32>
    %880 = vector.multi_reduction <add>, %879, %cst_264 [1] : vector<2x4xf32> to vector<2xf32>
    %881 = vector.shape_cast %880 : vector<2xf32> to vector<2x1xf32>
    %cst_265 = arith.constant 4.000000e+00 : f32
    %882 = vector.broadcast %cst_265 : f32 to vector<2x1xf32>
    %883 = arith.divf %881, %882 : vector<2x1xf32>
    %884 = vector.broadcast %876 : vector<2x1xf32> to vector<2x4xf32>
    %885 = arith.subf %872, %884 : vector<2x4xf32>
    %cst_266 = arith.constant 9.99999974E-6 : f32
    %886 = vector.broadcast %cst_266 : f32 to vector<2x1xf32>
    %887 = arith.addf %883, %886 : vector<2x1xf32>
    %888 = math.rsqrt %887 : vector<2x1xf32>
    %889 = vector.broadcast %888 : vector<2x1xf32> to vector<2x4xf32>
    %890 = arith.mulf %885, %889 : vector<2x4xf32>
    %c0_267 = arith.constant 0 : index
    %c0_268 = arith.constant 0 : index
    %891 = vector.load %arg27[%c0_267, %c0_268] : memref<1x4xf32, #tpu.memory_space<vmem>>, vector<1x4xf32>
    %892 = vector.broadcast %891 : vector<1x4xf32> to vector<2x4xf32>
    %893 = arith.mulf %890, %892 : vector<2x4xf32>
    %c0_269 = arith.constant 0 : index
    %c0_270 = arith.constant 0 : index
    %894 = vector.load %arg28[%c0_269, %c0_270] : memref<1x4xf32, #tpu.memory_space<vmem>>, vector<1x4xf32>
    %895 = vector.broadcast %894 : vector<1x4xf32> to vector<2x4xf32>
    %896 = arith.addf %893, %895 : vector<2x4xf32>
    %897 = arith.addf %896, %301 : vector<2x4xf32>
    %c0_271 = arith.constant 0 : index
    %c0_272 = arith.constant 0 : index
    %898 = vector.load %arg29[%c0_271, %c0_272] : memref<4x32xf32, #tpu.memory_space<vmem>>, vector<4x32xf32>
    %cst_273 = arith.constant dense<0.000000e+00> : vector<2x32xf32>
    %899 = tpu.matmul %897, %898, %cst_273 {dimension_numbers = #tpu.dot_dimension_numbers<[1], [0], [0], [1], [0, 0, 1, 1], [], []>} : vector<2x4xf32>, vector<4x32xf32>, vector<2x32xf32> -> vector<2x32xf32>
    %c0_274 = arith.constant 0 : index
    %c0_275 = arith.constant 0 : index
    %900 = vector.load %arg30[%c0_274, %c0_275] : memref<1x32xf32, #tpu.memory_space<vmem>>, vector<1x32xf32>
    %901 = vector.broadcast %900 : vector<1x32xf32> to vector<2x32xf32>
    %902 = arith.addf %899, %901 : vector<2x32xf32>
    %cst_276 = arith.constant 0.000000e+00 : f32
    %903 = vector.broadcast %cst_276 : f32 to vector<2x32xf32>
    %904 = arith.cmpf ogt, %902, %903 : vector<2x32xf32>
    %cst_277 = arith.constant 0.00999999977 : f32
    %905 = vector.broadcast %cst_277 : f32 to vector<2x32xf32>
    %906 = arith.mulf %905, %902 : vector<2x32xf32>
    %907 = arith.select %904, %902, %906 : vector<2x32xi1>, vector<2x32xf32>
    %c0_278 = arith.constant 0 : index
    %c0_279 = arith.constant 0 : index
    %908 = vector.load %arg31[%c0_278, %c0_279] : memref<32x5xf32, #tpu.memory_space<vmem>>, vector<32x5xf32>
    %cst_280 = arith.constant dense<0.000000e+00> : vector<2x5xf32>
    %909 = tpu.matmul %907, %908, %cst_280 {dimension_numbers = #tpu.dot_dimension_numbers<[1], [0], [0], [1], [0, 0, 1, 1], [], []>} : vector<2x32xf32>, vector<32x5xf32>, vector<2x5xf32> -> vector<2x5xf32>
    %c0_281 = arith.constant 0 : index
    %c0_282 = arith.constant 0 : index
    %910 = vector.load %arg32[%c0_281, %c0_282] : memref<1x5xf32, #tpu.memory_space<vmem>>, vector<1x5xf32>
    %911 = vector.broadcast %910 : vector<1x5xf32> to vector<2x5xf32>
    %912 = arith.addf %909, %911 : vector<2x5xf32>
    %c0_283 = arith.constant 0 : index
    %c0_284 = arith.constant 0 : index
    %913 = vector.load %arg36[%c0_283, %c0_284] : memref<2x5xf32, #tpu.memory_space<vmem>>, vector<2x5xf32>
    tpu.vector_store %arg36[%c0_283, %c0_284], %912 {strides = array<i32>} : memref<2x5xf32, #tpu.memory_space<vmem>>, vector<2x5xf32>,
    return
  }
}

</mosaic_0001>

<bundles_post_ra>
// kernel: latent_sde_forward.3
= control target key start
LH: loop header
LB: loop body
LE: loop exit
PB: predicated region body
PF: predicated region fallthrough
CT: control target
= control target key end

     0   :  { %s3729_s6 = smov 1   ;;  %s3730_s10 = smov 2   ;;  %s5029_s0 = inlined_call_operand.smem [shape: u32[38], index: -1, kind: input, shape index: {}] }
   0x1   :  { %s3783_s5 = sld [smem:[%s5029_s0]]   ;;  %s3731_s14 = smov 3  }
   0x2   :  { %s3788_s9 = sld [smem:[%s5029_s0 + %s3729_s6]]   ;;  %s3732_s18 = smov 4  }
   0x3   :  { %s3793_s13 = sld [smem:[%s5029_s0 + %s3730_s10]]   ;;  %s3733_s22 = smov 5  }
   0x4   :  { %s3798_s17 = sld [smem:[%s5029_s0 + %s3731_s14]]   ;;  %s3734_s26 = smov 6  }
   0x5   :  { %s3803_s21 = sld [smem:[%s5029_s0 + %s3732_s18]]   ;;  %s3735_s30 = smov 7  }
   0x6   :  { %s3808_s25 = sld [smem:[%s5029_s0 + %s3733_s22]]   ;;  %s3736_s4 = smov 8  }
   0x7   :  { %s3813_s29 = sld [smem:[%s5029_s0 + %s3734_s26]]   ;;  %s3737_s10 = smov 9  }
   0x8   :  { %s3818_s3 = sld [smem:[%s5029_s0 + %s3735_s30]]   ;;  %s3738_s15 = smov 10  }
   0x9   :  { %5048 = sst [smem:[#allocation13_spill]] %s3793_s13  ;;  %s3739_s20 = smov 11  }
   0xa   :  { %s3823_s8 = sld [smem:[%s5029_s0 + %s3736_s4]]   ;;  %s3740_s26 = smov 12  }
   0xb   :  { %s3828_s14 = sld [smem:[%s5029_s0 + %s3737_s10]]   ;;  %s3741_s1 = smov 13  }
   0xc   :  { %s3833_s19 = sld [smem:[%s5029_s0 + %s3738_s15]]   ;;  %s3742_s7 = smov 14  }
   0xd   :  { %s3838_s24 = sld [smem:[%s5029_s0 + %s3739_s20]]   ;;  %s3743_s15 = smov 15  }
   0xe   :  { %s3843_s30 = sld [smem:[%s5029_s0 + %s3740_s26]]   ;;  %s3744_s22 = smov 16  }
   0xf   :  { %s3848_s6 = sld [smem:[%s5029_s0 + %s3741_s1]]   ;;  %s3745_s28 = smov 17  }
  0x10   :  { %s3853_s12 = sld [smem:[%s5029_s0 + %s3742_s7]]   ;;  %s3746_s7 = smov 18  }
  0x11   :  { %s3858_s20 = sld [smem:[%s5029_s0 + %s3743_s15]]   ;;  %s3747_s15 = smov 19  }
  0x12   :  { %s3863_s27 = sld [smem:[%s5029_s0 + %s3744_s22]]   ;;  %s3748_s22 = smov 20  }
  0x13   :  { %s3868_s4 = sld [smem:[%s5029_s0 + %s3745_s28]]   ;;  %s3749_s28 = smov 21  }
  0x14   :  { %s3873_s13 = sld [smem:[%s5029_s0 + %s3746_s7]]   ;;  %s3750_s7 = smov 22  }
  0x17   :  { %5049 = sst [smem:[#allocation14_spill]] %s3858_s20 }
  0x18   :  { %5050 = sst [smem:[#allocation15_spill]] %s3863_s27 }
  0x19   :  { %5051 = sst [smem:[#allocation16_spill]] %s3868_s4 }
  0x1a   :  { %5052 = sst [smem:[#allocation17_spill]] %s3873_s13 }
  0x1b   :  { %s3878_s20 = sld [smem:[%s5029_s0 + %s3747_s15]]   ;;  %s3751_s15 = smov 23  }
  0x1c   :  { %s3883_s27 = sld [smem:[%s5029_s0 + %s3748_s22]]   ;;  %s3752_s22 = smov 24  }
  0x1d   :  { %s3888_s4 = sld [smem:[%s5029_s0 + %s3749_s28]]   ;;  %s3753_s28 = smov 25  }
  0x1e   :  { %s3893_s13 = sld [smem:[%s5029_s0 + %s3750_s7]]   ;;  %s3754_s7 = smov 26  }
  0x21   :  { %5053 = sst [smem:[#allocation18_spill]] %s3878_s20 }
  0x22   :  { %5054 = sst [smem:[#allocation19_spill]] %s3883_s27 }
  0x23   :  { %5055 = sst [smem:[#allocation20_spill]] %s3888_s4 }
  0x24   :  { %5056 = sst [smem:[#allocation21_spill]] %s3893_s13 }
  0x25   :  { %s3898_s20 = sld [smem:[%s5029_s0 + %s3751_s15]]   ;;  %s3755_s15 = smov 27  }
  0x26   :  { %s3903_s27 = sld [smem:[%s5029_s0 + %s3752_s22]]   ;;  %s3756_s22 = smov 28  }
  0x27   :  { %s3908_s4 = sld [smem:[%s5029_s0 + %s3753_s28]]   ;;  %s3757_s28 = smov 29  }
  0x28   :  { %s3913_s13 = sld [smem:[%s5029_s0 + %s3754_s7]]   ;;  %s3758_s7 = smov 30  }
  0x2b   :  { %5057 = sst [smem:[#allocation22_spill]] %s3898_s20 }
  0x2c   :  { %5058 = sst [smem:[#allocation23_spill]] %s3903_s27 }
  0x2d   :  { %5059 = sst [smem:[#allocation24_spill]] %s3908_s4 }
  0x2e   :  { %5060 = sst [smem:[#allocation25_spill]] %s3913_s13 }
  0x2f   :  { %s3918_s20 = sld [smem:[%s5029_s0 + %s3755_s15]]   ;;  %s3759_s15 = smov 31  }
  0x30   :  { %s3923_s27 = sld [smem:[%s5029_s0 + %s3756_s22]]   ;;  %s3760_s22 = smov 32  }
  0x31   :  { %s3928_s4 = sld [smem:[%s5029_s0 + %s3757_s28]]   ;;  %s3761_s28 = smov 33  }
  0x32   :  { %s3933_s13 = sld [smem:[%s5029_s0 + %s3758_s7]]   ;;  %s3762_s7 = smov 34  }
  0x35   :  { %5061 = sst [smem:[#allocation26_spill]] %s3918_s20 }
  0x36   :  { %5062 = sst [smem:[#allocation27_spill]] %s3923_s27 }
  0x37   :  { %5063 = sst [smem:[#allocation28_spill]] %s3928_s4 }
  0x38   :  { %5064 = sst [smem:[#allocation29_spill]] %s3933_s13 }
  0x39   :  { %s3938_s20 = sld [smem:[%s5029_s0 + %s3759_s15]]   ;;  %s3763_s15 = smov 35  }
  0x3a   :  { %s3943_s27 = sld [smem:[%s5029_s0 + %s3760_s22]]   ;;  %s3764_s22 = smov 36  }
  0x3b   :  { %s3948_s4 = sld [smem:[%s5029_s0 + %s3761_s28]]   ;;  %s3765_s28 = smov 37  }
  0x3c   :  { %s3953_s13 = sld [smem:[%s5029_s0 + %s3762_s7]]  }
  0x3f   :  { %5065 = sst [smem:[#allocation30_spill]] %s3938_s20 }
  0x40   :  { %5066 = sst [smem:[#allocation31_spill]] %s3943_s27 }
  0x41   :  { %5067 = sst [smem:[#allocation32_spill]] %s3948_s4 }
  0x42   :  { %s3958_s20 = sld [smem:[%s5029_s0 + %s3763_s15]]  }
  0x43   :  { %s3963_s27 = sld [smem:[%s5029_s0 + %s3764_s22]]  }
  0x44   :  { %s3968_s4 = sld [smem:[%s5029_s0 + %s3765_s28]]  }
  0x45   :  { %81 = vsyncpa [#allocation6], 0 }
  0x46   :  { %82 = vsyncpa [#allocation5], 0 }
  0x47   :  { %83 = vsyncpa [#allocation7], 0  ;;  %s95_s7 = sshll.u32 %s3798_s17, 4  ;;  %s3679_s15 = scalar_lea.vmem %s3798_s17, 1  ;;  %s96_s7 = int_to_ptr.vmem [resolvable:$true] %s95_s7 }
  0x48   :  { %s3675_s10 = sshra.s32 %s96_s7, 4  ;;  %s3676_s10 = int_to_ptr.vmem [resolvable:$true] %s3675_s10 }
  0x49   :  { %s3677_s11 = scalar_lea.vmem %s3676_s10, 1  ;;  %p3680_p1 = scmp.lt.s32.totalorder %s3676_s10, %s3798_s17 }
  0x4a   :  { %p3678_p0 = scmp.ne.s32.totalorder %s3676_s10, %s3677_s11  ;;  %p3681_p2 = scmp.lt.s32.totalorder %s3679_s15, %s3677_s11 }
  0x4c   :  { %p3682_p3 = por %p3681_p2, %p3680_p1 }
  0x4e   :  { %p3683_p4 = pnand %p3682_p3, %p3678_p0 }
  0x50   :  { %3686 = shalt.err (!%p3683_p4)
}
  0x51   :  { %s3766_s0 = smov [#allocation4]  }
  0x52   :  { %98 = dma.vmem_to_smem %s96_s7, 16, %s3766_s0, [#allocation6]  }
  0x53   :  { %3723 = dma.done.wait [#allocation6], 16  }
  0x54   :  { %3724 = vsyncadd [#allocation6], 4294967280 }
  0x55   :  { %165 = sfence }
  0x56   :  { %v271_v0 = vld [vmem:[%s3808_s25 + $0x18] sm:$0xff]  ;;  %v270_v1 = vld [vmem:[%s3808_s25 + $0x10] sm:$0xff]  ;;  %vm227_vm0 = vcmask 1042432   ;;  %v269_v2 = vld [vmem:[%s3808_s25 + $0x8] sm:$0xff]  ;;  %vm222_vm1 = vcmask 23552   ;;  %v3767_v13 = vmov 0.0  }
  0x57   :  { %292 = vmatpush.msra.mxu1 %v271_v0  ;;  %v174_v3 = vld [vmem:[%s3803_s21] sm:$0x7]  ;;  %366 = vmatpush.msra.mxu2 %v271_v0  ;;  %v3985_v7 = vld [vmem:[%s3783_s5 + $0x4] sm:$0x3]  ;;  %v3988_v8 = vld [vmem:[%s3783_s5 + $0x6] sm:$0x3] }
  0x58   :  { %v3978_v4 = vld [vmem:[%s3783_s5] sm:$0x3]  ;;  %3283 = vmatpush.msk.msra.mxu0 %vm227_vm0, %v174_v3  ;;  %v3982_v6 = vld [vmem:[%s3783_s5 + $0x2] sm:$0x3]  ;;  %5070 = vst [vmem:[#allocation35_spill] sm:$0xff] %v3985_v7  ;;  %439 = vmatpush.msra.mxu3 %v271_v0  ;;  %s3769_s17 = smov 96  }
  0x59   :  { %5068 = vst [vmem:[#allocation33_spill] sm:$0xff] %v3978_v4  ;;  %v268_v5 = vld [vmem:[%s3808_s25] sm:$0xff]  ;;  %293 = vmatpush.msra.mxu1 %v270_v1  ;;  %v3992_v9 = vld [vmem:[%s3783_s5 + $0x8] sm:$0x3]  ;;  %367 = vmatpush.msra.mxu2 %v270_v1  ;;  %v3996_v10 = vld [vmem:[%s3783_s5 + $0xa] sm:$0x3] }
  0x5a   :  { %5069 = vst [vmem:[#allocation34_spill] sm:$0xff] %v3982_v6  ;;  %v3999_v11 = vld [vmem:[%s3783_s5 + $0xc] sm:$0x3]  ;;  %440 = vmatpush.msra.mxu3 %v270_v1  ;;  %731 = vmatpush.msrb.mxu0 %v271_v0  ;;  %v4003_v12 = vld [vmem:[%s3783_s5 + $0xe] sm:$0x3]  ;;  %s3768_s5 = smov 64  }
  0x5b   :  { %5071 = vst [vmem:[#allocation36_spill] sm:$0xff] %v3988_v8  ;;  %294 = vmatpush.msra.mxu1 %v269_v2  ;;  %368 = vmatpush.msra.mxu2 %v269_v2  ;;  %v3441_v16 = vld [vmem:[%s3813_s29] ss:$0 sm:$0xff]  ;;  %vm276_vm6 = vcmask 261120   ;;  %s3770_s21 = smov 4   ;;  %s5086_s25 = sld [smem:[#allocation14_spill]] }
  0x5c   :  { %186 = vst [vmem:[#allocation1] ss:$4 sm:$0xff] %v3978_v4  ;;  %441 = vmatpush.msra.mxu3 %v269_v2  ;;  %732 = vmatpush.msrb.mxu0 %v270_v1  ;;  %v4014_v17 = vld [vmem:[%s3818_s3] ss:$0 sm:$0xff]  ;;  %s5091_s29 = sld [smem:[#allocation13_spill]] }
  0x5d   :  { %5072 = vst [vmem:[#allocation37_spill] sm:$0xff] %v3992_v9  ;;  %295 = vmatpush.msra.mxu1 %v268_v5  ;;  %369 = vmatpush.msra.mxu2 %v268_v5  ;;  %s5092_s3 = sld [smem:[#allocation16_spill]] }
  0x5e   :  { %188 = vst [vmem:[#allocation1 + $0x1] ss:$4 sm:$0xff] %v3982_v6  ;;  %296 = vmatmul.f32.vlgmr.msra.gmra.mxu1 %v3767_v13  ;;  %442 = vmatpush.msra.mxu3 %v268_v5  ;;  %s5104_s16 = sld [smem:[#allocation18_spill]] }
  0x5f   :  { %5073 = vst [vmem:[#allocation38_spill] sm:$0xff] %v3996_v10  ;;  %512 = vmatpush.msrb.mxu1 %v271_v0  ;;  %585 = vmatpush.msrb.mxu2 %v271_v0  ;;  %s5107_s18 = sld [smem:[#allocation19_spill]] }
  0x60   :  { %5074 = vst [vmem:[#allocation39_spill] sm:$0xff] %v3999_v11  ;;  %658 = vmatpush.msrb.mxu3 %v271_v0  ;;  %733 = vmatpush.msrb.mxu0 %v269_v2  ;;  %s4849_s22 = sld [smem:[#allocation4 + $0x5]] }
  0x61   :  { %190 = vst [vmem:[#allocation1 + $0x2] ss:$4 sm:$0xff] %v3985_v7  ;;  %513 = vmatpush.msrb.mxu1 %v270_v1  ;;  %586 = vmatpush.msrb.mxu2 %v270_v1  ;;  %s5112_s23 = sld [smem:[#allocation20_spill]] }
  0x62   :  { %5075 = vst [vmem:[#allocation40_spill] sm:$0xff] %v4003_v12  ;;  %659 = vmatpush.msrb.mxu3 %v270_v1  ;;  %734 = vmatpush.msrb.mxu0 %v268_v5  ;;  %s5115_s26 = sld [smem:[#allocation22_spill]] }
  0x63   :  { %192 = vst [vmem:[#allocation1 + $0x3] ss:$4 sm:$0xff] %v3988_v8  ;;  %514 = vmatpush.msrb.mxu1 %v269_v2  ;;  %587 = vmatpush.msrb.mxu2 %v269_v2  ;;  %s5116_s28 = sld [smem:[#allocation21_spill]] }
  0x64   :  { %194 = vst [vmem:[#allocation1 + $0x20] ss:$4 sm:$0xff] %v3992_v9  ;;  %660 = vmatpush.msrb.mxu3 %v269_v2  ;;  %s5118_s1 = sld [smem:[#allocation24_spill]] }
  0x65   :  { %196 = vst [vmem:[#allocation1 + $0x21] ss:$4 sm:$0xff] %v3996_v10  ;;  %515 = vmatpush.msrb.mxu1 %v268_v5  ;;  %588 = vmatpush.msrb.mxu2 %v268_v5  ;;  %s5120_s2 = sld [smem:[#allocation23_spill]] }
  0x66   :  { %198 = vst [vmem:[#allocation1 + $0x22] ss:$4 sm:$0xff] %v3999_v11  ;;  %661 = vmatpush.msrb.mxu3 %v268_v5  ;;  %s4912_s7 = sld [smem:[#allocation4 + $0x6]] }
  0x67   :  { %200 = vst [vmem:[#allocation1 + $0x23] ss:$4 sm:$0xff] %v4003_v12  ;;  %804 = vmatpush.msra.mxu1 %v271_v0  ;;  %s5121_s10 = sld [smem:[#allocation25_spill]] }
  0x68   :  { %s5127_s11 = sld [smem:[#allocation26_spill]] }
  0x69   :  { %805 = vmatpush.msra.mxu1 %v270_v1  ;;  %s5128_s15 = sld [smem:[#allocation27_spill]] }
  0x6a   :  { %v201_v14 = vld.sshfl [vmem:[#allocation1] sm:$0xff pattern:$0x73625140]  ;;  %s5129_s0 = sld [smem:[#allocation30_spill]] }
  0x6b   :  { %3284 = vmatmul.msk.f32.vlgmr.msra.gmra.mxu0 %vm222_vm1, %v201_v14  ;;  %806 = vmatpush.msra.mxu1 %v269_v2  ;;  %203 = vst [vmem:[#allocation1] ss:$4 sm:$0xff] %v3441_v16 }
  0x6c   :  { %205 = vst [vmem:[#allocation1 + $0x1] ss:$4 sm:$0xff] %v3441_v16 }
  0x6d   :  { %807 = vmatpush.msra.mxu1 %v268_v5  ;;  %207 = vst [vmem:[#allocation1 + $0x2] ss:$4 sm:$0xff] %v3441_v16 }
  0x6e   :  { %v202_v15 = vld.sshfl [vmem:[#allocation1 + $0x20] sm:$0xff pattern:$0x73625140]  ;;  %209 = vst [vmem:[#allocation1 + $0x3] ss:$4 sm:$0xff] %v3441_v16 }
  0x6f   :  { %211 = vst [vmem:[#allocation1 + $0x20] ss:$4 sm:$0xff] %v3441_v16 }
  0x70   :  { %213 = vst [vmem:[#allocation1 + $0x21] ss:$4 sm:$0xff] %v3441_v16 }
  0x71   :  { %215 = vst [vmem:[#allocation1 + $0x22] ss:$4 sm:$0xff] %v3441_v16 }
  0x72   :  { %217 = vst [vmem:[#allocation1 + $0x23] ss:$4 sm:$0xff] %v3441_v16 }
  0x73   :  { %3285 = vmatmul.msk.f32.gmra.mxu0 %vm222_vm1, %v202_v15 }
  0x75   :  { %v4025_v49 = vld.sshfl [vmem:[#allocation1] sm:$0xff pattern:$0x73625140] }
  0x79   :  { %v219_v21 = vld.sshfl [vmem:[#allocation1 + $0x20] sm:$0xff pattern:$0x73625140] }
  0xdb   :  { %v297_v18 = vpop.f32.mrf.mxu1 }
  0xdc   :  { %v298_v19 = vadd.f32 %v4014_v17, %v297_v18 }
  0xde   :  { %321 = vrot.lane.b32.xlu0 %v298_v19, %s3768_s5 }
  0xe8   :  { %v4018_v20 = vpop.f32.mrf.mxu0 }
  0xf0   :  { %v251_v22 = vpop.f32.mrf.mxu0 }
  0xf1   :  { %v4020_v23 = vadd.f32 %v251_v22, %v219_v21 }
  0xf3   :  { %v261_v24 = vrot.slane %v4020_v23, 6  ;;  %v260_v55 = vrot.slane %v4020_v23, 4 }
  0xf5   :  { %v300_v25 = vadd.f32 %v298_v19, %v261_v24 }
  0xf7   :  { %v3286_v26 = vmul.f32 -1.442695, %v300_v25 }
  0xf9   :  { %3455 = vpow2.f32 %v3286_v26 }
  0xff   :  { %v3456_v27 = vpop.eup %3455 }
 0x100   :  { %v304_v28 = vadd.f32 1.0, %v3456_v27 }
 0x102   :  { %3457 = vrcp.f32 %v304_v28  ;;  %v316_v34 = vand.u32 2147483648, %v304_v28  ;;  %vm310_vm3 = vweird.f32 %v304_v28  ;;  %v314_v35 = vand.u32 2147483647, %v304_v28 }
 0x104   :  { %v317_v37 = vor.u32 1.1754944e-38, %v316_v34  ;;  %vm315_vm5 = vcmp.eq.f32.partialorder %v314_v35, 8.507059e+37 }
 0x108   :  { %v3458_v29 = vpop.eup %3457 }
 0x109   :  { %v306_v30 = vmul.f32 %v3458_v29, %v304_v28  ;;  %vm311_vm2 = vweird.f32 %v3458_v29 }
 0x10a   :  { %vm312_vm4 = vmor %vm310_vm3, %vm311_vm2 }
 0x10b   :  { %v307_v31 = vsub.f32 1.0, %v306_v30 }
 0x10d   :  { %v308_v32 = vmul.f32 %v3458_v29, %v307_v31 }
 0x10f   :  { %v309_v33 = vadd.f32 %v3458_v29, %v308_v32  ;;  %v259_v32 = vrot.slane %v4020_v23, 2 }
 0x111   :  { %v313_v36 = vsel %vm312_vm4, %v3458_v29, %v309_v33 }
 0x112   :  { %v318_v39 = vsel %vm315_vm5, %v317_v37, %v313_v36 }
 0x113   :  { %v331_v44 = vsub.f32 1.0, %v318_v39  ;;  %v337_v46 = vmul.f32 0.0, %v318_v39 }
 0x150   :  { %v322_v38 = vpop.permute.xlu0 %321 }
 0x151   :  { %v324_v40 = vmul.f32 %v322_v38, %v318_v39 }
 0x153   :  { %326 = vrot.lane.b32.xlu0 %v324_v40, %s3768_s5 }
 0x1c5   :  { %v327_v41 = vpop.permute.xlu0 %326 }
 0x1c6   :  { %v329_v42 = vadd.f32 %v327_v41, %v261_v24 }
 0x1c8   :  { %3459 = vtanh.f32 %v329_v42 }
 0x1ce   :  { %v3460_v43 = vpop.eup %3459 }
 0x1cf   :  { %333 = vrot.lane.b32.xlu1 %v3460_v43, %s3769_s17 }
 0x241   :  { %v334_v45 = vpop.permute.xlu1 %333 }
 0x242   :  { %v336_v47 = vmul.f32 %v334_v45, %v331_v44 }
 0x244   :  { %v338_v48 = vadd.f32 %v337_v46, %v336_v47 }
 0x246   :  { %340 = vst [vmem:[#allocation1] ss:$4 sm:$0xff] %v338_v48 }
 0x24d   :  { %v4027_v50 = vld.sshfl [vmem:[#allocation1] sm:$0xff pattern:$0x73625140] }
 0x24e   :  { %348 = vst [vmem:[#allocation1] ss:$4 sm:$0xff] %v338_v48 }
 0x255   :  { %v349_v51 = vld.sshfl [vmem:[#allocation1] sm:$0xff pattern:$0x73625140] }
 0x256   :  { %350 = vrot.lane.b32.xlu1 %v349_v51, %s3769_s17 }
 0x2c8   :  { %v351_v52 = vpop.permute.xlu1 %350 }
 0x2c9   :  { %3287 = vmatmul.msk.f32.vlgmr.msra.gmra.mxu2 %vm276_vm6, %v351_v52 }
 0x34c   :  { %v371_v53 = vpop.f32.mrf.mxu2 }
 0x34d   :  { %v372_v54 = vadd.f32 %v4014_v17, %v371_v53 }
 0x34f   :  { %395 = vrot.lane.b32.xlu2 %v372_v54, %s3768_s5  ;;  %v374_v56 = vadd.f32 %v372_v54, %v260_v55 }
 0x351   :  { %v3288_v57 = vmul.f32 -1.442695, %v374_v56 }
 0x353   :  { %3461 = vpow2.f32 %v3288_v57 }
 0x359   :  { %v3462_v58 = vpop.eup %3461 }
 0x35a   :  { %v378_v59 = vadd.f32 1.0, %v3462_v58 }
 0x35c   :  { %3463 = vrcp.f32 %v378_v59  ;;  %v390_v1 = vand.u32 2147483648, %v378_v59  ;;  %vm384_vm8 = vweird.f32 %v378_v59  ;;  %v388_v2 = vand.u32 2147483647, %v378_v59 }
 0x35e   :  { %v391_v5 = vor.u32 1.1754944e-38, %v390_v1  ;;  %vm389_vm10 = vcmp.eq.f32.partialorder %v388_v2, 8.507059e+37 }
 0x362   :  { %v3464_v60 = vpop.eup %3463 }
 0x363   :  { %v380_v61 = vmul.f32 %v3464_v60, %v378_v59  ;;  %vm385_vm7 = vweird.f32 %v3464_v60 }
 0x364   :  { %vm386_vm9 = vmor %vm384_vm8, %vm385_vm7 }
 0x365   :  { %v381_v62 = vsub.f32 1.0, %v380_v61 }
 0x367   :  { %v382_v63 = vmul.f32 %v3464_v60, %v381_v62 }
 0x369   :  { %v383_v0 = vadd.f32 %v3464_v60, %v382_v63 }
 0x36b   :  { %v387_v3 = vsel %vm386_vm9, %v3464_v60, %v383_v0 }
 0x36c   :  { %v392_v14 = vsel %vm389_vm10, %v391_v5, %v387_v3 }
 0x36d   :  { %v405_v21 = vsub.f32 1.0, %v392_v14  ;;  %v411_v24 = vmul.f32 %v392_v14, %v338_v48 }
 0x3a9   :  { %v396_v13 = vpop.permute.xlu2 %395 }
 0x3aa   :  { %v398_v15 = vmul.f32 %v396_v13, %v392_v14 }
 0x3ac   :  { %400 = vrot.lane.b32.xlu2 %v398_v15, %s3768_s5 }
 0x406   :  { %v401_v16 = vpop.permute.xlu2 %400 }
 0x407   :  { %v403_v18 = vadd.f32 %v401_v16, %v260_v55 }
 0x409   :  { %3465 = vtanh.f32 %v403_v18 }
 0x40f   :  { %v3466_v19 = vpop.eup %3465 }
 0x410   :  { %407 = vrot.lane.b32.xlu0 %v3466_v19, %s3769_s17 }
 0x482   :  { %v408_v22 = vpop.permute.xlu0 %407 }
 0x483   :  { %v410_v25 = vmul.f32 %v408_v22, %v405_v21 }
 0x485   :  { %v412_v26 = vadd.f32 %v411_v24, %v410_v25 }
 0x487   :  { %414 = vst [vmem:[#allocation1] ss:$4 sm:$0xff] %v412_v26 }
 0x48e   :  { %v4036_v27 = vld.sshfl [vmem:[#allocation1] sm:$0xff pattern:$0x73625140] }
 0x48f   :  { %421 = vst [vmem:[#allocation1] ss:$4 sm:$0xff] %v412_v26 }
 0x496   :  { %v422_v28 = vld.sshfl [vmem:[#allocation1] sm:$0xff pattern:$0x73625140] }
 0x497   :  { %423 = vrot.lane.b32.xlu1 %v422_v28, %s3769_s17 }
 0x509   :  { %v424_v29 = vpop.permute.xlu1 %423 }
 0x50a   :  { %3289 = vmatmul.msk.f32.vlgmr.msra.gmra.mxu3 %vm276_vm6, %v424_v29 }
 0x58d   :  { %v444_v30 = vpop.f32.mrf.mxu3 }
 0x58e   :  { %v445_v31 = vadd.f32 %v4014_v17, %v444_v30 }
 0x590   :  { %468 = vrot.lane.b32.xlu2 %v445_v31, %s3768_s5  ;;  %v447_v33 = vadd.f32 %v445_v31, %v259_v32 }
 0x592   :  { %v3290_v34 = vmul.f32 -1.442695, %v447_v33 }
 0x594   :  { %3467 = vpow2.f32 %v3290_v34 }
 0x59a   :  { %v3468_v35 = vpop.eup %3467 }
 0x59b   :  { %v451_v36 = vadd.f32 1.0, %v3468_v35 }
 0x59d   :  { %3469 = vrcp.f32 %v451_v36  ;;  %v463_v42 = vand.u32 2147483648, %v451_v36  ;;  %vm457_vm12 = vweird.f32 %v451_v36  ;;  %v461_v43 = vand.u32 2147483647, %v451_v36 }
 0x59f   :  { %v464_v45 = vor.u32 1.1754944e-38, %v463_v42  ;;  %vm462_vm14 = vcmp.eq.f32.partialorder %v461_v43, 8.507059e+37 }
 0x5a3   :  { %v3470_v37 = vpop.eup %3469 }
 0x5a4   :  { %v453_v38 = vmul.f32 %v3470_v37, %v451_v36  ;;  %vm458_vm11 = vweird.f32 %v3470_v37 }
 0x5a5   :  { %vm459_vm13 = vmor %vm457_vm12, %vm458_vm11 }
 0x5a6   :  { %v454_v39 = vsub.f32 1.0, %v453_v38 }
 0x5a8   :  { %v455_v40 = vmul.f32 %v3470_v37, %v454_v39 }
 0x5aa   :  { %v456_v41 = vadd.f32 %v3470_v37, %v455_v40  ;;  %v4063_v40 = vadd.f32 %v4018_v20, %v4025_v49 }
 0x5ac   :  { %v460_v44 = vsel %vm459_vm13, %v3470_v37, %v456_v41  ;;  %v258_v41 = vrot.slane %v4063_v40, 6 }
 0x5ad   :  { %v465_v47 = vsel %vm462_vm14, %v464_v45, %v460_v44 }
 0x5ae   :  { %v478_v54 = vsub.f32 1.0, %v465_v47  ;;  %v484_v56 = vmul.f32 %v465_v47, %v412_v26 }
 0x5ea   :  { %v469_v46 = vpop.permute.xlu2 %468 }
 0x5eb   :  { %v471_v48 = vmul.f32 %v469_v46, %v465_v47 }
 0x5ed   :  { %473 = vrot.lane.b32.xlu0 %v471_v48, %s3768_s5 }
 0x65f   :  { %v474_v51 = vpop.permute.xlu0 %473 }
 0x660   :  { %v476_v52 = vadd.f32 %v474_v51, %v259_v32 }
 0x662   :  { %3471 = vtanh.f32 %v476_v52 }
 0x668   :  { %v3472_v53 = vpop.eup %3471 }
 0x669   :  { %480 = vrot.lane.b32.xlu1 %v3472_v53, %s3769_s17 }
 0x6db   :  { %v481_v55 = vpop.permute.xlu1 %480 }
 0x6dc   :  { %v483_v57 = vmul.f32 %v481_v55, %v478_v54 }
 0x6de   :  { %v485_v58 = vadd.f32 %v484_v56, %v483_v57 }
 0x6e0   :  { %487 = vst [vmem:[#allocation1] ss:$4 sm:$0xff] %v485_v58 }
 0x6e7   :  { %v4045_v59 = vld.sshfl [vmem:[#allocation1] sm:$0xff pattern:$0x73625140] }
 0x6e8   :  { %494 = vst [vmem:[#allocation1] ss:$4 sm:$0xff] %v485_v58 }
 0x6ef   :  { %v495_v60 = vld.sshfl [vmem:[#allocation1] sm:$0xff pattern:$0x73625140] }
 0x6f0   :  { %496 = vrot.lane.b32.xlu2 %v495_v60, %s3769_s17 }
 0x74a   :  { %v497_v61 = vpop.permute.xlu2 %496 }
 0x74b   :  { %3291 = vmatmul.msk.f32.vlgmr.msrb.gmra.mxu1 %vm276_vm6, %v497_v61 }
 0x7c8   :  { %v517_v62 = vpop.f32.mrf.mxu1 }
 0x7c9   :  { %v518_v63 = vadd.f32 %v4014_v17, %v517_v62 }
 0x7cb   :  { %541 = vrot.lane.b32.xlu0 %v518_v63, %s3768_s5  ;;  %v520_v0 = vadd.f32 %v518_v63, %v4020_v23 }
 0x7cd   :  { %v3292_v1 = vmul.f32 -1.442695, %v520_v0 }
 0x7cf   :  { %3473 = vpow2.f32 %v3292_v1 }
 0x7d5   :  { %v3474_v2 = vpop.eup %3473 }
 0x7d6   :  { %v524_v3 = vadd.f32 1.0, %v3474_v2 }
 0x7d8   :  { %3475 = vrcp.f32 %v524_v3  ;;  %v536_v18 = vand.u32 2147483648, %v524_v3  ;;  %vm530_vm0 = vweird.f32 %v524_v3  ;;  %v534_v19 = vand.u32 2147483647, %v524_v3 }
 0x7da   :  { %v537_v22 = vor.u32 1.1754944e-38, %v536_v18  ;;  %vm535_vm2 = vcmp.eq.f32.partialorder %v534_v19, 8.507059e+37 }
 0x7de   :  { %v3476_v5 = vpop.eup %3475 }
 0x7df   :  { %v526_v13 = vmul.f32 %v3476_v5, %v524_v3  ;;  %vm531_vm15 = vweird.f32 %v3476_v5 }
 0x7e0   :  { %vm532_vm1 = vmor %vm530_vm0, %vm531_vm15 }
 0x7e1   :  { %v527_v14 = vsub.f32 1.0, %v526_v13 }
 0x7e3   :  { %v528_v15 = vmul.f32 %v3476_v5, %v527_v14 }
 0x7e5   :  { %v529_v16 = vadd.f32 %v3476_v5, %v528_v15 }
 0x7e7   :  { %v533_v21 = vsel %vm532_vm1, %v3476_v5, %v529_v16  ;;  %v257_v16 = vrot.slane %v4063_v40, 4 }
 0x7e8   :  { %v538_v25 = vsel %vm535_vm2, %v537_v22, %v533_v21 }
 0x7e9   :  { %v551_v31 = vsub.f32 1.0, %v538_v25  ;;  %v557_v33 = vmul.f32 %v538_v25, %v485_v58 }
 0x83d   :  { %v542_v24 = vpop.permute.xlu0 %541 }
 0x83e   :  { %v544_v26 = vmul.f32 %v542_v24, %v538_v25 }
 0x840   :  { %546 = vrot.lane.b32.xlu1 %v544_v26, %s3768_s5 }
 0x8b2   :  { %v547_v28 = vpop.permute.xlu1 %546 }
 0x8b3   :  { %v549_v29 = vadd.f32 %v547_v28, %v4020_v23 }
 0x8b5   :  { %3477 = vtanh.f32 %v549_v29 }
 0x8bb   :  { %v3478_v30 = vpop.eup %3477 }
 0x8bc   :  { %553 = vrot.lane.b32.xlu2 %v3478_v30, %s3769_s17 }
 0x916   :  { %v554_v32 = vpop.permute.xlu2 %553 }
 0x917   :  { %v556_v34 = vmul.f32 %v554_v32, %v551_v31 }
 0x919   :  { %v558_v35 = vadd.f32 %v557_v33, %v556_v34 }
 0x91b   :  { %560 = vst [vmem:[#allocation1] ss:$4 sm:$0xff] %v558_v35 }
 0x922   :  { %v4055_v36 = vld.sshfl [vmem:[#allocation1] sm:$0xff pattern:$0x73625140] }
 0x923   :  { %567 = vst [vmem:[#allocation1] ss:$4 sm:$0xff] %v558_v35 }
 0x92a   :  { %v568_v37 = vld.sshfl [vmem:[#allocation1] sm:$0xff pattern:$0x73625140] }
 0x92b   :  { %569 = vrot.lane.b32.xlu0 %v568_v37, %s3769_s17 }
 0x99d   :  { %v570_v38 = vpop.permute.xlu0 %569 }
 0x99e   :  { %3293 = vmatmul.msk.f32.vlgmr.msrb.gmra.mxu2 %vm276_vm6, %v570_v38 }
 0xa21   :  { %v590_v23 = vpop.f32.mrf.mxu2 }
 0xa22   :  { %v591_v39 = vadd.f32 %v4014_v17, %v590_v23 }
 0xa24   :  { %614 = vrot.lane.b32.xlu1 %v591_v39, %s3768_s5  ;;  %v593_v42 = vadd.f32 %v591_v39, %v258_v41 }
 0xa26   :  { %v3294_v43 = vmul.f32 -1.442695, %v593_v42 }
 0xa28   :  { %3479 = vpow2.f32 %v3294_v43 }
 0xa2e   :  { %v3480_v44 = vpop.eup %3479 }
 0xa2f   :  { %v597_v45 = vadd.f32 1.0, %v3480_v44 }
 0xa31   :  { %3481 = vrcp.f32 %v597_v45  ;;  %v609_v53 = vand.u32 2147483648, %v597_v45  ;;  %vm603_vm4 = vweird.f32 %v597_v45  ;;  %v607_v54 = vand.u32 2147483647, %v597_v45 }
 0xa33   :  { %v610_v49 = vor.u32 1.1754944e-38, %v609_v53  ;;  %vm608_vm7 = vcmp.eq.f32.partialorder %v607_v54, 8.507059e+37  ;;  %v256_v53 = vrot.slane %v4063_v40, 2 }
 0xa37   :  { %v3482_v46 = vpop.eup %3481 }
 0xa38   :  { %v599_v47 = vmul.f32 %v3482_v46, %v597_v45  ;;  %vm604_vm3 = vweird.f32 %v3482_v46 }
 0xa39   :  { %vm605_vm5 = vmor %vm603_vm4, %vm604_vm3  ;;  %vm346_vm4 = vcmask 254976  }
 0xa3a   :  { %v600_v48 = vsub.f32 1.0, %v599_v47 }
 0xa3c   :  { %v601_v51 = vmul.f32 %v3482_v46, %v600_v48 }
 0xa3e   :  { %v602_v52 = vadd.f32 %v3482_v46, %v601_v51 }
 0xa40   :  { %v606_v20 = vsel %vm605_vm5, %v3482_v46, %v602_v52  ;;  %vm993_vm5 = vcmask 1041408  }
 0xa41   :  { %v611_v56 = vsel %vm608_vm7, %v610_v49, %v606_v20  ;;  %vm950_vm7 = vcmask 64512  }
 0xa42   :  { %v624_v62 = vsub.f32 1.0, %v611_v56  ;;  %v630_v0 = vmul.f32 %v611_v56, %v558_v35 }
 0xa96   :  { %v615_v55 = vpop.permute.xlu1 %614 }
 0xa97   :  { %v617_v57 = vmul.f32 %v615_v55, %v611_v56 }
 0xa99   :  { %619 = vrot.lane.b32.xlu2 %v617_v57, %s3768_s5 }
 0xaf3   :  { %v620_v58 = vpop.permute.xlu2 %619 }
 0xaf4   :  { %v622_v60 = vadd.f32 %v620_v58, %v258_v41 }
 0xaf6   :  { %3483 = vtanh.f32 %v622_v60 }
 0xafc   :  { %v3484_v61 = vpop.eup %3483 }
 0xafd   :  { %626 = vrot.lane.b32.xlu0 %v3484_v61, %s3769_s17 }
 0xb6f   :  { %v627_v63 = vpop.permute.xlu0 %626 }
 0xb70   :  { %v629_v1 = vmul.f32 %v627_v63, %v624_v62 }
 0xb72   :  { %v631_v2 = vadd.f32 %v630_v0, %v629_v1 }
 0xb74   :  { %633 = vst [vmem:[#allocation1] ss:$4 sm:$0xff] %v631_v2 }
 0xb7b   :  { %v4068_v3 = vld.sshfl [vmem:[#allocation1] sm:$0xff pattern:$0x73625140] }
 0xb7c   :  { %640 = vst [vmem:[#allocation1] ss:$4 sm:$0xff] %v631_v2 }
 0xb83   :  { %v641_v5 = vld.sshfl [vmem:[#allocation1] sm:$0xff pattern:$0x73625140] }
 0xb84   :  { %642 = vrot.lane.b32.xlu1 %v641_v5, %s3769_s17 }
 0xbf6   :  { %v643_v13 = vpop.permute.xlu1 %642 }
 0xbf7   :  { %3295 = vmatmul.msk.f32.vlgmr.msrb.gmra.mxu3 %vm276_vm6, %v643_v13 }
 0xc7a   :  { %v663_v14 = vpop.f32.mrf.mxu3 }
 0xc7b   :  { %v664_v15 = vadd.f32 %v4014_v17, %v663_v14 }
 0xc7d   :  { %687 = vrot.lane.b32.xlu2 %v664_v15, %s3768_s5  ;;  %v666_v18 = vadd.f32 %v664_v15, %v257_v16 }
 0xc7f   :  { %v3296_v19 = vmul.f32 -1.442695, %v666_v18 }
 0xc81   :  { %3485 = vpow2.f32 %v3296_v19 }
 0xc87   :  { %v3486_v21 = vpop.eup %3485 }
 0xc88   :  { %v670_v22 = vadd.f32 1.0, %v3486_v21 }
 0xc8a   :  { %3487 = vrcp.f32 %v670_v22  ;;  %v682_v30 = vand.u32 2147483648, %v670_v22  ;;  %vm676_vm9 = vweird.f32 %v670_v22  ;;  %v680_v31 = vand.u32 2147483647, %v670_v22 }
 0xc8c   :  { %v683_v33 = vor.u32 1.1754944e-38, %v682_v30  ;;  %vm681_vm11 = vcmp.eq.f32.partialorder %v680_v31, 8.507059e+37 }
 0xc90   :  { %v3488_v24 = vpop.eup %3487 }
 0xc91   :  { %v672_v25 = vmul.f32 %v3488_v24, %v670_v22  ;;  %vm677_vm8 = vweird.f32 %v3488_v24 }
 0xc92   :  { %vm678_vm10 = vmor %vm676_vm9, %vm677_vm8  ;;  %vm1140_vm8 = vcmask 1043456   ;;  %vm1073_vm9 = vcmask 1043458  }
 0xc93   :  { %v673_v26 = vsub.f32 1.0, %v672_v25 }
 0xc95   :  { %v674_v28 = vmul.f32 %v3488_v24, %v673_v26 }
 0xc97   :  { %v675_v29 = vadd.f32 %v3488_v24, %v674_v28 }
 0xc99   :  { %v679_v32 = vsel %vm678_vm10, %v3488_v24, %v675_v29  ;;  %vm1076_vm10 = vcmask 1045508  }
 0xc9a   :  { %v684_v35 = vsel %vm681_vm11, %v683_v33, %v679_v32  ;;  %vm1079_vm11 = vcmask 1045504  }
 0xc9b   :  { %v697_v41 = vsub.f32 1.0, %v684_v35  ;;  %v703_v43 = vmul.f32 %v684_v35, %v631_v2 }
 0xcd7   :  { %v688_v34 = vpop.permute.xlu2 %687 }
 0xcd8   :  { %v690_v37 = vmul.f32 %v688_v34, %v684_v35 }
 0xcda   :  { %692 = vrot.lane.b32.xlu0 %v690_v37, %s3768_s5 }
 0xd4c   :  { %v693_v38 = vpop.permute.xlu0 %692 }
 0xd4d   :  { %v695_v23 = vadd.f32 %v693_v38, %v257_v16 }
 0xd4f   :  { %3489 = vtanh.f32 %v695_v23 }
 0xd55   :  { %v3490_v39 = vpop.eup %3489 }
 0xd56   :  { %699 = vrot.lane.b32.xlu1 %v3490_v39, %s3769_s17 }
 0xdc8   :  { %v700_v42 = vpop.permute.xlu1 %699 }
 0xdc9   :  { %v702_v44 = vmul.f32 %v700_v42, %v697_v41 }
 0xdcb   :  { %v704_v45 = vadd.f32 %v703_v43, %v702_v44 }
 0xdcd   :  { %706 = vst [vmem:[#allocation1] ss:$4 sm:$0xff] %v704_v45 }
 0xdd4   :  { %v4077_v46 = vld.sshfl [vmem:[#allocation1] sm:$0xff pattern:$0x73625140] }
 0xdd5   :  { %713 = vst [vmem:[#allocation1] ss:$4 sm:$0xff] %v704_v45 }
 0xddc   :  { %v714_v47 = vld.sshfl [vmem:[#allocation1] sm:$0xff pattern:$0x73625140] }
 0xddd   :  { %715 = vrot.lane.b32.xlu2 %v714_v47, %s3769_s17 }
 0xe37   :  { %v716_v48 = vpop.permute.xlu2 %715 }
 0xe38   :  { %3297 = vmatmul.msk.f32.vlgmr.msrb.gmra.mxu0 %vm276_vm6, %v716_v48  ;;  %v975_v48 = vld [vmem:[%s3788_s9] sm:$0x3]  ;;  %s3771_s9 = smov 124  }
 0xeb5   :  { %v736_v51 = vpop.f32.mrf.mxu0 }
 0xeb6   :  { %v737_v52 = vadd.f32 %v4014_v17, %v736_v51 }
 0xeb8   :  { %760 = vrot.lane.b32.xlu0 %v737_v52, %s3768_s5  ;;  %v739_v54 = vadd.f32 %v737_v52, %v256_v53 }
 0xeba   :  { %v3298_v20 = vmul.f32 -1.442695, %v739_v54 }
 0xebc   :  { %3491 = vpow2.f32 %v3298_v20 }
 0xec2   :  { %v3492_v49 = vpop.eup %3491 }
 0xec3   :  { %v743_v55 = vadd.f32 1.0, %v3492_v49 }
 0xec5   :  { %3493 = vrcp.f32 %v743_v55  ;;  %v755_v62 = vand.u32 2147483648, %v743_v55  ;;  %vm749_vm13 = vweird.f32 %v743_v55  ;;  %v753_v63 = vand.u32 2147483647, %v743_v55 }
 0xec7   :  { %v756_v1 = vor.u32 1.1754944e-38, %v755_v62  ;;  %vm754_vm15 = vcmp.eq.f32.partialorder %v753_v63, 8.507059e+37 }
 0xecb   :  { %v3494_v56 = vpop.eup %3493 }
 0xecc   :  { %v745_v57 = vmul.f32 %v3494_v56, %v743_v55  ;;  %vm750_vm12 = vweird.f32 %v3494_v56 }
 0xecd   :  { %vm751_vm14 = vmor %vm749_vm13, %vm750_vm12  ;;  %vm1124_vm12 = vcmask 25600   ;;  %vm1136_vm13 = vcmask 31744  }
 0xece   :  { %v746_v58 = vsub.f32 1.0, %v745_v57 }
 0xed0   :  { %v747_v60 = vmul.f32 %v3494_v56, %v746_v58 }
 0xed2   :  { %v748_v61 = vadd.f32 %v3494_v56, %v747_v60 }
 0xed4   :  { %v752_v0 = vsel %vm751_vm14, %v3494_v56, %v748_v61 }
 0xed5   :  { %v757_v5 = vsel %vm754_vm15, %v756_v1, %v752_v0 }
 0xed6   :  { %v770_v18 = vsub.f32 1.0, %v757_v5  ;;  %v776_v21 = vmul.f32 %v757_v5, %v704_v45 }
 0xf2a   :  { %v761_v2 = vpop.permute.xlu0 %760 }
 0xf2b   :  { %v763_v13 = vmul.f32 %v761_v2, %v757_v5  ;;  %v869_v2 = vld [vmem:[%s3823_s8 + $0x18] sm:$0xff]  ;;  %v868_v5 = vld [vmem:[%s3823_s8 + $0x10] sm:$0xff] }
 0xf2c   :  { %933 = vmatpush.msra.mxu2 %v869_v2 }
 0xf2d   :  { %765 = vrot.lane.b32.xlu1 %v763_v13, %s3768_s5  ;;  %v867_v13 = vld [vmem:[%s3823_s8 + $0x8] sm:$0xff] }
 0xf2e   :  { %934 = vmatpush.msra.mxu2 %v868_v5 }
 0xf30   :  { %935 = vmatpush.msra.mxu2 %v867_v13 }
 0xf9f   :  { %v766_v14 = vpop.permute.xlu1 %765 }
 0xfa0   :  { %v768_v15 = vadd.f32 %v766_v14, %v256_v53  ;;  %v866_v14 = vld [vmem:[%s3823_s8] sm:$0xff]  ;;  %s5093_s8 = sld [smem:[#allocation15_spill]] }
 0xfa1   :  { %936 = vmatpush.msra.mxu2 %v866_v14 }
 0xfa2   :  { %3495 = vtanh.f32 %v768_v15 }
 0xfa8   :  { %v3496_v16 = vpop.eup %3495 }
 0xfa9   :  { %772 = vrot.lane.b32.xlu2 %v3496_v16, %s3769_s17 }
0x1003   :  { %v773_v19 = vpop.permute.xlu2 %772 }
0x1004   :  { %v775_v22 = vmul.f32 %v773_v19, %v770_v18  ;;  %v945_v18 = vld [vmem:[%s3833_s19] sm:$0xff]  ;;  %s4413_s19 = sld [smem:[#allocation4]] }
0x1005   :  { %968 = vmatpush.msra.mxu3 %v945_v18  ;;  %v3442_v19 = vld [vmem:[%s3828_s14] ss:$0 sm:$0xff]  ;;  %s5094_s14 = sld [smem:[#allocation17_spill]] }
0x1006   :  { %v777_v24 = vadd.f32 %v776_v21, %v775_v22  ;;  %v988_v22 = vld [vmem:[%s3853_s12] sm:$0x3]  ;;  %s4767_s12 = sld [smem:[#allocation4 + $0x4]] }
0x1008   :  { %779 = vst [vmem:[#allocation1] ss:$4 sm:$0xff] %v777_v24 }
0x100f   :  { %v780_v25 = vld.sshfl [vmem:[#allocation1] sm:$0xff pattern:$0x73625140] }
0x1010   :  { %786 = vst [vmem:[#allocation1] ss:$4 sm:$0xff] %v777_v24 }
0x1017   :  { %v787_v26 = vld.sshfl [vmem:[#allocation1] sm:$0xff pattern:$0x73625140] }
0x1018   :  { %788 = vrot.lane.b32.xlu0 %v787_v26, %s3769_s17  ;;  %v990_v26 = vperm.slane %v988_v22, 0 }
0x108a   :  { %v789_v28 = vpop.permute.xlu0 %788 }
0x108b   :  { %3299 = vmatmul.msk.f32.vlgmr.msra.gmra.mxu1 %vm276_vm6, %v789_v28 }
0x1108   :  { %v809_v29 = vpop.f32.mrf.mxu1 }
0x1109   :  { %v810_v30 = vadd.f32 %v4014_v17, %v809_v29 }
0x110b   :  { %833 = vrot.lane.b32.xlu1 %v810_v30, %s3768_s5  ;;  %v812_v31 = vadd.f32 %v810_v30, %v4063_v40 }
0x110d   :  { %v3300_v32 = vmul.f32 -1.442695, %v812_v31 }
0x110f   :  { %3497 = vpow2.f32 %v3300_v32 }
0x1113   :  { %635 = vrot.lane.b32.xlu1 %v4068_v3, %s3769_s17 }
0x1115   :  { %v3498_v33 = vpop.eup %3497 }
0x1116   :  { %v816_v34 = vadd.f32 1.0, %v3498_v33  ;;  %v986_v33 = vld [vmem:[%s3843_s30] sm:$0xff] }
0x1117   :  { %1036 = vmatpush.msra.mxu0 %v986_v33 }
0x1118   :  { %3499 = vrcp.f32 %v816_v34  ;;  %v828_v17 = vand.u32 2147483648, %v816_v34  ;;  %vm822_vm1 = vweird.f32 %v816_v34  ;;  %v826_v41 = vand.u32 2147483647, %v816_v34 }
0x111a   :  { %v829_v3 = vor.u32 1.1754944e-38, %v828_v17  ;;  %vm827_vm3 = vcmp.eq.f32.partialorder %v826_v41, 8.507059e+37  ;;  %v4133_v41 = vld [vmem:[%s3848_s6] sm:$0xff]  ;;  %s4653_s6 = sld [smem:[#allocation4 + $0x3]] }
0x111e   :  { %v3500_v35 = vpop.eup %3499 }
0x111f   :  { %v818_v37 = vmul.f32 %v3500_v35, %v816_v34  ;;  %vm823_vm0 = vweird.f32 %v3500_v35  ;;  %v987_v34 = vld [vmem:[%s3843_s30 + $0x8] sm:$0xff]  ;;  %s4542_s30 = sld [smem:[#allocation4 + $0x2]] }
0x1120   :  { %vm824_vm2 = vmor %vm822_vm1, %vm823_vm0  ;;  %1059 = vmatpush.msrb.mxu1 %v987_v34  ;;  %vm1224_vm1 = vcmask 523264  }
0x1121   :  { %v819_v38 = vsub.f32 1.0, %v818_v37 }
0x1123   :  { %v820_v23 = vmul.f32 %v3500_v35, %v819_v38 }
0x1125   :  { %v821_v39 = vadd.f32 %v3500_v35, %v820_v23 }
0x1127   :  { %v825_v42 = vsel %vm824_vm2, %v3500_v35, %v821_v39 }
0x1128   :  { %v830_v44 = vsel %vm827_vm3, %v829_v3, %v825_v42 }
0x1129   :  { %v849_v55 = vmul.f32 %v830_v44, %v777_v24 }
0x117d   :  { %v834_v43 = vpop.permute.xlu1 %833 }
0x117e   :  { %v836_v45 = vmul.f32 %v834_v43, %v830_v44 }
0x1180   :  { %838 = vrot.lane.b32.xlu2 %v836_v45, %s3768_s5 }
0x1185   :  { %v636_v47 = vpop.permute.xlu1 %635 }
0x1186   :  { %639 = vst.msk [vmem:[#allocation2 + $0x6] sm:$0x3] %vm346_vm4, %v636_v47  ;;  %v3443_v47 = vld [vmem:[%s3838_s24] ss:$0 sm:$0xff]  ;;  %s4479_s24 = sld [smem:[#allocation4 + $0x1]] }
0x1188   :  { %708 = vrot.lane.b32.xlu2 %v4077_v46, %s3769_s17 }
0x118d   :  { %v861_v62 = vld [vmem:[#allocation2 + $0x6] sm:$0x3] }
0x1190   :  { %977 = vrot.lane.b32.xlu2 %v975_v48, %s3770_s21 }
0x1198   :  { %489 = vrot.lane.b32.xlu2 %v4045_v59, %s3769_s17 }
0x11da   :  { %v839_v51 = vpop.permute.xlu2 %838 }
0x11db   :  { %v841_v52 = vadd.f32 %v839_v51, %v4063_v40  ;;  %v843_v40 = vsub.f32 1.0, %v830_v44 }
0x11dd   :  { %3501 = vtanh.f32 %v841_v52 }
0x11e2   :  { %v709_v53 = vpop.permute.xlu2 %708 }
0x11e3   :  { %v3502_v54 = vpop.eup %3501  ;;  %712 = vst.msk [vmem:[#allocation2 + $0x4] sm:$0x3] %vm346_vm4, %v709_v53 }
0x11e4   :  { %845 = vrot.lane.b32.xlu0 %v3502_v54, %s3769_s17 }
0x11ea   :  { %v4104_v20 = vpop.permute.xlu2 %977  ;;  %v860_v60 = vld [vmem:[#allocation2 + $0x4] sm:$0x3] }
0x11ec   :  { %781 = vrot.lane.b32.xlu0 %v780_v25, %s3769_s17  ;;  %v991_v25 = vperm.slane %v988_v22, 1 }
0x11ee   :  { %v992_v28 = vrot.slane %v991_v25, 6 }
0x11f0   :  { %v994_v30 = vsel %vm993_vm5, %v990_v26, %v992_v28 }
0x11f2   :  { %v490_v46 = vpop.permute.xlu2 %489 }
0x11f3   :  { %493 = vst.msk [vmem:[#allocation2 + $0xa] sm:$0x3] %vm346_vm4, %v490_v46 }
0x11f4   :  { %342 = vrot.lane.b32.xlu0 %v4027_v50, %s3769_s17 }
0x11fa   :  { %v863_v59 = vld [vmem:[#allocation2 + $0xa] sm:$0x3] }
0x11fb   :  { %891 = vst [vmem:[#allocation1 + $0x21] ss:$4 sm:$0xff] %v863_v59 }
0x11fc   :  { %562 = vrot.lane.b32.xlu0 %v4055_v36, %s3769_s17 }
0x1256   :  { %v846_v49 = vpop.permute.xlu0 %845 }
0x1257   :  { %v848_v56 = vmul.f32 %v846_v49, %v843_v40 }
0x1259   :  { %v850_v57 = vadd.f32 %v849_v55, %v848_v56 }
0x125b   :  { %852 = vst [vmem:[#allocation1] ss:$4 sm:$0xff] %v850_v57 }
0x125e   :  { %v782_v58 = vpop.permute.xlu0 %781 }
0x125f   :  { %785 = vst.msk [vmem:[#allocation2 + $0x2] sm:$0x3] %vm346_vm4, %v782_v58 }
0x1262   :  { %v853_v61 = vld.sshfl [vmem:[#allocation1] sm:$0xff pattern:$0x73625140] }
0x1263   :  { %885 = vst [vmem:[#allocation1 + $0x2] ss:$4 sm:$0xff] %v860_v60  ;;  %854 = vrot.lane.b32.xlu1 %v853_v61, %s3769_s17 }
0x1264   :  { %887 = vst [vmem:[#allocation1 + $0x3] ss:$4 sm:$0xff] %v861_v62 }
0x1266   :  { %v859_v50 = vld [vmem:[#allocation2 + $0x2] sm:$0x3]  ;;  %v343_v36 = vpop.permute.xlu0 %342 }
0x1267   :  { %883 = vst [vmem:[#allocation1 + $0x1] ss:$4 sm:$0xff] %v859_v50 }
0x1268   :  { %347 = vst.msk [vmem:[#allocation2 + $0xe] sm:$0x3] %vm346_vm4, %v343_v36 }
0x126b   :  { %416 = vrot.lane.b32.xlu1 %v4036_v27, %s3769_s17  ;;  %s1346_s17 = smul.f32 0.5, %s4413_s19 }
0x126e   :  { %v563_v63 = vpop.permute.xlu0 %562 }
0x126f   :  { %v865_v0 = vld [vmem:[#allocation2 + $0xe] sm:$0x3]  ;;  %566 = vst.msk [vmem:[#allocation2 + $0x8] sm:$0x3] %vm346_vm4, %v563_v63 }
0x1270   :  { %895 = vst [vmem:[#allocation1 + $0x23] ss:$4 sm:$0xff] %v865_v0 }
0x1276   :  { %v862_v1 = vld [vmem:[#allocation2 + $0x8] sm:$0x3] }
0x1277   :  { %889 = vst [vmem:[#allocation1 + $0x20] ss:$4 sm:$0xff] %v862_v1 }
0x12d5   :  { %v855_v15 = vpop.permute.xlu1 %854 }
0x12d6   :  { %857 = vst.msk [vmem:[#allocation2] sm:$0x3] %vm346_vm4, %v855_v15 }
0x12dd   :  { %v858_v27 = vld [vmem:[#allocation2] sm:$0x3]  ;;  %v417_v16 = vpop.permute.xlu1 %416 }
0x12de   :  { %881 = vst [vmem:[#allocation1] ss:$4 sm:$0xff] %v858_v27 }
0x12df   :  { %420 = vst.msk [vmem:[#allocation2 + $0xc] sm:$0x3] %vm346_vm4, %v417_v16 }
0x12e5   :  { %v896_v21 = vld.sshfl [vmem:[#allocation1] sm:$0xff pattern:$0x73625140] }
0x12e6   :  { %v864_v24 = vld [vmem:[#allocation2 + $0xc] sm:$0x3]  ;;  %898 = vst [vmem:[#allocation1] ss:$4 sm:$0xff] %v3442_v19  ;;  %3301 = vmatmul.msk.f32.vlgmr.msra.gmra.mxu2 %vm276_vm6, %v896_v21 }
0x12e7   :  { %893 = vst [vmem:[#allocation1 + $0x22] ss:$4 sm:$0xff] %v864_v24 }
0x12e8   :  { %900 = vst [vmem:[#allocation1 + $0x1] ss:$4 sm:$0xff] %v3442_v19 }
0x12e9   :  { %902 = vst [vmem:[#allocation1 + $0x2] ss:$4 sm:$0xff] %v3442_v19 }
0x12ea   :  { %904 = vst [vmem:[#allocation1 + $0x3] ss:$4 sm:$0xff] %v3442_v19 }
0x12ee   :  { %v897_v29 = vld.sshfl [vmem:[#allocation1 + $0x20] sm:$0xff pattern:$0x73625140] }
0x12ef   :  { %906 = vst [vmem:[#allocation1 + $0x20] ss:$4 sm:$0xff] %v3442_v19  ;;  %3302 = vmatmul.msk.f32.gmra.mxu2 %vm276_vm6, %v897_v29 }
0x12f0   :  { %908 = vst [vmem:[#allocation1 + $0x21] ss:$4 sm:$0xff] %v3442_v19 }
0x12f1   :  { %910 = vst [vmem:[#allocation1 + $0x22] ss:$4 sm:$0xff] %v3442_v19  ;;  %v913_v31 = vld.sshfl [vmem:[#allocation1] sm:$0xff pattern:$0x73625140] }
0x12f2   :  { %912 = vst [vmem:[#allocation1 + $0x23] ss:$4 sm:$0xff] %v3442_v19 }
0x12f3   :  { %995 = vst [vmem:[#allocation1] ss:$4 sm:$0xff] %v994_v30 }
0x12f4   :  { %999 = vst [vmem:[#allocation1 + $0x2] ss:$4 sm:$0xff] %v994_v30 }
0x12f5   :  { %997 = vst [vmem:[#allocation1 + $0x1] ss:$4 sm:$0xff] %v994_v30 }
0x12f6   :  { %1001 = vst [vmem:[#allocation1 + $0x3] ss:$4 sm:$0xff] %v994_v30 }
0x12f9   :  { %v914_v32 = vld.sshfl [vmem:[#allocation1 + $0x20] sm:$0xff pattern:$0x73625140] }
0x12fa   :  { %1007 = vst [vmem:[#allocation1 + $0x22] ss:$4 sm:$0xff] %v994_v30 }
0x12fb   :  { %1003 = vst [vmem:[#allocation1 + $0x20] ss:$4 sm:$0xff] %v994_v30 }
0x12fc   :  { %1005 = vst [vmem:[#allocation1 + $0x21] ss:$4 sm:$0xff] %v994_v30 }
0x12fd   :  { %1009 = vst [vmem:[#allocation1 + $0x23] ss:$4 sm:$0xff] %v994_v30  ;;  %v1010_v39 = vld.sshfl [vmem:[#allocation1] sm:$0xff pattern:$0x73625140] }
0x12fe   :  { %v1011_v17 = vld.sshfl [vmem:[#allocation1 + $0x8] sm:$0xff pattern:$0x73625140] }
0x12ff   :  { %1128 = vst [vmem:[#allocation1] ss:$2 sm:$0xff] %v4133_v41 }
0x1304   :  { %v1013_v1 = vld.sshfl [vmem:[#allocation1 + $0x28] sm:$0xff pattern:$0x73625140]  ;;  %v1012_v15 = vld.sshfl [vmem:[#allocation1 + $0x20] sm:$0xff pattern:$0x73625140] }
0x1306   :  { %v1130_v42 = vld.sshfl [vmem:[#allocation1 + $0x8] sm:$0xff pattern:$0x75316420]  ;;  %v1129_v3 = vld.sshfl [vmem:[#allocation1] sm:$0xff pattern:$0x75316420] }
0x1307   :  { %3310 = vmatpush.msk.msrb.mxu2 %vm1140_vm8, %v1130_v42  ;;  %3308 = vmatpush.msk.msrb.mxu3 %vm1140_vm8, %v1129_v3 }
0x1369   :  { %v938_v35 = vpop.f32.mrf.mxu2 }
0x136a   :  { %v939_v37 = vadd.f32 %v938_v35, %v913_v31 }
0x136c   :  { %3303 = vmatmul.msk.f32.vlgmr.msra.gmra.mxu3 %vm950_vm7, %v939_v37  ;;  %3304 = vmatmul.msk.f32.vlgmr.msra.gmra.mxu0 %vm950_vm7, %v939_v37 }
0x136d   :  { %3306 = vmatmul.msk.f32.vlgmr.msrb.gmra.mxu1 %vm950_vm7, %v939_v37 }
0x1372   :  { %v941_v38 = vpop.f32.mrf.mxu2 }
0x1373   :  { %v942_v23 = vadd.f32 %v941_v38, %v914_v32 }
0x1375   :  { %3305 = vmatmul.msk.f32.gmra.mxu0 %vm950_vm7, %v942_v23  ;;  %3307 = vmatmul.msk.f32.gmra.mxu1 %vm950_vm7, %v942_v23 }
0x13e9   :  { %v1038_v43 = vpop.f32.mrf.mxu0 }
0x13ea   :  { %v1061_v44 = vpop.f32.mrf.mxu1  ;;  %v1039_v48 = vadd.f32 %v1038_v43, %v1010_v39 }
0x13eb   :  { %v1062_v45 = vadd.f32 %v1061_v44, %v1011_v17 }
0x13ed   :  { %v1071_v51 = vrot.slane %v1062_v45, 6 }
0x13ef   :  { %v1074_v52 = vsel %vm1073_vm9, %v1039_v48, %v1071_v51  ;;  %v970_v53 = vpop.f32.mrf.mxu3  ;;  %v1077_v57 = vsel %vm1076_vm10, %v1039_v48, %v1071_v51 }
0x13f0   :  { %v1075_v54 = vrot.slane %v1074_v52, 2  ;;  %v4140_v46 = vadd.f32 %v3443_v47, %v970_v53  ;;  %v1078_v58 = vrot.slane %v1077_v57, 4  ;;  %v4228_v52 = vld [vmem:[%s5086_s25 + $0x68] sm:$0xff]  ;;  %v4233_v53 = vld [vmem:[%s5086_s25 + $0x60] sm:$0xff] }
0x13f1   :  { %v4252_v57 = vld [vmem:[%s5086_s25 + $0x48] sm:$0xff] }
0x13f2   :  { %5076 = vst [vmem:[#allocation41_spill] sm:$0xff] %v4140_v46  ;;  %v973_v59 = vmul.f32 1.442695, %v4140_v46  ;;  %v1064_v2 = vpop.f32.mrf.mxu1  ;;  %v1041_v27 = vpop.f32.mrf.mxu0 }
0x13f3   :  { %1131 = vst [vmem:[#allocation1] ss:$4 sm:$0xff] %v1075_v54  ;;  %v1065_v5 = vadd.f32 %v1064_v2, %v1013_v1  ;;  %v1042_v18 = vadd.f32 %v1041_v27, %v1012_v15  ;;  %v4236_v54 = vld [vmem:[%s5086_s25 + $0x58] sm:$0xff]  ;;  %v4279_v2 = vld [vmem:[%s5086_s25 + $0x30] sm:$0xff]  ;;  %v4288_v15 = vld [vmem:[%s5086_s25 + $0x28] sm:$0xff] }
0x13f4   :  { %3503 = vpow2.f32 %v973_v59  ;;  %v4241_v59 = vld [vmem:[%s5086_s25 + $0x50] sm:$0xff]  ;;  %v4273_v1 = vld [vmem:[%s5086_s25 + $0x98] sm:$0xff]  ;;  %v4291_v27 = vld [vmem:[%s5086_s25 + $0x88] sm:$0xff] }
0x13f5   :  { %v1072_v16 = vrot.slane %v1065_v5, 6  ;;  %v4282_v5 = vld [vmem:[%s5086_s25 + $0x90] sm:$0xff] }
0x13f7   :  { %v1082_v19 = vsel %vm993_vm5, %v1042_v18, %v1072_v16  ;;  %v1083_v26 = vsel %vm1073_vm9, %v1042_v18, %v1072_v16  ;;  %v1085_v33 = vsel %vm1076_vm10, %v1042_v18, %v1072_v16  ;;  %v1087_v39 = vsel %vm1079_vm11, %v1072_v16, %v1042_v18  ;;  %v4297_v16 = vld [vmem:[%s5086_s25 + $0x20] sm:$0xff] }
0x13f8   :  { %v1084_v28 = vrot.slane %v1083_v26, 2  ;;  %v1086_v34 = vrot.slane %v1085_v33, 4  ;;  %v1088_v17 = vrot.slane %v1087_v39, 6  ;;  %v4300_v18 = vld [vmem:[%s5086_s25 + $0x80] sm:$0xff]  ;;  %v4312_v26 = vld [vmem:[%s5086_s25 + $0x10] sm:$0xff] }
0x13f9   :  { %v4324_v39 = vld [vmem:[%s5086_s25] sm:$0xff] }
0x13fa   :  { %v4143_v40 = vld.sshfl [vmem:[#allocation1] sm:$0xff pattern:$0x73625140]  ;;  %v4145_v49 = vld.sshfl [vmem:[#allocation1 + $0x8] sm:$0xff pattern:$0x73625140]  ;;  %v3504_v55 = vpop.eup %3503 }
0x13fb   :  { %1367 = vst [vmem:[#allocation1] ss:$2 sm:$0xff] %v4133_v41  ;;  %v980_v56 = vmul.f32 %v3504_v55, %v4104_v20  ;;  %v1080_v20 = vsel %vm1079_vm11, %v1071_v51, %v1039_v48  ;;  %v4218_v48 = vld [vmem:[%s5086_s25 + $0x78] sm:$0xff]  ;;  %v4223_v51 = vld [vmem:[%s5086_s25 + $0x70] sm:$0xff] }
0x13fc   :  { %v1081_v36 = vrot.slane %v1080_v20, 6  ;;  %1228 = vmatpush.msrb.mxu0 %v4218_v48  ;;  %v4244_v55 = vld [vmem:[%s5086_s25 + $0xb8] sm:$0xff]  ;;  %v4264_v20 = vld [vmem:[%s5086_s25 + $0xa0] sm:$0xff] }
0x13fd   :  { %982 = vrot.lane.b32.xlu1 %v980_v56, %s3771_s9  ;;  %v4247_v56 = vld [vmem:[%s5086_s25 + $0xb0] sm:$0xff]  ;;  %1256 = vmatpush.msra.mxu1 %v4244_v55 }
0x13fe   :  { %1229 = vmatpush.msrb.mxu0 %v4223_v51 }
0x13ff   :  { %1257 = vmatpush.msra.mxu1 %v4247_v56 }
0x1400   :  { %1230 = vmatpush.msrb.mxu0 %v4228_v52 }
0x1402   :  { %v1368_v60 = vld.sshfl [vmem:[#allocation1] sm:$0xff pattern:$0x75316420]  ;;  %v4151_v61 = vld.sshfl [vmem:[#allocation1 + $0x8] sm:$0xff pattern:$0x75316420]  ;;  %1231 = vmatpush.msrb.mxu0 %v4233_v53 }
0x1403   :  { %3316 = vmatpush.msk.msra.mxu2 %vm1140_vm8, %v1368_v60  ;;  %1370 = vst [vmem:[#allocation1] ss:$4 sm:$0xff] %v1078_v58  ;;  %v4255_v58 = vld [vmem:[%s5086_s25 + $0xa8] sm:$0xff]  ;;  %v4261_v60 = vld [vmem:[%s5086_s25 + $0x40] sm:$0xff] }
0x1404   :  { %1232 = vmatpush.msrb.mxu0 %v4236_v54  ;;  %1258 = vmatpush.msra.mxu1 %v4255_v58 }
0x1406   :  { %1233 = vmatpush.msrb.mxu0 %v4241_v59  ;;  %1259 = vmatpush.msra.mxu1 %v4264_v20 }
0x1408   :  { %1234 = vmatpush.msrb.mxu0 %v4252_v57  ;;  %1260 = vmatpush.msra.mxu1 %v4273_v1 }
0x140a   :  { %v4154_v62 = vld.sshfl [vmem:[#allocation1 + $0x8] sm:$0xff pattern:$0x73625140]  ;;  %v4156_v50 = vld.sshfl [vmem:[#allocation1] sm:$0xff pattern:$0x73625140]  ;;  %1235 = vmatpush.msrb.mxu0 %v4261_v60  ;;  %1261 = vmatpush.msra.mxu1 %v4282_v5 }
0x140b   :  { %1598 = vst [vmem:[#allocation1] ss:$2 sm:$0xff] %v4133_v41 }
0x140c   :  { %1262 = vmatpush.msra.mxu1 %v4291_v27 }
0x140e   :  { %1263 = vmatpush.msra.mxu1 %v4300_v18 }
0x1410   :  { %3318 = vmatpush.msk.msrb.mxu1 %vm1140_vm8, %v4151_v61 }
0x1412   :  { %v4160_v63 = vld.sshfl [vmem:[#allocation1 + $0x8] sm:$0xff pattern:$0x75316420]  ;;  %v4162_v0 = vld.sshfl [vmem:[#allocation1] sm:$0xff pattern:$0x75316420] }
0x1413   :  { %1601 = vst [vmem:[#allocation1] ss:$4 sm:$0xff] %v1081_v36  ;;  %v4270_v36 = vld [vmem:[%s5086_s25 + $0x38] sm:$0xff] }
0x1414   :  { %1236 = vmatpush.msrb.mxu0 %v4270_v36 }
0x1416   :  { %1237 = vmatpush.msrb.mxu0 %v4279_v2 }
0x1418   :  { %1238 = vmatpush.msrb.mxu0 %v4288_v15 }
0x141a   :  { %v4164_v13 = vld.sshfl [vmem:[#allocation1] sm:$0xff pattern:$0x73625140]  ;;  %v4166_v14 = vld.sshfl [vmem:[#allocation1 + $0x8] sm:$0xff pattern:$0x73625140]  ;;  %1239 = vmatpush.msrb.mxu0 %v4297_v16 }
0x141b   :  { %1829 = vst [vmem:[#allocation1] ss:$2 sm:$0xff] %v4133_v41 }
0x1422   :  { %v4170_v21 = vld.sshfl [vmem:[#allocation1] sm:$0xff pattern:$0x75316420]  ;;  %v4172_v22 = vld.sshfl [vmem:[#allocation1 + $0x8] sm:$0xff pattern:$0x75316420] }
0x1423   :  { %1832 = vst [vmem:[#allocation1] ss:$4 sm:$0xff] %v1082_v19  ;;  %v4306_v19 = vld [vmem:[%s5086_s25 + $0x18] sm:$0xff] }
0x1424   :  { %1240 = vmatpush.msrb.mxu0 %v4306_v19 }
0x1426   :  { %1241 = vmatpush.msrb.mxu0 %v4312_v26 }
0x142a   :  { %v4174_v24 = vld.sshfl [vmem:[#allocation1 + $0x8] sm:$0xff pattern:$0x73625140]  ;;  %v4176_v25 = vld.sshfl [vmem:[#allocation1] sm:$0xff pattern:$0x73625140] }
0x142b   :  { %5077 = vst [vmem:[#allocation42_spill] sm:$0xff] %v4174_v24 }
0x142c   :  { %5078 = vst [vmem:[#allocation43_spill] sm:$0xff] %v4176_v25 }
0x142d   :  { %2060 = vst [vmem:[#allocation1] ss:$2 sm:$0xff] %v4133_v41 }
0x1434   :  { %v4180_v29 = vld.sshfl [vmem:[#allocation1 + $0x8] sm:$0xff pattern:$0x75316420]  ;;  %v4182_v30 = vld.sshfl [vmem:[#allocation1] sm:$0xff pattern:$0x75316420] }
0x1435   :  { %5079 = vst [vmem:[#allocation44_spill] sm:$0xff] %v4180_v29 }
0x1436   :  { %2063 = vst [vmem:[#allocation1] ss:$4 sm:$0xff] %v1084_v28  ;;  %v4319_v28 = vld [vmem:[%s5086_s25 + $0x8] sm:$0xff] }
0x1437   :  { %1242 = vmatpush.msrb.mxu0 %v4319_v28 }
0x1439   :  { %1243 = vmatpush.msrb.mxu0 %v4324_v39 }
0x143b   :  { %3325 = vmatpush.msk.msra.mxu0 %vm1140_vm8, %v4162_v0 }
0x143d   :  { %v4184_v31 = vld.sshfl [vmem:[#allocation1] sm:$0xff pattern:$0x73625140]  ;;  %v4186_v32 = vld.sshfl [vmem:[#allocation1 + $0x8] sm:$0xff pattern:$0x73625140] }
0x143e   :  { %5080 = vst [vmem:[#allocation45_spill] sm:$0xff] %v4184_v31 }
0x143f   :  { %5081 = vst [vmem:[#allocation46_spill] sm:$0xff] %v4186_v32 }
0x1440   :  { %2291 = vst [vmem:[#allocation1] ss:$2 sm:$0xff] %v4133_v41 }
0x1447   :  { %v4190_v35 = vld.sshfl [vmem:[#allocation1] sm:$0xff pattern:$0x75316420]  ;;  %v4192_v37 = vld.sshfl [vmem:[#allocation1 + $0x8] sm:$0xff pattern:$0x75316420] }
0x1448   :  { %5082 = vst [vmem:[#allocation47_spill] sm:$0xff] %v4190_v35 }
0x1449   :  { %5083 = vst [vmem:[#allocation48_spill] sm:$0xff] %v4192_v37 }
0x144a   :  { %2294 = vst [vmem:[#allocation1] ss:$4 sm:$0xff] %v1086_v34 }
0x1451   :  { %v4194_v38 = vld.sshfl [vmem:[#allocation1 + $0x8] sm:$0xff pattern:$0x73625140]  ;;  %v4196_v23 = vld.sshfl [vmem:[#allocation1] sm:$0xff pattern:$0x73625140] }
0x1452   :  { %5084 = vst [vmem:[#allocation49_spill] sm:$0xff] %v4194_v38 }
0x1453   :  { %5085 = vst [vmem:[#allocation50_spill] sm:$0xff] %v4196_v23 }
0x1454   :  { %2522 = vst [vmem:[#allocation1] ss:$2 sm:$0xff] %v4133_v41 }
0x145b   :  { %v4200_v42 = vld.sshfl [vmem:[#allocation1] sm:$0xff pattern:$0x75316420]  ;;  %v4202_v3 = vld.sshfl [vmem:[#allocation1 + $0x8] sm:$0xff pattern:$0x75316420] }
0x145c   :  { %5087 = vst [vmem:[#allocation51_spill] sm:$0xff] %v4200_v42 }
0x145d   :  { %5088 = vst [vmem:[#allocation52_spill] sm:$0xff] %v4202_v3 }
0x145e   :  { %2525 = vst [vmem:[#allocation1] ss:$4 sm:$0xff] %v1088_v17  ;;  %v1353_v17 = vld [vmem:[%s5091_s29] sm:$0x3] }
0x145f   :  { %1355 = vrot.lane.b32.xlu2 %v1353_v17, %s3768_s5 }
0x1465   :  { %v4213_v41 = vld.sshfl [vmem:[#allocation1] sm:$0xff pattern:$0x73625140]  ;;  %v4215_v47 = vld.sshfl [vmem:[#allocation1 + $0x8] sm:$0xff pattern:$0x73625140] }
0x1466   :  { %5089 = vst [vmem:[#allocation53_spill] sm:$0xff] %v4213_v41 }
0x1467   :  { %5090 = vst [vmem:[#allocation54_spill] sm:$0xff] %v4215_v47 }
0x146f   :  { %v983_v43 = vpop.permute.xlu1 %982 }
0x1470   :  { %v4205_v44 = vadd.f32 %v983_v43, %v4140_v46 }
0x1472   :  { %1125 = vst.msk [vmem:[#allocation3] sm:$0x3] %vm1124_vm12, %v4205_v44  ;;  %3309 = vmatmul.msk.f32.vlgmr.msrb.gmra.mxu3 %vm1136_vm13, %v4205_v44  ;;  %3311 = vmatmul.msk.f32.vlgmr.msrb.gmra.mxu2 %vm1136_vm13, %v4205_v44 }
0x1473   :  { %1461 = vmatpush.msrb.mxu2 %v4218_v48 }
0x1475   :  { %1462 = vmatpush.msrb.mxu2 %v4223_v51 }
0x1477   :  { %1463 = vmatpush.msrb.mxu2 %v4228_v52 }
0x1479   :  { %v2752_v45 = vld [vmem:[#allocation3] sm:$0x3]  ;;  %1464 = vmatpush.msrb.mxu2 %v4233_v53 }
0x147a   :  { %2772 = vst [vmem:[#allocation1] ss:$4 sm:$0xff] %v2752_v45 }
0x147b   :  { %1465 = vmatpush.msrb.mxu2 %v4236_v54 }
0x147d   :  { %1466 = vmatpush.msrb.mxu2 %v4241_v59 }
0x147f   :  { %1467 = vmatpush.msrb.mxu2 %v4252_v57 }
0x1481   :  { %1468 = vmatpush.msrb.mxu2 %v4261_v60 }
0x1483   :  { %1469 = vmatpush.msrb.mxu2 %v4270_v36 }
0x1485   :  { %1470 = vmatpush.msrb.mxu2 %v4279_v2 }
0x1487   :  { %1471 = vmatpush.msrb.mxu2 %v4288_v15 }
0x1489   :  { %1472 = vmatpush.msrb.mxu2 %v4297_v16 }
0x148b   :  { %1473 = vmatpush.msrb.mxu2 %v4306_v19 }
0x148d   :  { %1474 = vmatpush.msrb.mxu2 %v4312_v26 }
0x148f   :  { %1475 = vmatpush.msrb.mxu2 %v4319_v28 }
0x1491   :  { %1476 = vmatpush.msrb.mxu2 %v4324_v39 }
0x14b9   :  { %v1356_v24 = vpop.permute.xlu2 %1355 }
0x14f5   :  { %v1162_v33 = vpop.f32.mrf.mxu3  ;;  %v1182_v34 = vpop.f32.mrf.mxu2 }
0x14f6   :  { %v1163_v43 = vadd.f32 %v1162_v33, %v4143_v40  ;;  %v1183_v61 = vadd.f32 %v1182_v34, %v4145_v49 }
0x14f8   :  { %v1191_v45 = vand.u32 2147483647, %v1163_v43  ;;  %v1192_v12 = vand.u32 2147483647, %v1183_v61  ;;  %vm1187_vm0 = vcmp.ne.f32.partialorder %v1163_v43, %v1163_v43  ;;  %vm1188_vm2 = vcmp.ne.f32.partialorder %v1183_v61, %v1183_v61 }
0x14fa   :  { %v1193_v11 = vsub.f32 0.0, %v1191_v45  ;;  %v1194_v10 = vsub.f32 0.0, %v1192_v12 }
0x14fc   :  { %v1195_v40 = vmul.f32 1.442695, %v1193_v11  ;;  %v1197_v33 = vmul.f32 1.442695, %v1194_v10  ;;  %v1185_v11 = vmax.f32 %v1163_v43, 0.0 }
0x14fe   :  { %3505 = vpow2.f32 %v1195_v40 }
0x14ff   :  { %3507 = vpow2.f32 %v1197_v33  ;;  %v1186_v33 = vmax.f32 %v1183_v61, 0.0 }
0x1504   :  { %v3506_v49 = vpop.eup %3505 }
0x1505   :  { %v3508_v34 = vpop.eup %3507  ;;  %v1199_v17 = vadd.f32 1.0, %v3506_v49  ;;  %v1202_v9 = vmul.f32 -0.5, %v3506_v49  ;;  %v1205_v8 = vand.u32 2147483647, %v3506_v49 }
0x1506   :  { %v1208_v46 = vadd.f32 1.0, %v3508_v34  ;;  %v1211_v47 = vmul.f32 -0.5, %v3508_v34  ;;  %v1214_v6 = vand.u32 2147483647, %v3508_v34 }
0x1507   :  { %3509 = vlog2.f32 %v1199_v17  ;;  %v1203_v41 = vadd.f32 1.0, %v1202_v9  ;;  %vm1206_vm14 = vcmp.lt.f32.partialorder %v1205_v8, 0.0004427343  ;;  %v4368_v8 = vld [vmem:[%s5092_s3 + $0x20] sm:$0xff] }
0x1508   :  { %3511 = vlog2.f32 %v1208_v46  ;;  %v1212_v7 = vadd.f32 1.0, %v1211_v47  ;;  %vm1215_vm15 = vcmp.lt.f32.partialorder %v1214_v6, 0.0004427343  ;;  %v4358_v6 = vld [vmem:[%s5092_s3 + $0x30] sm:$0xff]  ;;  %v4391_v47 = vld [vmem:[%s5093_s8] ss:$0 sm:$0xff] }
0x1509   :  { %v1204_v12 = vmul.f32 %v3506_v49, %v1203_v41  ;;  %v4388_v41 = vld [vmem:[%s5092_s3] sm:$0xff] }
0x150a   :  { %v1213_v40 = vmul.f32 %v3508_v34, %v1212_v7  ;;  %v4363_v7 = vld [vmem:[%s5092_s3 + $0x28] sm:$0xff] }
0x150d   :  { %v3510_v4 = vpop.eup %3509 }
0x150e   :  { %v3512_v0 = vpop.eup %3511  ;;  %v1201_v45 = vmul.f32 0.6931472, %v3510_v4  ;;  %v4355_v4 = vld [vmem:[%s5092_s3 + $0x38] sm:$0xff] }
0x150f   :  { %v1210_v10 = vmul.f32 0.6931472, %v3512_v0  ;;  %1319 = vmatpush.msra.mxu3 %v4355_v4 }
0x1510   :  { %v1207_v23 = vsel %vm1206_vm14, %v1204_v12, %v1201_v45 }
0x1511   :  { %v1217_v38 = vadd.f32 %v1207_v23, %v1185_v11  ;;  %v1216_v3 = vsel %vm1215_vm15, %v1213_v40, %v1210_v10  ;;  %1320 = vmatpush.msra.mxu3 %v4358_v6  ;;  %v4378_v23 = vld [vmem:[%s5092_s3 + $0x10] sm:$0xff] }
0x1512   :  { %v1218_v17 = vadd.f32 %v1216_v3, %v1186_v33  ;;  %v4383_v3 = vld [vmem:[%s5092_s3 + $0x8] sm:$0xff] }
0x1513   :  { %v1219_v9 = vsel %vm1187_vm0, %v1163_v43, %v1217_v38  ;;  %1321 = vmatpush.msra.mxu3 %v4363_v7  ;;  %v4373_v38 = vld [vmem:[%s5092_s3 + $0x18] sm:$0xff] }
0x1514   :  { %1244 = vmatmul.f32.vlgmr.msrb.gmra.mxu0 %v1219_v9  ;;  %v1220_v46 = vsel %vm1188_vm2, %v1183_v61, %v1218_v17 }
0x1515   :  { %3312 = vmatmul.msk.f32.vlgmr.msra.gmra.mxu1 %vm1224_vm1, %v1220_v46  ;;  %1692 = vmatpush.msrb.mxu0 %v4218_v48 }
0x1516   :  { %1549 = vmatpush.msra.mxu1 %v4355_v4  ;;  %1322 = vmatpush.msra.mxu3 %v4368_v8 }
0x1517   :  { %1693 = vmatpush.msrb.mxu0 %v4223_v51 }
0x1518   :  { %1550 = vmatpush.msra.mxu1 %v4358_v6  ;;  %1323 = vmatpush.msra.mxu3 %v4373_v38 }
0x1519   :  { %1694 = vmatpush.msrb.mxu0 %v4228_v52 }
0x151a   :  { %1551 = vmatpush.msra.mxu1 %v4363_v7  ;;  %1324 = vmatpush.msra.mxu3 %v4378_v23 }
0x151b   :  { %1695 = vmatpush.msrb.mxu0 %v4233_v53 }
0x151c   :  { %1552 = vmatpush.msra.mxu1 %v4368_v8  ;;  %1325 = vmatpush.msra.mxu3 %v4383_v3 }
0x151d   :  { %1696 = vmatpush.msrb.mxu0 %v4236_v54 }
0x151e   :  { %1553 = vmatpush.msra.mxu1 %v4373_v38  ;;  %1326 = vmatpush.msra.mxu3 %v4388_v41 }
0x151f   :  { %1697 = vmatpush.msrb.mxu0 %v4241_v59 }
0x1520   :  { %1554 = vmatpush.msra.mxu1 %v4378_v23  ;;  %1489 = vmatpush.msrb.mxu3 %v4244_v55 }
0x1521   :  { %1698 = vmatpush.msrb.mxu0 %v4252_v57 }
0x1522   :  { %1555 = vmatpush.msra.mxu1 %v4383_v3  ;;  %1490 = vmatpush.msrb.mxu3 %v4247_v56 }
0x1523   :  { %1699 = vmatpush.msrb.mxu0 %v4261_v60 }
0x1524   :  { %1556 = vmatpush.msra.mxu1 %v4388_v41  ;;  %1491 = vmatpush.msrb.mxu3 %v4255_v58 }
0x1525   :  { %1700 = vmatpush.msrb.mxu0 %v4270_v36 }
0x1526   :  { %1492 = vmatpush.msrb.mxu3 %v4264_v20 }
0x1527   :  { %1701 = vmatpush.msrb.mxu0 %v4279_v2 }
0x1528   :  { %1493 = vmatpush.msrb.mxu3 %v4273_v1 }
0x1529   :  { %1702 = vmatpush.msrb.mxu0 %v4288_v15 }
0x152a   :  { %1494 = vmatpush.msrb.mxu3 %v4282_v5 }
0x152b   :  { %1703 = vmatpush.msrb.mxu0 %v4297_v16 }
0x152c   :  { %1495 = vmatpush.msrb.mxu3 %v4291_v27 }
0x152d   :  { %1704 = vmatpush.msrb.mxu0 %v4306_v19 }
0x152e   :  { %1496 = vmatpush.msrb.mxu3 %v4300_v18 }
0x152f   :  { %1705 = vmatpush.msrb.mxu0 %v4312_v26 }
0x1531   :  { %1706 = vmatpush.msrb.mxu0 %v4319_v28 }
0x1533   :  { %1707 = vmatpush.msrb.mxu0 %v4324_v39 }
0x1591   :  { %v1245_v43 = vpop.f32.mrf.mxu0 }
0x1592   :  { %v1246_v61 = vadd.f32 %v4391_v47, %v1245_v43  ;;  %v1265_v49 = vpop.f32.mrf.mxu1 }
0x1594   :  { %v1266_v34 = vadd.f32 %v1265_v49, %v1246_v61 }
0x1596   :  { %v1271_v0 = vand.u32 2147483647, %v1266_v34  ;;  %v3313_v45 = vmul.f32 -1.442695, %v1266_v34  ;;  %vm1269_vm10 = vcmp.ne.f32.partialorder %v1266_v34, %v1266_v34 }
0x1598   :  { %v1272_v12 = vsub.f32 0.0, %v1271_v0  ;;  %3513 = vpow2.f32 %v3313_v45 }
0x159a   :  { %v1273_v11 = vmul.f32 1.442695, %v1272_v12 }
0x159c   :  { %3515 = vpow2.f32 %v1273_v11 }
0x159e   :  { %v3514_v10 = vpop.eup %3513 }
0x159f   :  { %v1289_v40 = vadd.f32 1.0, %v3514_v10  ;;  %v1268_v10 = vmax.f32 %v1266_v34, 0.0 }
0x15a1   :  { %3517 = vrcp.f32 %v1289_v40  ;;  %v1299_v12 = vand.u32 2147483647, %v1289_v40  ;;  %v1301_v32 = vand.u32 2147483648, %v1289_v40  ;;  %vm1295_vm5 = vweird.f32 %v1289_v40 }
0x15a2   :  { %v3516_v33 = vpop.eup %3515 }
0x15a3   :  { %v1275_v17 = vadd.f32 1.0, %v3516_v33  ;;  %v1278_v9 = vmul.f32 -0.5, %v3516_v33  ;;  %v1281_v49 = vand.u32 2147483647, %v3516_v33  ;;  %vm1300_vm9 = vcmp.eq.f32.partialorder %v1299_v12, 8.507059e+37 }
0x15a5   :  { %3519 = vlog2.f32 %v1275_v17  ;;  %v1279_v61 = vadd.f32 1.0, %v1278_v9  ;;  %vm1282_vm4 = vcmp.lt.f32.partialorder %v1281_v49, 0.0004427343  ;;  %v1302_v17 = vor.u32 1.1754944e-38, %v1301_v32 }
0x15a6   :  { %v1350_v32 = vstv %s4413_s19 }
0x15a7   :  { %v3518_v46 = vpop.eup %3517  ;;  %v1280_v42 = vmul.f32 %v3516_v33, %v1279_v61 }
0x15a8   :  { %v1291_v43 = vmul.f32 %v3518_v46, %v1289_v40  ;;  %vm1296_vm3 = vweird.f32 %v3518_v46 }
0x15a9   :  { %vm1297_vm7 = vmor %vm1295_vm5, %vm1296_vm3 }
0x15aa   :  { %v1292_v0 = vsub.f32 1.0, %v1291_v43 }
0x15ab   :  { %v3520_v45 = vpop.eup %3519 }
0x15ac   :  { %v1293_v11 = vmul.f32 %v3518_v46, %v1292_v0  ;;  %v1277_v31 = vmul.f32 0.6931472, %v3520_v45 }
0x15ae   :  { %v1294_v37 = vadd.f32 %v3518_v46, %v1293_v11  ;;  %v1283_v25 = vsel %vm1282_vm4, %v1280_v42, %v1277_v31  ;;  %v4416_v31 = vld [vmem:[%s5094_s14] ss:$0 sm:$0xff] }
0x15af   :  { %v1284_v35 = vadd.f32 %v1283_v25, %v1268_v10 }
0x15b0   :  { %v1298_v9 = vsel %vm1297_vm7, %v3518_v46, %v1294_v37  ;;  %v3323_v46 = vld [vmem:[%s5091_s29 + $0x2] sm:$0x3] }
0x15b1   :  { %v4406_v43 = vsel %vm1300_vm9, %v1302_v17, %v1298_v9  ;;  %v1285_v29 = vsel %vm1269_vm10, %v1266_v34, %v1284_v35  ;;  %1586 = vrot.lane.b32.xlu1 %v3323_v46, %s3768_s5 }
0x15b2   :  { %v1358_v0 = vmul.f32 %v1356_v24, %v4406_v43  ;;  %3314 = vmatmul.msk.f32.vlgmr.msra.gmra.mxu3 %vm1224_vm1, %v1285_v29 }
0x15b3   :  { %3327 = vmatpush.msk.msra.mxu3 %vm1140_vm8, %v4160_v63 }
0x15b4   :  { %1360 = vrot.lane.b32.xlu0 %v1358_v0, %s3768_s5 }
0x1626   :  { %v1361_v29 = vpop.permute.xlu0 %1360 }
0x1635   :  { %v1328_v25 = vpop.f32.mrf.mxu3 }
0x1636   :  { %v4420_v37 = vadd.f32 %v4416_v31, %v1328_v25 }
0x1638   :  { %v1351_v35 = vmul.f32 %v1350_v32, %v4420_v37 }
0x163a   :  { %v1352_v24 = vadd.f32 %v1351_v35, %v4205_v44 }
0x163c   :  { %v4424_v42 = vadd.f32 %v1361_v29, %v1352_v24 }
0x163e   :  { %1365 = vst.msk [vmem:[#allocation3 + $0x2] sm:$0x3] %vm1124_vm12, %v4424_v42  ;;  %3317 = vmatmul.msk.f32.vlgmr.msra.gmra.mxu2 %vm1136_vm13, %v4424_v42  ;;  %3319 = vmatmul.msk.f32.vlgmr.msrb.gmra.mxu1 %vm1136_vm13, %v4424_v42 }
0x163f   :  { %1720 = vmatpush.msrb.mxu1 %v4244_v55  ;;  %3334 = vmatpush.msk.msra.mxu2 %vm1140_vm8, %v4170_v21 }
0x1641   :  { %1721 = vmatpush.msrb.mxu1 %v4247_v56 }
0x1643   :  { %1722 = vmatpush.msrb.mxu1 %v4255_v58 }
0x1645   :  { %v2753_v63 = vld [vmem:[#allocation3 + $0x2] sm:$0x3]  ;;  %1723 = vmatpush.msrb.mxu1 %v4264_v20 }
0x1646   :  { %2774 = vst [vmem:[#allocation1 + $0x1] ss:$4 sm:$0xff] %v2753_v63 }
0x1647   :  { %1724 = vmatpush.msrb.mxu1 %v4273_v1 }
0x1649   :  { %1725 = vmatpush.msrb.mxu1 %v4282_v5 }
0x164b   :  { %1726 = vmatpush.msrb.mxu1 %v4291_v27 }
0x164d   :  { %1727 = vmatpush.msrb.mxu1 %v4300_v18 }
0x16bb   :  { %v1419_v34 = vpop.f32.mrf.mxu1 }
0x16bc   :  { %v1420_v40 = vadd.f32 %v1419_v34, %v4154_v62 }
0x16be   :  { %v1429_v21 = vand.u32 2147483647, %v1420_v40  ;;  %vm1425_vm14 = vcmp.ne.f32.partialorder %v1420_v40, %v1420_v40 }
0x16c0   :  { %v1431_v33 = vsub.f32 0.0, %v1429_v21  ;;  %v1423_v21 = vmax.f32 %v1420_v40, 0.0 }
0x16c1   :  { %v1399_v61 = vpop.f32.mrf.mxu2 }
0x16c2   :  { %v1434_v49 = vmul.f32 1.442695, %v1431_v33  ;;  %v1400_v45 = vadd.f32 %v1399_v61, %v4156_v50 }
0x16c4   :  { %3521 = vpow2.f32 %v1434_v49  ;;  %v1428_v12 = vand.u32 2147483647, %v1400_v45  ;;  %vm1424_vm0 = vcmp.ne.f32.partialorder %v1400_v45, %v1400_v45 }
0x16c6   :  { %v1430_v11 = vsub.f32 0.0, %v1428_v12 }
0x16c8   :  { %v1432_v10 = vmul.f32 1.442695, %v1430_v11 }
0x16ca   :  { %v3522_v17 = vpop.eup %3521  ;;  %3523 = vpow2.f32 %v1432_v10 }
0x16cb   :  { %v1445_v9 = vadd.f32 1.0, %v3522_v17  ;;  %v1448_v0 = vmul.f32 -0.5, %v3522_v17  ;;  %v1451_v32 = vand.u32 2147483647, %v3522_v17 }
0x16cd   :  { %3525 = vlog2.f32 %v1445_v9  ;;  %v1449_v62 = vadd.f32 1.0, %v1448_v0  ;;  %vm1452_vm11 = vcmp.lt.f32.partialorder %v1451_v32, 0.0004427343  ;;  %v1422_v9 = vmax.f32 %v1400_v45, 0.0 }
0x16cf   :  { %v1450_v34 = vmul.f32 %v3522_v17, %v1449_v62 }
0x16d0   :  { %v3524_v25 = vpop.eup %3523 }
0x16d1   :  { %v1436_v35 = vadd.f32 1.0, %v3524_v25  ;;  %v1439_v24 = vmul.f32 -0.5, %v3524_v25  ;;  %v1442_v61 = vand.u32 2147483647, %v3524_v25 }
0x16d3   :  { %v3526_v29 = vpop.eup %3525  ;;  %3527 = vlog2.f32 %v1436_v35  ;;  %v1440_v33 = vadd.f32 1.0, %v1439_v24  ;;  %vm1443_vm15 = vcmp.lt.f32.partialorder %v1442_v61, 0.0004427343 }
0x16d4   :  { %v1447_v63 = vmul.f32 0.6931472, %v3526_v29 }
0x16d5   :  { %v1441_v10 = vmul.f32 %v3524_v25, %v1440_v33 }
0x16d6   :  { %v1453_v50 = vsel %vm1452_vm11, %v1450_v34, %v1447_v63 }
0x16d7   :  { %v1455_v46 = vadd.f32 %v1453_v50, %v1423_v21 }
0x16d9   :  { %v3528_v49 = vpop.eup %3527  ;;  %v1457_v12 = vsel %vm1425_vm14, %v1420_v40, %v1455_v46 }
0x16da   :  { %3320 = vmatmul.msk.f32.vlgmr.msrb.gmra.mxu3 %vm1224_vm1, %v1457_v12  ;;  %v1438_v11 = vmul.f32 0.6931472, %v3528_v49 }
0x16db   :  { %1780 = vmatpush.msrb.mxu3 %v4355_v4 }
0x16dc   :  { %v1444_v0 = vsel %vm1443_vm15, %v1441_v10, %v1438_v11 }
0x16dd   :  { %v1454_v35 = vadd.f32 %v1444_v0, %v1422_v9  ;;  %1781 = vmatpush.msrb.mxu3 %v4358_v6 }
0x16df   :  { %v1456_v17 = vsel %vm1424_vm0, %v1400_v45, %v1454_v35  ;;  %1782 = vmatpush.msrb.mxu3 %v4363_v7 }
0x16e0   :  { %1477 = vmatmul.f32.vlgmr.msrb.gmra.mxu2 %v1456_v17 }
0x16e1   :  { %1783 = vmatpush.msrb.mxu3 %v4368_v8  ;;  %1923 = vmatpush.msrb.mxu2 %v4218_v48 }
0x16e3   :  { %1784 = vmatpush.msrb.mxu3 %v4373_v38  ;;  %1924 = vmatpush.msrb.mxu2 %v4223_v51 }
0x16e5   :  { %1785 = vmatpush.msrb.mxu3 %v4378_v23  ;;  %1925 = vmatpush.msrb.mxu2 %v4228_v52 }
0x16e7   :  { %1786 = vmatpush.msrb.mxu3 %v4383_v3  ;;  %1926 = vmatpush.msrb.mxu2 %v4233_v53 }
0x16e9   :  { %1787 = vmatpush.msrb.mxu3 %v4388_v41  ;;  %1927 = vmatpush.msrb.mxu2 %v4236_v54 }
0x16eb   :  { %1928 = vmatpush.msrb.mxu2 %v4241_v59 }
0x16ed   :  { %1929 = vmatpush.msrb.mxu2 %v4252_v57 }
0x16ef   :  { %1930 = vmatpush.msrb.mxu2 %v4261_v60 }
0x16f1   :  { %1931 = vmatpush.msrb.mxu2 %v4270_v36 }
0x16f3   :  { %1932 = vmatpush.msrb.mxu2 %v4279_v2 }
0x16f5   :  { %1933 = vmatpush.msrb.mxu2 %v4288_v15 }
0x16f7   :  { %1934 = vmatpush.msrb.mxu2 %v4297_v16 }
0x16f9   :  { %1935 = vmatpush.msrb.mxu2 %v4306_v19 }
0x16fb   :  { %1936 = vmatpush.msrb.mxu2 %v4312_v26 }
0x16fd   :  { %1937 = vmatpush.msrb.mxu2 %v4319_v28 }
0x16ff   :  { %1938 = vmatpush.msrb.mxu2 %v4324_v39 }
0x175d   :  { %v1498_v25 = vpop.f32.mrf.mxu3 }
0x1763   :  { %v1478_v40 = vpop.f32.mrf.mxu2 }
0x1764   :  { %v1479_v45 = vadd.f32 %v4391_v47, %v1478_v40 }
0x1766   :  { %v1499_v62 = vadd.f32 %v1498_v25, %v1479_v45 }
0x1768   :  { %v1504_v32 = vand.u32 2147483647, %v1499_v62  ;;  %v3321_v24 = vmul.f32 -1.442695, %v1499_v62  ;;  %v1501_v25 = vmax.f32 %v1499_v62, 0.0  ;;  %vm1502_vm9 = vcmp.ne.f32.partialorder %v1499_v62, %v1499_v62 }
0x176a   :  { %v1505_v29 = vsub.f32 0.0, %v1504_v32  ;;  %3529 = vpow2.f32 %v3321_v24 }
0x176c   :  { %v1506_v63 = vmul.f32 1.442695, %v1505_v29  ;;  %v1587_v29 = vpop.permute.xlu1 %1586 }
0x176e   :  { %3531 = vpow2.f32 %v1506_v63 }
0x1770   :  { %v3530_v34 = vpop.eup %3529 }
0x1771   :  { %v1522_v21 = vadd.f32 1.0, %v3530_v34 }
0x1773   :  { %3533 = vrcp.f32 %v1522_v21  ;;  %v1532_v0 = vand.u32 2147483647, %v1522_v21  ;;  %v1534_v35 = vand.u32 2147483648, %v1522_v21  ;;  %vm1528_vm4 = vweird.f32 %v1522_v21 }
0x1774   :  { %v3532_v50 = vpop.eup %3531 }
0x1775   :  { %v1508_v33 = vadd.f32 1.0, %v3532_v50  ;;  %v1511_v46 = vmul.f32 -0.5, %v3532_v50  ;;  %v1514_v11 = vand.u32 2147483647, %v3532_v50  ;;  %v1535_v63 = vor.u32 1.1754944e-38, %v1534_v35 }
0x1776   :  { %vm1533_vm7 = vcmp.eq.f32.partialorder %v1532_v0, 8.507059e+37 }
0x1777   :  { %3535 = vlog2.f32 %v1508_v33  ;;  %v1512_v12 = vadd.f32 1.0, %v1511_v46  ;;  %vm1515_vm3 = vcmp.lt.f32.partialorder %v1514_v11, 0.0004427343 }
0x1779   :  { %v3534_v61 = vpop.eup %3533  ;;  %v1513_v45 = vmul.f32 %v3532_v50, %v1512_v12  ;;  %v1580_v50 = vstv %s4479_s24 }
0x177a   :  { %v1524_v49 = vmul.f32 %v3534_v61, %v1522_v21  ;;  %vm1529_vm2 = vweird.f32 %v3534_v61 }
0x177b   :  { %vm1530_vm5 = vmor %vm1528_vm4, %vm1529_vm2 }
0x177c   :  { %v1525_v10 = vsub.f32 1.0, %v1524_v49 }
0x177d   :  { %v3536_v9 = vpop.eup %3535 }
0x177e   :  { %v1526_v17 = vmul.f32 %v3534_v61, %v1525_v10  ;;  %v1510_v40 = vmul.f32 0.6931472, %v3536_v9 }
0x1780   :  { %v1527_v32 = vadd.f32 %v3534_v61, %v1526_v17  ;;  %v1516_v24 = vsel %vm1515_vm3, %v1513_v45, %v1510_v40  ;;  %v3332_v17 = vld [vmem:[%s5091_s29 + $0x4] sm:$0x3] }
0x1781   :  { %v1517_v34 = vadd.f32 %v1516_v24, %v1501_v25  ;;  %1817 = vrot.lane.b32.xlu0 %v3332_v17, %s3768_s5 }
0x1782   :  { %v1531_v33 = vsel %vm1530_vm5, %v3534_v61, %v1527_v32 }
0x1783   :  { %v4472_v46 = vsel %vm1533_vm7, %v1535_v63, %v1531_v33  ;;  %v1518_v49 = vsel %vm1502_vm9, %v1499_v62, %v1517_v34 }
0x1784   :  { %v1589_v10 = vmul.f32 %v1587_v29, %v4472_v46  ;;  %3322 = vmatmul.msk.f32.vlgmr.msra.gmra.mxu1 %vm1224_vm1, %v1518_v49 }
0x1785   :  { %3336 = vmatpush.msk.msra.mxu1 %vm1140_vm8, %v4172_v22 }
0x1786   :  { %1591 = vrot.lane.b32.xlu2 %v1589_v10, %s3768_s5 }
0x17e0   :  { %v1592_v11 = vpop.permute.xlu2 %1591 }
0x1801   :  { %v1558_v21 = vpop.f32.mrf.mxu1 }
0x1802   :  { %v4483_v61 = vadd.f32 %v4416_v31, %v1558_v21 }
0x1804   :  { %v1581_v12 = vmul.f32 %v1580_v50, %v4483_v61 }
0x1806   :  { %v1582_v62 = vadd.f32 %v1581_v12, %v4424_v42 }
0x1808   :  { %v4487_v9 = vadd.f32 %v1592_v11, %v1582_v62 }
0x180a   :  { %1596 = vst.msk [vmem:[#allocation3 + $0x4] sm:$0x3] %vm1124_vm12, %v4487_v9  ;;  %3326 = vmatmul.msk.f32.vlgmr.msra.gmra.mxu0 %vm1136_vm13, %v4487_v9  ;;  %3328 = vmatmul.msk.f32.vlgmr.msra.gmra.mxu3 %vm1136_vm13, %v4487_v9 }
0x180b   :  { %1951 = vmatpush.msra.mxu3 %v4244_v55  ;;  %3343 = vmatpush.msk.msra.mxu0 %vm1140_vm8, %v4182_v30 }
0x180d   :  { %1952 = vmatpush.msra.mxu3 %v4247_v56 }
0x180f   :  { %1953 = vmatpush.msra.mxu3 %v4255_v58 }
0x1811   :  { %v2754_v22 = vld [vmem:[#allocation3 + $0x4] sm:$0x3]  ;;  %1954 = vmatpush.msra.mxu3 %v4264_v20 }
0x1812   :  { %2776 = vst [vmem:[#allocation1 + $0x2] ss:$4 sm:$0xff] %v2754_v22 }
0x1813   :  { %1955 = vmatpush.msra.mxu3 %v4273_v1 }
0x1815   :  { %1956 = vmatpush.msra.mxu3 %v4282_v5 }
0x1817   :  { %1957 = vmatpush.msra.mxu3 %v4291_v27 }
0x1819   :  { %1958 = vmatpush.msra.mxu3 %v4300_v18 }
0x1887   :  { %v1630_v42 = vpop.f32.mrf.mxu0 }
0x1888   :  { %v1631_v0 = vadd.f32 %v1630_v42, %v4164_v13 }
0x188a   :  { %v1659_v30 = vand.u32 2147483647, %v1631_v0  ;;  %v1653_v22 = vmax.f32 %v1631_v0, 0.0  ;;  %vm1655_vm11 = vcmp.ne.f32.partialorder %v1631_v0, %v1631_v0 }
0x188c   :  { %v1661_v35 = vsub.f32 0.0, %v1659_v30 }
0x188d   :  { %v1650_v40 = vpop.f32.mrf.mxu3 }
0x188e   :  { %v1663_v45 = vmul.f32 1.442695, %v1661_v35  ;;  %v1651_v25 = vadd.f32 %v1650_v40, %v4166_v14 }
0x1890   :  { %3537 = vpow2.f32 %v1663_v45  ;;  %v1660_v32 = vand.u32 2147483647, %v1651_v25  ;;  %vm1656_vm15 = vcmp.ne.f32.partialorder %v1651_v25, %v1651_v25 }
0x1892   :  { %v1662_v24 = vsub.f32 0.0, %v1660_v32 }
0x1894   :  { %v1665_v29 = vmul.f32 1.442695, %v1662_v24  ;;  %v1654_v24 = vmax.f32 %v1651_v25, 0.0 }
0x1896   :  { %v3538_v63 = vpop.eup %3537  ;;  %3539 = vpow2.f32 %v1665_v29 }
0x1897   :  { %v1667_v34 = vadd.f32 1.0, %v3538_v63  ;;  %v1670_v33 = vmul.f32 -0.5, %v3538_v63  ;;  %v1673_v10 = vand.u32 2147483647, %v3538_v63 }
0x1899   :  { %3541 = vlog2.f32 %v1667_v34  ;;  %v1671_v13 = vadd.f32 1.0, %v1670_v33  ;;  %vm1674_vm10 = vcmp.lt.f32.partialorder %v1673_v10, 0.0004427343 }
0x189b   :  { %v1672_v11 = vmul.f32 %v3538_v63, %v1671_v13 }
0x189c   :  { %v3540_v49 = vpop.eup %3539 }
0x189d   :  { %v1676_v21 = vadd.f32 1.0, %v3540_v49  ;;  %v1679_v50 = vmul.f32 -0.5, %v3540_v49  ;;  %v1682_v35 = vand.u32 2147483647, %v3540_v49 }
0x189f   :  { %v3542_v12 = vpop.eup %3541  ;;  %3543 = vlog2.f32 %v1676_v21  ;;  %v1680_v42 = vadd.f32 1.0, %v1679_v50  ;;  %vm1683_vm14 = vcmp.lt.f32.partialorder %v1682_v35, 0.0004427343 }
0x18a0   :  { %v1669_v62 = vmul.f32 0.6931472, %v3542_v12 }
0x18a1   :  { %v1681_v32 = vmul.f32 %v3540_v49, %v1680_v42 }
0x18a2   :  { %v1675_v14 = vsel %vm1674_vm10, %v1672_v11, %v1669_v62 }
0x18a3   :  { %v1685_v30 = vadd.f32 %v1675_v14, %v1653_v22  ;;  %v1818_v14 = vpop.permute.xlu0 %1817 }
0x18a5   :  { %v3544_v17 = vpop.eup %3543  ;;  %v1687_v40 = vsel %vm1655_vm11, %v1631_v0, %v1685_v30 }
0x18a6   :  { %1708 = vmatmul.f32.vlgmr.msrb.gmra.mxu0 %v1687_v40  ;;  %v1678_v45 = vmul.f32 0.6931472, %v3544_v17 }
0x18a7   :  { %2154 = vmatpush.msrb.mxu0 %v4218_v48 }
0x18a8   :  { %v1684_v29 = vsel %vm1683_vm14, %v1681_v32, %v1678_v45  ;;  %v5095_v45 = vld [vmem:[#allocation44_spill] sm:$0xff] }
0x18a9   :  { %v1686_v34 = vadd.f32 %v1684_v29, %v1654_v24  ;;  %2155 = vmatpush.msrb.mxu0 %v4223_v51  ;;  %v1811_v24 = vstv %s4542_s30 }
0x18ab   :  { %v1688_v63 = vsel %vm1656_vm15, %v1651_v25, %v1686_v34  ;;  %2156 = vmatpush.msrb.mxu0 %v4228_v52 }
0x18ac   :  { %3329 = vmatmul.msk.f32.vlgmr.msrb.gmra.mxu1 %vm1224_vm1, %v1688_v63 }
0x18ad   :  { %2011 = vmatpush.msrb.mxu1 %v4355_v4  ;;  %2157 = vmatpush.msrb.mxu0 %v4233_v53 }
0x18af   :  { %2012 = vmatpush.msrb.mxu1 %v4358_v6  ;;  %2158 = vmatpush.msrb.mxu0 %v4236_v54 }
0x18b1   :  { %2013 = vmatpush.msrb.mxu1 %v4363_v7  ;;  %2159 = vmatpush.msrb.mxu0 %v4241_v59 }
0x18b3   :  { %2014 = vmatpush.msrb.mxu1 %v4368_v8  ;;  %2160 = vmatpush.msrb.mxu0 %v4252_v57 }
0x18b5   :  { %2015 = vmatpush.msrb.mxu1 %v4373_v38  ;;  %2161 = vmatpush.msrb.mxu0 %v4261_v60 }
0x18b7   :  { %2016 = vmatpush.msrb.mxu1 %v4378_v23  ;;  %2162 = vmatpush.msrb.mxu0 %v4270_v36 }
0x18b9   :  { %2017 = vmatpush.msrb.mxu1 %v4383_v3  ;;  %2163 = vmatpush.msrb.mxu0 %v4279_v2 }
0x18bb   :  { %2018 = vmatpush.msrb.mxu1 %v4388_v41  ;;  %2164 = vmatpush.msrb.mxu0 %v4288_v15 }
0x18bd   :  { %2165 = vmatpush.msrb.mxu0 %v4297_v16 }
0x18bf   :  { %2166 = vmatpush.msrb.mxu0 %v4306_v19 }
0x18c1   :  { %2167 = vmatpush.msrb.mxu0 %v4312_v26 }
0x18c3   :  { %2168 = vmatpush.msrb.mxu0 %v4319_v28 }
0x18c5   :  { %2169 = vmatpush.msrb.mxu0 %v4324_v39 }
0x1923   :  { %v1709_v48 = vpop.f32.mrf.mxu0 }
0x1924   :  { %v1710_v51 = vadd.f32 %v4391_v47, %v1709_v48 }
0x1929   :  { %v1729_v52 = vpop.f32.mrf.mxu1 }
0x192a   :  { %v1730_v53 = vadd.f32 %v1729_v52, %v1710_v51  ;;  %v5096_v52 = vld [vmem:[#allocation47_spill] sm:$0xff] }
0x192c   :  { %v1735_v54 = vand.u32 2147483647, %v1730_v53  ;;  %v3330_v59 = vmul.f32 -1.442695, %v1730_v53  ;;  %v1732_v12 = vmax.f32 %v1730_v53, 0.0  ;;  %vm1733_vm7 = vcmp.ne.f32.partialorder %v1730_v53, %v1730_v53 }
0x192e   :  { %v1736_v57 = vsub.f32 0.0, %v1735_v54  ;;  %3545 = vpow2.f32 %v3330_v59 }
0x1930   :  { %v1737_v60 = vmul.f32 1.442695, %v1736_v57 }
0x1932   :  { %3547 = vpow2.f32 %v1737_v60 }
0x1934   :  { %v3546_v36 = vpop.eup %3545 }
0x1935   :  { %v1753_v2 = vadd.f32 1.0, %v3546_v36 }
0x1937   :  { %3549 = vrcp.f32 %v1753_v2  ;;  %v1763_v49 = vand.u32 2147483647, %v1753_v2  ;;  %v1765_v13 = vand.u32 2147483648, %v1753_v2  ;;  %vm1759_vm3 = vweird.f32 %v1753_v2 }
0x1938   :  { %v3548_v15 = vpop.eup %3547 }
0x1939   :  { %v1739_v16 = vadd.f32 1.0, %v3548_v15  ;;  %v1742_v19 = vmul.f32 -0.5, %v3548_v15  ;;  %v1745_v0 = vand.u32 2147483647, %v3548_v15  ;;  %v1766_v22 = vor.u32 1.1754944e-38, %v1765_v13 }
0x193a   :  { %vm1764_vm5 = vcmp.eq.f32.partialorder %v1763_v49, 8.507059e+37 }
0x193b   :  { %3551 = vlog2.f32 %v1739_v16  ;;  %v1743_v39 = vadd.f32 1.0, %v1742_v19  ;;  %vm1746_vm2 = vcmp.lt.f32.partialorder %v1745_v0, 0.0004427343 }
0x193d   :  { %v3550_v26 = vpop.eup %3549  ;;  %v1744_v50 = vmul.f32 %v3548_v15, %v1743_v39 }
0x193e   :  { %v1755_v28 = vmul.f32 %v3550_v26, %v1753_v2  ;;  %vm1760_vm0 = vweird.f32 %v3550_v26 }
0x193f   :  { %vm1761_vm4 = vmor %vm1759_vm3, %vm1760_vm0 }
0x1940   :  { %v1756_v25 = vsub.f32 1.0, %v1755_v28 }
0x1941   :  { %v3552_v33 = vpop.eup %3551 }
0x1942   :  { %v1757_v10 = vmul.f32 %v3550_v26, %v1756_v25  ;;  %v1741_v21 = vmul.f32 0.6931472, %v3552_v33 }
0x1944   :  { %v1758_v62 = vadd.f32 %v3550_v26, %v1757_v10  ;;  %v1747_v11 = vsel %vm1746_vm2, %v1744_v50, %v1741_v21 }
0x1945   :  { %v1748_v42 = vadd.f32 %v1747_v11, %v1732_v12 }
0x1946   :  { %v1762_v30 = vsel %vm1761_vm4, %v3550_v26, %v1758_v62 }
0x1947   :  { %v4535_v35 = vsel %vm1764_vm5, %v1766_v22, %v1762_v30  ;;  %v1749_v17 = vsel %vm1733_vm7, %v1730_v53, %v1748_v42  ;;  %v5097_v53 = vld [vmem:[#allocation42_spill] sm:$0xff] }
0x1948   :  { %v1820_v40 = vmul.f32 %v1818_v14, %v4535_v35  ;;  %3331 = vmatmul.msk.f32.vlgmr.msrb.gmra.mxu3 %vm1224_vm1, %v1749_v17 }
0x1949   :  { %3345 = vmatpush.msk.msrb.mxu3 %vm1140_vm8, %v5095_v45  ;;  %v4618_v45 = vld [vmem:[%s5086_s25 + $0x30] sm:$0xff] }
0x194a   :  { %1822 = vrot.lane.b32.xlu1 %v1820_v40, %s3768_s5  ;;  %v4578_v40 = vld [vmem:[%s5086_s25 + $0x78] sm:$0xff] }
0x19bc   :  { %v1823_v48 = vpop.permute.xlu1 %1822 }
0x19cb   :  { %v1789_v32 = vpop.f32.mrf.mxu3 }
0x19cc   :  { %v4546_v29 = vadd.f32 %v4416_v31, %v1789_v32  ;;  %v4622_v32 = vld [vmem:[%s5086_s25 + $0x28] sm:$0xff] }
0x19ce   :  { %v1812_v34 = vmul.f32 %v1811_v24, %v4546_v29  ;;  %v4626_v24 = vld [vmem:[%s5086_s25 + $0x20] sm:$0xff] }
0x19d0   :  { %v1813_v63 = vadd.f32 %v1812_v34, %v4487_v9  ;;  %v4630_v34 = vld [vmem:[%s5086_s25 + $0x18] sm:$0xff] }
0x19d2   :  { %v4550_v51 = vadd.f32 %v1823_v48, %v1813_v63  ;;  %v4634_v63 = vld [vmem:[%s5086_s25 + $0x10] sm:$0xff]  ;;  %v4638_v48 = vld [vmem:[%s5086_s25 + $0x8] sm:$0xff] }
0x19d4   :  { %1827 = vst.msk [vmem:[#allocation3 + $0x6] sm:$0x3] %vm1124_vm12, %v4550_v51  ;;  %3335 = vmatmul.msk.f32.vlgmr.msra.gmra.mxu2 %vm1136_vm13, %v4550_v51  ;;  %3337 = vmatmul.msk.f32.vlgmr.msra.gmra.mxu1 %vm1136_vm13, %v4550_v51 }
0x19d5   :  { %2182 = vmatpush.msra.mxu1 %v4244_v55  ;;  %3352 = vmatpush.msk.msra.mxu2 %vm1140_vm8, %v5096_v52  ;;  %v4642_v52 = vld [vmem:[%s5086_s25] sm:$0xff] }
0x19d7   :  { %2183 = vmatpush.msra.mxu1 %v4247_v56  ;;  %v3341_v56 = vld [vmem:[%s5091_s29 + $0x6] sm:$0x3] }
0x19d8   :  { %2048 = vrot.lane.b32.xlu2 %v3341_v56, %s3768_s5 }
0x19d9   :  { %2184 = vmatpush.msra.mxu1 %v4255_v58 }
0x19db   :  { %v2755_v9 = vld [vmem:[#allocation3 + $0x6] sm:$0x3]  ;;  %2185 = vmatpush.msra.mxu1 %v4264_v20 }
0x19dc   :  { %2778 = vst [vmem:[#allocation1 + $0x3] ss:$4 sm:$0xff] %v2755_v9  ;;  %v5098_v20 = vld [vmem:[#allocation43_spill] sm:$0xff] }
0x19dd   :  { %2186 = vmatpush.msra.mxu1 %v4273_v1 }
0x19df   :  { %2187 = vmatpush.msra.mxu1 %v4282_v5 }
0x19e1   :  { %2188 = vmatpush.msra.mxu1 %v4291_v27 }
0x19e3   :  { %2189 = vmatpush.msra.mxu1 %v4300_v18 }
0x1a51   :  { %v1881_v55 = vpop.f32.mrf.mxu1 }
0x1a52   :  { %v1882_v54 = vadd.f32 %v1881_v55, %v5097_v53 }
0x1a54   :  { %v1891_v59 = vand.u32 2147483647, %v1882_v54  ;;  %v1885_v49 = vmax.f32 %v1882_v54, 0.0  ;;  %vm1887_vm10 = vcmp.ne.f32.partialorder %v1882_v54, %v1882_v54 }
0x1a56   :  { %v1893_v57 = vsub.f32 0.0, %v1891_v59 }
0x1a57   :  { %v1861_v60 = vpop.f32.mrf.mxu2 }
0x1a58   :  { %v1896_v58 = vmul.f32 1.442695, %v1893_v57  ;;  %v1862_v36 = vadd.f32 %v1861_v60, %v5098_v20 }
0x1a5a   :  { %3553 = vpow2.f32 %v1896_v58  ;;  %v1890_v1 = vand.u32 2147483647, %v1862_v36  ;;  %v1884_v14 = vmax.f32 %v1862_v36, 0.0  ;;  %vm1886_vm14 = vcmp.ne.f32.partialorder %v1862_v36, %v1862_v36 }
0x1a5c   :  { %v1892_v2 = vsub.f32 0.0, %v1890_v1 }
0x1a5e   :  { %v1894_v5 = vmul.f32 1.442695, %v1892_v2 }
0x1a60   :  { %v3554_v15 = vpop.eup %3553  ;;  %3555 = vpow2.f32 %v1894_v5 }
0x1a61   :  { %v1907_v27 = vadd.f32 1.0, %v3554_v15  ;;  %v1910_v18 = vmul.f32 -0.5, %v3554_v15  ;;  %v1913_v26 = vand.u32 2147483647, %v3554_v15 }
0x1a63   :  { %3557 = vlog2.f32 %v1907_v27  ;;  %v1911_v19 = vadd.f32 1.0, %v1910_v18  ;;  %vm1914_vm9 = vcmp.lt.f32.partialorder %v1913_v26, 0.0004427343 }
0x1a65   :  { %v1912_v33 = vmul.f32 %v3554_v15, %v1911_v19 }
0x1a66   :  { %v3556_v16 = vpop.eup %3555 }
0x1a67   :  { %v1898_v28 = vadd.f32 1.0, %v3556_v16  ;;  %v1901_v39 = vmul.f32 -0.5, %v3556_v16  ;;  %v1904_v50 = vand.u32 2147483647, %v3556_v16 }
0x1a69   :  { %v3558_v0 = vpop.eup %3557  ;;  %3559 = vlog2.f32 %v1898_v28  ;;  %v1902_v10 = vadd.f32 1.0, %v1901_v39  ;;  %vm1905_vm11 = vcmp.lt.f32.partialorder %v1904_v50, 0.0004427343 }
0x1a6a   :  { %v1909_v25 = vmul.f32 0.6931472, %v3558_v0 }
0x1a6b   :  { %v1903_v22 = vmul.f32 %v3556_v16, %v1902_v10 }
0x1a6c   :  { %v1915_v13 = vsel %vm1914_vm9, %v1912_v33, %v1909_v25 }
0x1a6d   :  { %v1917_v21 = vadd.f32 %v1915_v13, %v1885_v49  ;;  %v2049_v13 = vpop.permute.xlu2 %2048 }
0x1a6f   :  { %v3560_v12 = vpop.eup %3559  ;;  %v1919_v62 = vsel %vm1887_vm10, %v1882_v54, %v1917_v21 }
0x1a70   :  { %3338 = vmatmul.msk.f32.vlgmr.msra.gmra.mxu3 %vm1224_vm1, %v1919_v62  ;;  %v1900_v11 = vmul.f32 0.6931472, %v3560_v12 }
0x1a71   :  { %2242 = vmatpush.msra.mxu3 %v4355_v4  ;;  %v4583_v4 = vld [vmem:[%s5086_s25 + $0x70] sm:$0xff] }
0x1a72   :  { %v1906_v42 = vsel %vm1905_vm11, %v1903_v22, %v1900_v11  ;;  %v5099_v22 = vld [vmem:[#allocation48_spill] sm:$0xff] }
0x1a73   :  { %v1916_v30 = vadd.f32 %v1906_v42, %v1884_v14  ;;  %2243 = vmatpush.msra.mxu3 %v4358_v6  ;;  %v4588_v6 = vld [vmem:[%s5086_s25 + $0x68] sm:$0xff]  ;;  %v2042_v42 = vstv %s4653_s6 }
0x1a75   :  { %v1918_v17 = vsel %vm1886_vm14, %v1862_v36, %v1916_v30  ;;  %2244 = vmatpush.msra.mxu3 %v4363_v7  ;;  %v4593_v7 = vld [vmem:[%s5086_s25 + $0x60] sm:$0xff] }
0x1a76   :  { %1939 = vmatmul.f32.vlgmr.msrb.gmra.mxu2 %v1918_v17 }
0x1a77   :  { %2245 = vmatpush.msra.mxu3 %v4368_v8  ;;  %2385 = vmatpush.msrb.mxu2 %v4578_v40  ;;  %v4598_v8 = vld [vmem:[%s5086_s25 + $0x58] sm:$0xff] }
0x1a79   :  { %2246 = vmatpush.msra.mxu3 %v4373_v38  ;;  %2386 = vmatpush.msrb.mxu2 %v4583_v4  ;;  %v4602_v38 = vld [vmem:[%s5086_s25 + $0x50] sm:$0xff] }
0x1a7b   :  { %2247 = vmatpush.msra.mxu3 %v4378_v23  ;;  %2387 = vmatpush.msrb.mxu2 %v4588_v6  ;;  %v4606_v23 = vld [vmem:[%s5086_s25 + $0x48] sm:$0xff] }
0x1a7d   :  { %2248 = vmatpush.msra.mxu3 %v4383_v3  ;;  %2388 = vmatpush.msrb.mxu2 %v4593_v7  ;;  %v4610_v3 = vld [vmem:[%s5086_s25 + $0x40] sm:$0xff] }
0x1a7f   :  { %2249 = vmatpush.msra.mxu3 %v4388_v41  ;;  %2389 = vmatpush.msrb.mxu2 %v4598_v8  ;;  %v4614_v41 = vld [vmem:[%s5086_s25 + $0x38] sm:$0xff] }
0x1a81   :  { %2390 = vmatpush.msrb.mxu2 %v4602_v38 }
0x1a83   :  { %2391 = vmatpush.msrb.mxu2 %v4606_v23 }
0x1a85   :  { %2392 = vmatpush.msrb.mxu2 %v4610_v3 }
0x1a87   :  { %2393 = vmatpush.msrb.mxu2 %v4614_v41 }
0x1a89   :  { %2394 = vmatpush.msrb.mxu2 %v4618_v45 }
0x1a8b   :  { %2395 = vmatpush.msrb.mxu2 %v4622_v32 }
0x1a8d   :  { %2396 = vmatpush.msrb.mxu2 %v4626_v24 }
0x1a8f   :  { %2397 = vmatpush.msrb.mxu2 %v4630_v34 }
0x1a91   :  { %2398 = vmatpush.msrb.mxu2 %v4634_v63 }
0x1a93   :  { %2399 = vmatpush.msrb.mxu2 %v4638_v48 }
0x1a95   :  { %2400 = vmatpush.msrb.mxu2 %v4642_v52 }
0x1af3   :  { %v1960_v53 = vpop.f32.mrf.mxu3 }
0x1af9   :  { %v1940_v9 = vpop.f32.mrf.mxu2 }
0x1afa   :  { %v1941_v55 = vadd.f32 %v4391_v47, %v1940_v9 }
0x1afc   :  { %v1961_v54 = vadd.f32 %v1960_v53, %v1941_v55 }
0x1afe   :  { %v1966_v59 = vand.u32 2147483647, %v1961_v54  ;;  %v3339_v57 = vmul.f32 -1.442695, %v1961_v54  ;;  %v1963_v25 = vmax.f32 %v1961_v54, 0.0  ;;  %vm1964_vm5 = vcmp.ne.f32.partialorder %v1961_v54, %v1961_v54 }
0x1b00   :  { %v1967_v56 = vsub.f32 0.0, %v1966_v59  ;;  %3561 = vpow2.f32 %v3339_v57  ;;  %v4680_v59 = vld [vmem:[%s5086_s25 + $0xa8] sm:$0xff] }
0x1b02   :  { %v1968_v60 = vmul.f32 1.442695, %v1967_v56  ;;  %v4684_v56 = vld [vmem:[%s5086_s25 + $0xa0] sm:$0xff] }
0x1b04   :  { %3563 = vpow2.f32 %v1968_v60  ;;  %v4688_v60 = vld [vmem:[%s5086_s25 + $0x98] sm:$0xff] }
0x1b06   :  { %v3562_v58 = vpop.eup %3561 }
0x1b07   :  { %v1984_v20 = vadd.f32 1.0, %v3562_v58  ;;  %v4692_v58 = vld [vmem:[%s5086_s25 + $0x90] sm:$0xff] }
0x1b09   :  { %3565 = vrcp.f32 %v1984_v20  ;;  %v1994_v19 = vand.u32 2147483647, %v1984_v20  ;;  %v1996_v26 = vand.u32 2147483648, %v1984_v20  ;;  %vm1990_vm2 = vweird.f32 %v1984_v20 }
0x1b0a   :  { %v3564_v36 = vpop.eup %3563 }
0x1b0b   :  { %v1970_v1 = vadd.f32 1.0, %v3564_v36  ;;  %v1973_v2 = vmul.f32 -0.5, %v3564_v36  ;;  %v1976_v18 = vand.u32 2147483647, %v3564_v36  ;;  %v1997_v10 = vor.u32 1.1754944e-38, %v1996_v26 }
0x1b0c   :  { %vm1995_vm4 = vcmp.eq.f32.partialorder %v1994_v19, 8.507059e+37  ;;  %v5102_v19 = vld [vmem:[#allocation46_spill] sm:$0xff] }
0x1b0d   :  { %3567 = vlog2.f32 %v1970_v1  ;;  %v1974_v27 = vadd.f32 1.0, %v1973_v2  ;;  %vm1977_vm0 = vcmp.lt.f32.partialorder %v1976_v18, 0.0004427343  ;;  %v5101_v2 = vld [vmem:[#allocation45_spill] sm:$0xff]  ;;  %v3350_v18 = vld [vmem:[%s5091_s29 + $0x8] sm:$0x3] }
0x1b0e   :  { %2279 = vrot.lane.b32.xlu1 %v3350_v18, %s3768_s5 }
0x1b0f   :  { %v3566_v5 = vpop.eup %3565  ;;  %v1975_v0 = vmul.f32 %v3564_v36, %v1974_v27  ;;  %v4700_v36 = vld [vmem:[%s5086_s25 + $0x80] sm:$0xff] }
0x1b10   :  { %v1986_v15 = vmul.f32 %v3566_v5, %v1984_v20  ;;  %vm1991_vm15 = vweird.f32 %v3566_v5  ;;  %v4696_v20 = vld [vmem:[%s5086_s25 + $0x88] sm:$0xff] }
0x1b11   :  { %vm1992_vm3 = vmor %vm1990_vm2, %vm1991_vm15 }
0x1b12   :  { %v1987_v47 = vsub.f32 1.0, %v1986_v15 }
0x1b13   :  { %v3568_v16 = vpop.eup %3567 }
0x1b14   :  { %v1988_v28 = vmul.f32 %v3566_v5, %v1987_v47  ;;  %v1972_v39 = vmul.f32 0.6931472, %v3568_v16 }
0x1b16   :  { %v1989_v33 = vadd.f32 %v3566_v5, %v1988_v28  ;;  %v1978_v49 = vsel %vm1977_vm0, %v1975_v0, %v1972_v39 }
0x1b17   :  { %v1979_v21 = vadd.f32 %v1978_v49, %v1963_v25 }
0x1b18   :  { %v1993_v50 = vsel %vm1992_vm3, %v3566_v5, %v1989_v33 }
0x1b19   :  { %v4646_v12 = vsel %vm1995_vm4, %v1997_v10, %v1993_v50  ;;  %v1980_v62 = vsel %vm1964_vm5, %v1961_v54, %v1979_v21  ;;  %v4676_v54 = vld [vmem:[%s5086_s25 + $0xb0] sm:$0xff] }
0x1b1a   :  { %v2051_v11 = vmul.f32 %v2049_v13, %v4646_v12  ;;  %3340 = vmatmul.msk.f32.vlgmr.msrb.gmra.mxu1 %vm1224_vm1, %v1980_v62 }
0x1b1b   :  { %3354 = vmatpush.msk.msrb.mxu1 %vm1140_vm8, %v5099_v22 }
0x1b1c   :  { %2053 = vrot.lane.b32.xlu0 %v2051_v11, %s3768_s5 }
0x1b8e   :  { %v2054_v55 = vpop.permute.xlu0 %2053 }
0x1b97   :  { %v2020_v14 = vpop.f32.mrf.mxu1 }
0x1b98   :  { %v4657_v30 = vadd.f32 %v4416_v31, %v2020_v14  ;;  %v4670_v31 = vld [vmem:[%s5086_s25 + $0xb8] sm:$0xff]  ;;  %s5130_s25 = sld [smem:[#allocation29_spill]] }
0x1b9a   :  { %v2043_v17 = vmul.f32 %v2042_v42, %v4657_v30 }
0x1b9c   :  { %v2044_v9 = vadd.f32 %v2043_v17, %v4550_v51  ;;  %v5100_v51 = vld [vmem:[#allocation51_spill] sm:$0xff] }
0x1b9e   :  { %v4661_v53 = vadd.f32 %v2054_v55, %v2044_v9 }
0x1ba0   :  { %2058 = vst.msk [vmem:[#allocation3 + $0x8] sm:$0x3] %vm1124_vm12, %v4661_v53  ;;  %3344 = vmatmul.msk.f32.vlgmr.msra.gmra.mxu0 %vm1136_vm13, %v4661_v53  ;;  %3346 = vmatmul.msk.f32.vlgmr.msrb.gmra.mxu3 %vm1136_vm13, %v4661_v53 }
0x1ba1   :  { %2413 = vmatpush.msrb.mxu3 %v4670_v31  ;;  %3361 = vmatpush.msk.msra.mxu0 %vm1140_vm8, %v5100_v51 }
0x1ba3   :  { %2414 = vmatpush.msrb.mxu3 %v4676_v54 }
0x1ba5   :  { %2415 = vmatpush.msrb.mxu3 %v4680_v59 }
0x1ba7   :  { %v2756_v57 = vld [vmem:[#allocation3 + $0x8] sm:$0x3]  ;;  %2416 = vmatpush.msrb.mxu3 %v4684_v56 }
0x1ba8   :  { %2780 = vst [vmem:[#allocation1 + $0x20] ss:$4 sm:$0xff] %v2756_v57 }
0x1ba9   :  { %2417 = vmatpush.msrb.mxu3 %v4688_v60 }
0x1bab   :  { %2418 = vmatpush.msrb.mxu3 %v4692_v58 }
0x1bad   :  { %2419 = vmatpush.msrb.mxu3 %v4696_v20 }
0x1baf   :  { %2420 = vmatpush.msrb.mxu3 %v4700_v36 }
0x1c1d   :  { %v2092_v1 = vpop.f32.mrf.mxu0 }
0x1c1e   :  { %v2093_v5 = vadd.f32 %v2092_v1, %v5101_v2 }
0x1c20   :  { %v2121_v15 = vand.u32 2147483647, %v2093_v5  ;;  %v2115_v42 = vmax.f32 %v2093_v5, 0.0  ;;  %vm2117_vm9 = vcmp.ne.f32.partialorder %v2093_v5, %v2093_v5 }
0x1c22   :  { %v2123_v27 = vsub.f32 0.0, %v2121_v15 }
0x1c23   :  { %v2112_v47 = vpop.f32.mrf.mxu3 }
0x1c24   :  { %v2125_v16 = vmul.f32 1.442695, %v2123_v27  ;;  %v2113_v26 = vadd.f32 %v2112_v47, %v5102_v19 }
0x1c26   :  { %3569 = vpow2.f32 %v2125_v16  ;;  %v2122_v28 = vand.u32 2147483647, %v2113_v26  ;;  %v2116_v27 = vmax.f32 %v2113_v26, 0.0  ;;  %vm2118_vm11 = vcmp.ne.f32.partialorder %v2113_v26, %v2113_v26 }
0x1c28   :  { %v2124_v39 = vsub.f32 0.0, %v2122_v28 }
0x1c2a   :  { %v2127_v0 = vmul.f32 1.442695, %v2124_v39 }
0x1c2c   :  { %v3570_v25 = vpop.eup %3569  ;;  %3571 = vpow2.f32 %v2127_v0 }
0x1c2d   :  { %v2129_v33 = vadd.f32 1.0, %v3570_v25  ;;  %v2132_v49 = vmul.f32 -0.5, %v3570_v25  ;;  %v2135_v21 = vand.u32 2147483647, %v3570_v25 }
0x1c2f   :  { %3573 = vlog2.f32 %v2129_v33  ;;  %v2133_v10 = vadd.f32 1.0, %v2132_v49  ;;  %vm2136_vm7 = vcmp.lt.f32.partialorder %v2135_v21, 0.0004427343 }
0x1c31   :  { %v2134_v14 = vmul.f32 %v3570_v25, %v2133_v10 }
0x1c32   :  { %v3572_v13 = vpop.eup %3571 }
0x1c33   :  { %v2138_v50 = vadd.f32 1.0, %v3572_v13  ;;  %v2141_v62 = vmul.f32 -0.5, %v3572_v13  ;;  %v2144_v51 = vand.u32 2147483647, %v3572_v13 }
0x1c35   :  { %v3574_v11 = vpop.eup %3573  ;;  %3575 = vlog2.f32 %v2138_v50  ;;  %v2142_v9 = vadd.f32 1.0, %v2141_v62  ;;  %vm2145_vm10 = vcmp.lt.f32.partialorder %v2144_v51, 0.0004427343  ;;  %v2280_v51 = vpop.permute.xlu1 %2279 }
0x1c36   :  { %v2131_v22 = vmul.f32 0.6931472, %v3574_v11 }
0x1c37   :  { %v2143_v15 = vmul.f32 %v3572_v13, %v2142_v9 }
0x1c38   :  { %v2137_v17 = vsel %vm2136_vm7, %v2134_v14, %v2131_v22 }
0x1c39   :  { %v2147_v55 = vadd.f32 %v2137_v17, %v2115_v42 }
0x1c3b   :  { %v3576_v57 = vpop.eup %3575  ;;  %v2149_v1 = vsel %vm2117_vm9, %v2093_v5, %v2147_v55  ;;  %v4712_v5 = vld [vmem:[%s5092_s3 + $0x38] sm:$0xff] }
0x1c3c   :  { %2170 = vmatmul.f32.vlgmr.msrb.gmra.mxu0 %v2149_v1  ;;  %v2140_v2 = vmul.f32 0.6931472, %v3576_v57 }
0x1c3d   :  { %2616 = vmatpush.msrb.mxu0 %v4578_v40  ;;  %v4717_v40 = vld [vmem:[%s5092_s3 + $0x30] sm:$0xff] }
0x1c3e   :  { %v2146_v18 = vsel %vm2145_vm10, %v2143_v15, %v2140_v2 }
0x1c3f   :  { %v2148_v47 = vadd.f32 %v2146_v18, %v2116_v27  ;;  %2617 = vmatpush.msrb.mxu0 %v4583_v4  ;;  %v4722_v4 = vld [vmem:[%s5092_s3 + $0x28] sm:$0xff] }
0x1c40   :  { %v5103_v18 = vld [vmem:[#allocation52_spill] sm:$0xff] }
0x1c41   :  { %v2150_v16 = vsel %vm2118_vm11, %v2113_v26, %v2148_v47  ;;  %2618 = vmatpush.msrb.mxu0 %v4588_v6  ;;  %v4727_v6 = vld [vmem:[%s5092_s3 + $0x20] sm:$0xff]  ;;  %vm2852_vm11 = vcmask 17408  }
0x1c42   :  { %3347 = vmatmul.msk.f32.vlgmr.msra.gmra.mxu1 %vm1224_vm1, %v2150_v16  ;;  %v2273_v16 = vstv %s4767_s12 }
0x1c43   :  { %2473 = vmatpush.msra.mxu1 %v4712_v5  ;;  %2619 = vmatpush.msrb.mxu0 %v4593_v7  ;;  %v4732_v7 = vld [vmem:[%s5092_s3 + $0x18] sm:$0xff] }
0x1c45   :  { %2474 = vmatpush.msra.mxu1 %v4717_v40  ;;  %2620 = vmatpush.msrb.mxu0 %v4598_v8  ;;  %v4737_v8 = vld [vmem:[%s5092_s3 + $0x10] sm:$0xff] }
0x1c47   :  { %2475 = vmatpush.msra.mxu1 %v4722_v4  ;;  %2621 = vmatpush.msrb.mxu0 %v4602_v38  ;;  %v4742_v38 = vld [vmem:[%s5092_s3 + $0x8] sm:$0xff] }
0x1c49   :  { %2476 = vmatpush.msra.mxu1 %v4727_v6  ;;  %2622 = vmatpush.msrb.mxu0 %v4606_v23  ;;  %v4747_v23 = vld [vmem:[%s5092_s3] sm:$0xff]  ;;  %s2500_s3 = smul.f32 0.5, %s4849_s22 }
0x1c4b   :  { %2477 = vmatpush.msra.mxu1 %v4732_v7  ;;  %2623 = vmatpush.msrb.mxu0 %v4610_v3 }
0x1c4d   :  { %2478 = vmatpush.msra.mxu1 %v4737_v8  ;;  %2624 = vmatpush.msrb.mxu0 %v4614_v41  ;;  %v4757_v41 = vld [vmem:[%s5093_s8] ss:$0 sm:$0xff]  ;;  %s2731_s8 = smul.f32 0.5, %s4912_s7 }
0x1c4f   :  { %2479 = vmatpush.msra.mxu1 %v4742_v38  ;;  %2625 = vmatpush.msrb.mxu0 %v4618_v45 }
0x1c51   :  { %2480 = vmatpush.msra.mxu1 %v4747_v23  ;;  %2626 = vmatpush.msrb.mxu0 %v4622_v32 }
0x1c53   :  { %2627 = vmatpush.msrb.mxu0 %v4626_v24 }
0x1c55   :  { %2628 = vmatpush.msrb.mxu0 %v4630_v34 }
0x1c57   :  { %2629 = vmatpush.msrb.mxu0 %v4634_v63 }
0x1c59   :  { %2630 = vmatpush.msrb.mxu0 %v4638_v48 }
0x1c5b   :  { %2631 = vmatpush.msrb.mxu0 %v4642_v52 }
0x1cb9   :  { %v2171_v3 = vpop.f32.mrf.mxu0 }
0x1cba   :  { %v2172_v45 = vadd.f32 %v4757_v41, %v2171_v3  ;;  %v4771_v3 = vld [vmem:[%s5094_s14] ss:$0 sm:$0xff]  ;;  %s5131_s14 = sld [smem:[#allocation31_spill]] }
0x1cbf   :  { %v2191_v19 = vpop.f32.mrf.mxu1 }
0x1cc0   :  { %v2192_v26 = vadd.f32 %v2191_v19, %v2172_v45 }
0x1cc2   :  { %v2197_v28 = vand.u32 2147483647, %v2192_v26  ;;  %v3348_v39 = vmul.f32 -1.442695, %v2192_v26  ;;  %v2194_v42 = vmax.f32 %v2192_v26, 0.0  ;;  %vm2195_vm4 = vcmp.ne.f32.partialorder %v2192_v26, %v2192_v26 }
0x1cc4   :  { %v2198_v32 = vsub.f32 0.0, %v2197_v28  ;;  %3577 = vpow2.f32 %v3348_v39 }
0x1cc6   :  { %v2199_v24 = vmul.f32 1.442695, %v2198_v32 }
0x1cc8   :  { %3579 = vpow2.f32 %v2199_v24  ;;  %v5105_v24 = vld [vmem:[#allocation49_spill] sm:$0xff] }
0x1cca   :  { %v3578_v34 = vpop.eup %3577 }
0x1ccb   :  { %v2215_v0 = vadd.f32 1.0, %v3578_v34 }
0x1ccd   :  { %3581 = vrcp.f32 %v2215_v0  ;;  %v2225_v50 = vand.u32 2147483647, %v2215_v0  ;;  %v2227_v62 = vand.u32 2147483648, %v2215_v0  ;;  %vm2221_vm0 = vweird.f32 %v2215_v0 }
0x1cce   :  { %v3580_v63 = vpop.eup %3579 }
0x1ccf   :  { %v2201_v48 = vadd.f32 1.0, %v3580_v63  ;;  %v2204_v25 = vmul.f32 -0.5, %v3580_v63  ;;  %v2207_v13 = vand.u32 2147483647, %v3580_v63  ;;  %v2228_v55 = vor.u32 1.1754944e-38, %v2227_v62 }
0x1cd0   :  { %vm2226_vm3 = vcmp.eq.f32.partialorder %v2225_v50, 8.507059e+37 }
0x1cd1   :  { %3583 = vlog2.f32 %v2201_v48  ;;  %v2205_v49 = vadd.f32 1.0, %v2204_v25  ;;  %vm2208_vm15 = vcmp.lt.f32.partialorder %v2207_v13, 0.0004427343 }
0x1cd3   :  { %v3582_v52 = vpop.eup %3581  ;;  %v2206_v14 = vmul.f32 %v3580_v63, %v2205_v49  ;;  %v5106_v63 = vld [vmem:[#allocation50_spill] sm:$0xff] }
0x1cd4   :  { %v2217_v33 = vmul.f32 %v3582_v52, %v2215_v0  ;;  %vm2222_vm14 = vweird.f32 %v3582_v52  ;;  %v2760_v0 = vld [vmem:[%s5104_s16] sm:$0xf] }
0x1cd5   :  { %vm2223_vm2 = vmor %vm2221_vm0, %vm2222_vm14 }
0x1cd6   :  { %v2218_v10 = vsub.f32 1.0, %v2217_v33 }
0x1cd7   :  { %v3584_v21 = vpop.eup %3583 }
0x1cd8   :  { %v2219_v11 = vmul.f32 %v3582_v52, %v2218_v10  ;;  %v2203_v22 = vmul.f32 0.6931472, %v3584_v21 }
0x1cda   :  { %v2220_v17 = vadd.f32 %v3582_v52, %v2219_v11  ;;  %v2209_v9 = vsel %vm2208_vm15, %v2206_v14, %v2203_v22 }
0x1cdb   :  { %v2210_v57 = vadd.f32 %v2209_v9, %v2194_v42 }
0x1cdc   :  { %v2224_v1 = vsel %vm2223_vm2, %v3582_v52, %v2220_v17  ;;  %v3359_v52 = vld [vmem:[%s5091_s29 + $0xa] sm:$0x3] }
0x1cdd   :  { %v4760_v2 = vsel %vm2226_vm3, %v2228_v55, %v2224_v1  ;;  %v2211_v15 = vsel %vm2195_vm4, %v2192_v26, %v2210_v57  ;;  %2510 = vrot.lane.b32.xlu0 %v3359_v52, %s3768_s5 }
0x1cde   :  { %v2282_v27 = vmul.f32 %v2280_v51, %v4760_v2  ;;  %3349 = vmatmul.msk.f32.vlgmr.msra.gmra.mxu3 %vm1224_vm1, %v2211_v15 }
0x1cdf   :  { %3363 = vmatpush.msk.msra.mxu3 %vm1140_vm8, %v5103_v18 }
0x1ce0   :  { %2284 = vrot.lane.b32.xlu2 %v2282_v27, %s3768_s5 }
0x1d3a   :  { %v2285_v28 = vpop.permute.xlu2 %2284 }
0x1d61   :  { %v2251_v47 = vpop.f32.mrf.mxu3 }
0x1d62   :  { %v4774_v45 = vadd.f32 %v4771_v3, %v2251_v47 }
0x1d64   :  { %v2274_v19 = vmul.f32 %v2273_v16, %v4774_v45 }
0x1d66   :  { %v2275_v26 = vadd.f32 %v2274_v19, %v4661_v53  ;;  %v2787_v19 = vld.sshfl [vmem:[#allocation1] sm:$0xff pattern:$0x73625140] }
0x1d68   :  { %v4778_v39 = vadd.f32 %v2285_v28, %v2275_v26 }
0x1d6a   :  { %2289 = vst.msk [vmem:[#allocation3 + $0xa] sm:$0x3] %vm1124_vm12, %v4778_v39  ;;  %3353 = vmatmul.msk.f32.vlgmr.msra.gmra.mxu2 %vm1136_vm13, %v4778_v39  ;;  %3355 = vmatmul.msk.f32.vlgmr.msrb.gmra.mxu1 %vm1136_vm13, %v4778_v39 }
0x1d6b   :  { %2644 = vmatpush.msrb.mxu1 %v4670_v31  ;;  %3369 = vmatpush.msk.msra.mxu2 %vm1140_vm8, %v2760_v0 }
0x1d6d   :  { %2645 = vmatpush.msrb.mxu1 %v4676_v54 }
0x1d6f   :  { %2646 = vmatpush.msrb.mxu1 %v4680_v59 }
0x1d71   :  { %v2757_v53 = vld [vmem:[#allocation3 + $0xa] sm:$0x3]  ;;  %2647 = vmatpush.msrb.mxu1 %v4684_v56 }
0x1d72   :  { %2782 = vst [vmem:[#allocation1 + $0x21] ss:$4 sm:$0xff] %v2757_v53 }
0x1d73   :  { %2648 = vmatpush.msrb.mxu1 %v4688_v60 }
0x1d75   :  { %2649 = vmatpush.msrb.mxu1 %v4692_v58 }
0x1d77   :  { %2650 = vmatpush.msrb.mxu1 %v4696_v20 }
0x1d79   :  { %2651 = vmatpush.msrb.mxu1 %v4700_v36 }
0x1de7   :  { %v2343_v32 = vpop.f32.mrf.mxu1 }
0x1de8   :  { %v2344_v31 = vadd.f32 %v2343_v32, %v5105_v24 }
0x1dea   :  { %v2353_v34 = vand.u32 2147483647, %v2344_v31  ;;  %v2347_v14 = vmax.f32 %v2344_v31, 0.0  ;;  %vm2349_vm7 = vcmp.ne.f32.partialorder %v2344_v31, %v2344_v31 }
0x1dec   :  { %v2355_v54 = vsub.f32 0.0, %v2353_v34 }
0x1ded   :  { %v2323_v59 = vpop.f32.mrf.mxu2 }
0x1dee   :  { %v2358_v56 = vmul.f32 1.442695, %v2355_v54  ;;  %v2324_v48 = vadd.f32 %v2323_v59, %v5106_v63  ;;  %v5108_v54 = vld [vmem:[#allocation33_spill] sm:$0xff] }
0x1df0   :  { %3585 = vpow2.f32 %v2358_v56  ;;  %v2352_v60 = vand.u32 2147483647, %v2324_v48  ;;  %v2346_v27 = vmax.f32 %v2324_v48, 0.0  ;;  %vm2348_vm10 = vcmp.ne.f32.partialorder %v2324_v48, %v2324_v48  ;;  %v5109_v56 = vld [vmem:[#allocation34_spill] sm:$0xff] }
0x1df2   :  { %v2354_v58 = vsub.f32 0.0, %v2352_v60 }
0x1df4   :  { %v2356_v25 = vmul.f32 1.442695, %v2354_v58  ;;  %v5111_v58 = vld [vmem:[#allocation36_spill] sm:$0xff] }
0x1df6   :  { %v3586_v20 = vpop.eup %3585  ;;  %3587 = vpow2.f32 %v2356_v25 }
0x1df7   :  { %v2369_v36 = vadd.f32 1.0, %v3586_v20  ;;  %v2372_v33 = vmul.f32 -0.5, %v3586_v20  ;;  %v2375_v10 = vand.u32 2147483647, %v3586_v20 }
0x1df9   :  { %3589 = vlog2.f32 %v2369_v36  ;;  %v2373_v13 = vadd.f32 1.0, %v2372_v33  ;;  %vm2376_vm5 = vcmp.lt.f32.partialorder %v2375_v10, 0.0004427343 }
0x1dfb   :  { %v2374_v22 = vmul.f32 %v3586_v20, %v2373_v13 }
0x1dfc   :  { %v3588_v49 = vpop.eup %3587 }
0x1dfd   :  { %v2360_v21 = vadd.f32 1.0, %v3588_v49  ;;  %v2363_v50 = vmul.f32 -0.5, %v3588_v49  ;;  %v2366_v55 = vand.u32 2147483647, %v3588_v49 }
0x1dff   :  { %v3590_v62 = vpop.eup %3589  ;;  %3591 = vlog2.f32 %v2360_v21  ;;  %v2364_v17 = vadd.f32 1.0, %v2363_v50  ;;  %vm2367_vm9 = vcmp.lt.f32.partialorder %v2366_v55, 0.0004427343 }
0x1e00   :  { %v2371_v11 = vmul.f32 0.6931472, %v3590_v62 }
0x1e01   :  { %v2365_v15 = vmul.f32 %v3588_v49, %v2364_v17 }
0x1e02   :  { %v2377_v42 = vsel %vm2376_vm5, %v2374_v22, %v2371_v11 }
0x1e03   :  { %v2379_v9 = vadd.f32 %v2377_v42, %v2347_v14 }
0x1e05   :  { %v3592_v51 = vpop.eup %3591  ;;  %v2381_v57 = vsel %vm2349_vm7, %v2344_v31, %v2379_v9 }
0x1e06   :  { %3356 = vmatmul.msk.f32.vlgmr.msrb.gmra.mxu3 %vm1224_vm1, %v2381_v57  ;;  %v2362_v1 = vmul.f32 0.6931472, %v3592_v51 }
0x1e07   :  { %2704 = vmatpush.msrb.mxu3 %v4712_v5  ;;  %v4811_v5 = vld [vmem:[%s5107_s18] ss:$0 sm:$0xff] }
0x1e08   :  { %v2368_v18 = vsel %vm2367_vm9, %v2365_v15, %v2362_v1  ;;  %2789 = vst [vmem:[#allocation1] ss:$4 sm:$0xff] %v4811_v5 }
0x1e09   :  { %v2378_v47 = vadd.f32 %v2368_v18, %v2346_v27  ;;  %2705 = vmatpush.msrb.mxu3 %v4717_v40  ;;  %2791 = vst [vmem:[#allocation1 + $0x1] ss:$4 sm:$0xff] %v4811_v5 }
0x1e0a   :  { %2793 = vst [vmem:[#allocation1 + $0x2] ss:$4 sm:$0xff] %v4811_v5 }
0x1e0b   :  { %v2380_v16 = vsel %vm2348_vm10, %v2324_v48, %v2378_v47  ;;  %2706 = vmatpush.msrb.mxu3 %v4722_v4  ;;  %2795 = vst [vmem:[#allocation1 + $0x3] ss:$4 sm:$0xff] %v4811_v5  ;;  %v5110_v48 = vld [vmem:[#allocation35_spill] sm:$0xff] }
0x1e0c   :  { %2401 = vmatmul.f32.vlgmr.msrb.gmra.mxu2 %v2380_v16 }
0x1e0d   :  { %2707 = vmatpush.msrb.mxu3 %v4727_v6 }
0x1e0f   :  { %2708 = vmatpush.msrb.mxu3 %v4732_v7 }
0x1e11   :  { %2709 = vmatpush.msrb.mxu3 %v4737_v8 }
0x1e13   :  { %2710 = vmatpush.msrb.mxu3 %v4742_v38 }
0x1e14   :  { %3370 = vmatmul.msk.f32.vlgmr.msra.gmra.mxu2 %vm1136_vm13, %v2787_v19 }
0x1e15   :  { %2711 = vmatpush.msrb.mxu3 %v4747_v23  ;;  %v2804_v23 = vld.sshfl [vmem:[#allocation1] sm:$0xff pattern:$0x73625140] }
0x1e89   :  { %v2422_v6 = vpop.f32.mrf.mxu3 }
0x1e8f   :  { %v2402_v40 = vpop.f32.mrf.mxu2 }
0x1e90   :  { %v2403_v4 = vadd.f32 %v4757_v41, %v2402_v40 }
0x1e92   :  { %v4818_v7 = vadd.f32 %v2422_v6, %v2403_v4 }
0x1e94   :  { %v2428_v8 = vand.u32 2147483647, %v4818_v7  ;;  %v3357_v38 = vmul.f32 -1.442695, %v4818_v7  ;;  %vm2426_vm4 = vcmp.ne.f32.partialorder %v4818_v7, %v4818_v7 }
0x1e96   :  { %v2429_v26 = vsub.f32 0.0, %v2428_v8  ;;  %3593 = vpow2.f32 %v3357_v38 }
0x1e97   :  { %v2832_v28 = vpop.f32.mrf.mxu2 }
0x1e98   :  { %v2430_v53 = vmul.f32 1.442695, %v2429_v26  ;;  %v2833_v32 = vadd.f32 %v2832_v28, %v2804_v23 }
0x1e9a   :  { %3595 = vpow2.f32 %v2430_v53  ;;  %v2840_v24 = vrot.slane %v2833_v32, 2  ;;  %v2841_v31 = vrot.slane %v2833_v32, 4  ;;  %v2842_v34 = vrot.slane %v2833_v32, 6  ;;  %2853 = vst.msk [vmem:[%s3958_s20] sm:$0x3] %vm2852_vm11, %v2833_v32 }
0x1e9b   :  { %v2861_v0 = vsub.f32 %v5108_v54, %v2833_v32 }
0x1e9c   :  { %v3594_v59 = vpop.eup %3593  ;;  %2854 = vst.msk [vmem:[%s3958_s20 + $0x2] sm:$0x3] %vm2852_vm11, %v2840_v24  ;;  %v2862_v63 = vsub.f32 %v5109_v56, %v2840_v24  ;;  %v2863_v60 = vsub.f32 %v5110_v48, %v2841_v31  ;;  %v2864_v25 = vsub.f32 %v5111_v58, %v2842_v34 }
0x1e9d   :  { %2855 = vst.msk [vmem:[%s3958_s20 + $0x4] sm:$0x3] %vm2852_vm11, %v2841_v31  ;;  %v2869_v52 = vmul.f32 10.0, %v2861_v0  ;;  %v2446_v20 = vadd.f32 1.0, %v3594_v59  ;;  %v2425_v31 = vmax.f32 %v4818_v7, 0.0  ;;  %v2511_v59 = vpop.permute.xlu0 %2510 }
0x1e9e   :  { %2856 = vst.msk [vmem:[%s3958_s20 + $0x6] sm:$0x3] %vm2852_vm11, %v2842_v34  ;;  %v2870_v36 = vmul.f32 10.0, %v2862_v63  ;;  %v2871_v33 = vmul.f32 10.0, %v2863_v60  ;;  %v2872_v49 = vmul.f32 10.0, %v2864_v25 }
0x1e9f   :  { %v2877_v13 = vmul.f32 -0.5, %v2869_v52  ;;  %3597 = vrcp.f32 %v2446_v20  ;;  %v2456_v38 = vand.u32 2147483647, %v2446_v20  ;;  %v2458_v23 = vand.u32 2147483648, %v2446_v20 }
0x1ea0   :  { %v3596_v10 = vpop.eup %3595  ;;  %v2878_v21 = vmul.f32 -0.5, %v2870_v36  ;;  %v2879_v50 = vmul.f32 -0.5, %v2871_v33  ;;  %v2880_v62 = vmul.f32 -0.5, %v2872_v49  ;;  %vm2452_vm0 = vweird.f32 %v2446_v20 }
0x1ea1   :  { %v2885_v11 = vmul.f32 %v2877_v13, %v2869_v52  ;;  %v2432_v22 = vadd.f32 1.0, %v3596_v10  ;;  %v2435_v14 = vmul.f32 -0.5, %v3596_v10  ;;  %v2438_v19 = vand.u32 2147483647, %v3596_v10 }
0x1ea2   :  { %v2886_v42 = vmul.f32 %v2878_v21, %v2870_v36  ;;  %v2887_v17 = vmul.f32 %v2879_v50, %v2871_v33  ;;  %v2888_v55 = vmul.f32 %v2880_v62, %v2872_v49  ;;  %v2459_v56 = vor.u32 1.1754944e-38, %v2458_v23  ;;  %v5113_v50 = vld [vmem:[#allocation53_spill] sm:$0xff] }
0x1ea3   :  { %v3372_v9 = vadd.f32 1.3836466, %v2885_v11  ;;  %3599 = vlog2.f32 %v2432_v22  ;;  %v2436_v1 = vadd.f32 1.0, %v2435_v14  ;;  %vm2439_vm15 = vcmp.lt.f32.partialorder %v2438_v19, 0.0004427343 }
0x1ea4   :  { %v3373_v51 = vadd.f32 1.3836466, %v2886_v42  ;;  %v3374_v15 = vadd.f32 1.3836466, %v2887_v17  ;;  %v3375_v18 = vadd.f32 1.3836466, %v2888_v55 }
0x1ea5   :  { %v3598_v57 = vpop.eup %3597  ;;  %v2901_v47 = vsel %vm2852_vm11, %v3372_v9, 0.0  ;;  %v2437_v26 = vmul.f32 %v3596_v10, %v2436_v1  ;;  %vm2457_vm3 = vcmp.eq.f32.partialorder %v2456_v38, 8.507059e+37  ;;  %v3007_v22 = vld [vmem:[%s5112_s23] sm:$0xf]  ;;  %v5114_v17 = vld [vmem:[#allocation54_spill] sm:$0xff] }
0x1ea6   :  { %v2448_v27 = vmul.f32 %v3598_v57, %v2446_v20  ;;  %v2902_v16 = vsel %vm2852_vm11, %v3373_v51, 0.0  ;;  %v2904_v6 = vsel %vm2852_vm11, %v3374_v15, 0.0  ;;  %vm2453_vm14 = vweird.f32 %v3598_v57  ;;  %v3368_v1 = vld [vmem:[%s5091_s29 + $0xc] sm:$0x3]  ;;  %s2269_s29 = smul.f32 0.5, %s4767_s12  ;;  %s3219_s12 = sshll.u32 %s3963_s27, 4  ;;  %s3220_s12 = int_to_ptr.hbm [resolvable:$true] %s3219_s12 }
0x1ea7   :  { %v2903_v40 = vadd.f32 %v2902_v16, %v2901_v47  ;;  %v2906_v24 = vsel %vm2852_vm11, %v3375_v18, 0.0  ;;  %vm2454_vm2 = vmor %vm2452_vm0, %vm2453_vm14  ;;  %v2504_v20 = vstv %s4849_s22  ;;  %2741 = vrot.lane.b32.xlu0 %v3368_v1, %s3768_s5  ;;  %s3699_s16 = sshra.s32 %s3220_s12, 4  ;;  %s3703_s22 = scalar_lea.hbm %s3963_s27, 2  ;;  %s3700_s16 = int_to_ptr.hbm [resolvable:$true] %s3699_s16 }
0x1ea8   :  { %v2449_v4 = vsub.f32 1.0, %v2448_v27  ;;  %s3701_s18 = scalar_lea.hbm %s3700_s16, 2  ;;  %p3704_p6 = scmp.lt.s32.totalorder %s3700_s16, %s3963_s27 }
0x1ea9   :  { %v3600_v8 = vpop.eup %3599  ;;  %v2905_v28 = vadd.f32 %v2904_v6, %v2903_v40  ;;  %p3702_p5 = scmp.ne.s32.totalorder %s3700_s16, %s3701_s18  ;;  %p3705_p7 = scmp.lt.s32.totalorder %s3703_s22, %s3701_s18 }
0x1eaa   :  { %v2450_v53 = vmul.f32 %v3598_v57, %v2449_v4  ;;  %v2434_v32 = vmul.f32 0.6931472, %v3600_v8 }
0x1eab   :  { %v4839_v34 = vadd.f32 %v2906_v24, %v2905_v28  ;;  %p3706_p8 = por %p3705_p7, %p3704_p6 }
0x1eac   :  { %v2451_v54 = vadd.f32 %v3598_v57, %v2450_v53  ;;  %v2440_v0 = vsel %vm2439_vm15, %v2437_v26, %v2434_v32 }
0x1ead   :  { %v2441_v63 = vadd.f32 %v2440_v0, %v2425_v31  ;;  %p3707_p9 = pnand %p3706_p8, %p3702_p5 }
0x1eae   :  { %v2455_v48 = vsel %vm2454_vm2, %v3598_v57, %v2451_v54 }
0x1eaf   :  { %v4843_v60 = vsel %vm2457_vm3, %v2459_v56, %v2455_v48  ;;  %v2442_v58 = vsel %vm2426_vm4, %v4818_v7, %v2441_v63 }
0x1eb0   :  { %v2513_v25 = vmul.f32 %v2511_v59, %v4843_v60  ;;  %3358 = vmatmul.msk.f32.vlgmr.msra.gmra.mxu1 %vm1224_vm1, %v2442_v58 }
0x1eb1   :  { %3381 = vmatpush.msk.msra.mxu1 %vm1140_vm8, %v3007_v22 }
0x1eb2   :  { %2515 = vrot.lane.b32.xlu1 %v2513_v25, %s3768_s5 }
0x1f24   :  { %v2516_v7 = vpop.permute.xlu1 %2515 }
0x1f2d   :  { %v2482_v52 = vpop.f32.mrf.mxu1 }
0x1f2e   :  { %v4853_v36 = vadd.f32 %v4771_v3, %v2482_v52  ;;  %v3041_v52 = vld [vmem:[%s5115_s26 + $0x18] sm:$0xff] }
0x1f30   :  { %v2505_v33 = vmul.f32 %v2504_v20, %v4853_v36  ;;  %v3040_v20 = vld [vmem:[%s5115_s26 + $0x10] sm:$0xff] }
0x1f32   :  { %v2506_v49 = vadd.f32 %v2505_v33, %v4778_v39 }
0x1f34   :  { %v4857_v13 = vadd.f32 %v2516_v7, %v2506_v49  ;;  %v3039_v7 = vld [vmem:[%s5115_s26 + $0x8] sm:$0xff] }
0x1f36   :  { %2520 = vst.msk [vmem:[#allocation3 + $0xc] sm:$0x3] %vm1124_vm12, %v4857_v13  ;;  %3362 = vmatmul.msk.f32.vlgmr.msra.gmra.mxu0 %vm1136_vm13, %v4857_v13  ;;  %3364 = vmatmul.msk.f32.vlgmr.msra.gmra.mxu3 %vm1136_vm13, %v4857_v13 }
0x1f37   :  { %3061 = vmatpush.msra.mxu3 %v3041_v52 }
0x1f39   :  { %3062 = vmatpush.msra.mxu3 %v3040_v20 }
0x1f3b   :  { %3063 = vmatpush.msra.mxu3 %v3039_v7 }
0x1f3d   :  { %v2758_v10 = vld [vmem:[#allocation3 + $0xc] sm:$0x3] }
0x1f3e   :  { %2784 = vst [vmem:[#allocation1 + $0x22] ss:$4 sm:$0xff] %v2758_v10 }
0x1fb3   :  { %v2554_v21 = vpop.f32.mrf.mxu0 }
0x1fb4   :  { %v2555_v62 = vadd.f32 %v2554_v21, %v5113_v50  ;;  %v3038_v50 = vld [vmem:[%s5115_s26] sm:$0xff] }
0x1fb5   :  { %3064 = vmatpush.msra.mxu3 %v3038_v50  ;;  %v3073_v50 = vld [vmem:[%s5118_s1 + $0x8] sm:$0xff] }
0x1fb6   :  { %v2583_v11 = vand.u32 2147483647, %v2555_v62  ;;  %v2577_v23 = vmax.f32 %v2555_v62, 0.0  ;;  %vm2579_vm7 = vcmp.ne.f32.partialorder %v2555_v62, %v2555_v62 }
0x1fb8   :  { %v2585_v39 = vsub.f32 0.0, %v2583_v11 }
0x1fb9   :  { %v2574_v14 = vpop.f32.mrf.mxu3 }
0x1fba   :  { %v2587_v42 = vmul.f32 1.442695, %v2585_v39  ;;  %v2575_v9 = vadd.f32 %v2574_v14, %v5114_v17 }
0x1fbc   :  { %3601 = vpow2.f32 %v2587_v42  ;;  %v2584_v55 = vand.u32 2147483647, %v2575_v9  ;;  %v2578_v59 = vmax.f32 %v2575_v9, 0.0  ;;  %vm2580_vm10 = vcmp.ne.f32.partialorder %v2575_v9, %v2575_v9 }
0x1fbe   :  { %v2586_v51 = vsub.f32 0.0, %v2584_v55 }
0x1fc0   :  { %v2589_v57 = vmul.f32 1.442695, %v2586_v51 }
0x1fc2   :  { %v3602_v15 = vpop.eup %3601  ;;  %3603 = vpow2.f32 %v2589_v57 }
0x1fc3   :  { %v2591_v27 = vadd.f32 1.0, %v3602_v15  ;;  %v2594_v18 = vmul.f32 -0.5, %v3602_v15  ;;  %v2597_v19 = vand.u32 2147483647, %v3602_v15 }
0x1fc5   :  { %3605 = vlog2.f32 %v2591_v27  ;;  %v2595_v16 = vadd.f32 1.0, %v2594_v18  ;;  %vm2598_vm5 = vcmp.lt.f32.partialorder %v2597_v19, 0.0004427343 }
0x1fc7   :  { %v2596_v38 = vmul.f32 %v3602_v15, %v2595_v16 }
0x1fc8   :  { %v3604_v47 = vpop.eup %3603 }
0x1fc9   :  { %v2600_v40 = vadd.f32 1.0, %v3604_v47  ;;  %v2603_v4 = vmul.f32 -0.5, %v3604_v47  ;;  %v2606_v32 = vand.u32 2147483647, %v3604_v47 }
0x1fcb   :  { %v3606_v6 = vpop.eup %3605  ;;  %3607 = vlog2.f32 %v2600_v40  ;;  %v2604_v28 = vadd.f32 1.0, %v2603_v4  ;;  %vm2607_vm9 = vcmp.lt.f32.partialorder %v2606_v32, 0.0004427343 }
0x1fcc   :  { %v2593_v8 = vmul.f32 0.6931472, %v3606_v6  ;;  %v3447_v6 = vld [vmem:[%s5116_s28] ss:$0 sm:$0xff] }
0x1fcd   :  { %v2605_v0 = vmul.f32 %v3604_v47, %v2604_v28  ;;  %v2742_v28 = vpop.permute.xlu0 %2741 }
0x1fce   :  { %v2599_v26 = vsel %vm2598_vm5, %v2596_v38, %v2593_v8 }
0x1fcf   :  { %v2609_v53 = vadd.f32 %v2599_v26, %v2577_v23 }
0x1fd1   :  { %v3608_v24 = vpop.eup %3607  ;;  %v2611_v31 = vsel %vm2579_vm7, %v2555_v62, %v2609_v53 }
0x1fd2   :  { %2632 = vmatmul.f32.vlgmr.msrb.gmra.mxu0 %v2611_v31  ;;  %v2602_v54 = vmul.f32 0.6931472, %v3608_v24 }
0x1fd4   :  { %v2608_v56 = vsel %vm2607_vm9, %v2605_v0, %v2602_v54 }
0x1fd5   :  { %v2610_v63 = vadd.f32 %v2608_v56, %v2578_v59 }
0x1fd7   :  { %v2612_v48 = vsel %vm2580_vm10, %v2575_v9, %v2610_v63 }
0x1fd8   :  { %3365 = vmatmul.msk.f32.vlgmr.msrb.gmra.mxu1 %vm1224_vm1, %v2612_v48 }
0x1fe0   :  { %3382 = vmatmul.msk.f32.vlgmr.msra.gmra.mxu1 %vm1136_vm13, %v4205_v44 }
0x204f   :  { %v2633_v58 = vpop.f32.mrf.mxu0 }
0x2050   :  { %v2634_v25 = vadd.f32 %v4757_v41, %v2633_v58  ;;  %v4880_v41 = vld [vmem:[%s3953_s13] sm:$0x1]  ;;  %s5117_s13 = sld [smem:[#allocation32_spill]] }
0x2051   :  { %v2951_v17 = vmul.f32 2.0, %v4880_v41 }
0x2053   :  { %v2952_v51 = vmul.f32 1.442695, %v2951_v17 }
0x2055   :  { %v2653_v33 = vpop.f32.mrf.mxu1 }
0x2056   :  { %v2654_v49 = vadd.f32 %v2653_v33, %v2634_v25 }
0x2058   :  { %v2659_v10 = vand.u32 2147483647, %v2654_v49  ;;  %v3366_v21 = vmul.f32 -1.442695, %v2654_v49  ;;  %v2656_v8 = vmax.f32 %v2654_v49, 0.0  ;;  %vm2657_vm4 = vcmp.ne.f32.partialorder %v2654_v49, %v2654_v49 }
0x205a   :  { %v2660_v62 = vsub.f32 0.0, %v2659_v10  ;;  %3609 = vpow2.f32 %v3366_v21  ;;  %v3075_v10 = vld [vmem:[%s5118_s1 + $0x18] sm:$0xff]  ;;  %v3074_v21 = vld [vmem:[%s5118_s1 + $0x10] sm:$0xff] }
0x205b   :  { %3095 = vmatpush.msrb.mxu1 %v3075_v10 }
0x205c   :  { %v2661_v11 = vmul.f32 1.442695, %v2660_v62 }
0x205d   :  { %v3032_v38 = vpop.f32.mrf.mxu1  ;;  %3096 = vmatpush.msrb.mxu1 %v3074_v21 }
0x205e   :  { %3611 = vpow2.f32 %v2661_v11  ;;  %v3033_v54 = vadd.f32 %v3447_v6, %v3032_v38  ;;  %v3072_v11 = vld [vmem:[%s5118_s1] sm:$0xff] }
0x205f   :  { %3097 = vmatpush.msrb.mxu1 %v3073_v50 }
0x2060   :  { %v3610_v39 = vpop.eup %3609  ;;  %v3036_v48 = vmul.f32 0.01, %v3033_v54  ;;  %vm3035_vm5 = vcmp.gt.f32.partialorder %v3033_v54, 0.0 }
0x2061   :  { %v2677_v22 = vadd.f32 1.0, %v3610_v39  ;;  %3098 = vmatpush.msrb.mxu1 %v3072_v11 }
0x2062   :  { %v3037_v25 = vsel %vm3035_vm5, %v3033_v54, %v3036_v48  ;;  %v5124_v54 = vld [vmem:[#allocation39_spill] sm:$0xff] }
0x2063   :  { %3613 = vrcp.f32 %v2677_v22  ;;  %v2687_v47 = vand.u32 2147483647, %v2677_v22  ;;  %v2689_v16 = vand.u32 2147483648, %v2677_v22  ;;  %vm2683_vm0 = vweird.f32 %v2677_v22 }
0x2064   :  { %v3612_v14 = vpop.eup %3611 }
0x2065   :  { %v2663_v42 = vadd.f32 1.0, %v3612_v14  ;;  %v2666_v9 = vmul.f32 -0.5, %v3612_v14  ;;  %v2669_v15 = vand.u32 2147483647, %v3612_v14  ;;  %v2690_v53 = vor.u32 1.1754944e-38, %v2689_v16 }
0x2066   :  { %vm2688_vm3 = vcmp.eq.f32.partialorder %v2687_v47, 8.507059e+37 }
0x2067   :  { %3615 = vlog2.f32 %v2663_v42  ;;  %v2667_v1 = vadd.f32 1.0, %v2666_v9  ;;  %vm2670_vm15 = vcmp.lt.f32.partialorder %v2669_v15, 0.0004427343 }
0x2068   :  { %3617 = vpow2.f32 %v2952_v51 }
0x2069   :  { %v3614_v55 = vpop.eup %3613  ;;  %v2668_v4 = vmul.f32 %v3612_v14, %v2667_v1  ;;  %3619 = vrcp.f32 %v4472_v46  ;;  %v3448_v46 = vld [vmem:[%s5117_s13] ss:$0 sm:$0xff] }
0x206a   :  { %v2679_v57 = vmul.f32 %v3614_v55, %v2677_v22  ;;  %vm2684_vm14 = vweird.f32 %v3614_v55  ;;  %3621 = vrcp.f32 %v4535_v35  ;;  %v2735_v22 = vstv %s4912_s7 }
0x206b   :  { %vm2685_vm2 = vmor %vm2683_vm0, %vm2684_vm14  ;;  %3623 = vrcp.f32 %v4843_v60  ;;  %vm2992_vm0 = vcmask 1024  }
0x206c   :  { %v2680_v27 = vsub.f32 1.0, %v2679_v57  ;;  %3625 = vrcp.f32 %v4406_v43 }
0x206d   :  { %v3616_v18 = vpop.eup %3615  ;;  %3627 = vrcp.f32 %v4646_v12 }
0x206e   :  { %v2681_v19 = vmul.f32 %v3614_v55, %v2680_v27  ;;  %v2665_v40 = vmul.f32 0.6931472, %v3616_v18  ;;  %v3618_v31 = vpop.eup %3617  ;;  %3629 = vrcp.f32 %v4760_v2 }
0x206f   :  { %v2954_v63 = vmul.f32 2.0, %v3618_v31  ;;  %v3620_v52 = vpop.eup %3619 }
0x2070   :  { %v2682_v23 = vadd.f32 %v3614_v55, %v2681_v19  ;;  %v2671_v26 = vsel %vm2670_vm15, %v2668_v4, %v2665_v40  ;;  %v3622_v20 = vpop.eup %3621  ;;  %v3450_v40 = vld [vmem:[%s5121_s10] ss:$0 sm:$0xff] }
0x2071   :  { %v2672_v32 = vadd.f32 %v2671_v26, %v2656_v8  ;;  %v2956_v58 = vperm.slane %v2954_v63, 0  ;;  %v3624_v33 = vpop.eup %3623  ;;  %v5125_v63 = vld [vmem:[#allocation40_spill] sm:$0xff] }
0x2072   :  { %v2686_v24 = vsel %vm2685_vm2, %v3614_v55, %v2682_v23  ;;  %v3449_v55 = vld [vmem:[%s5120_s2] ss:$0 sm:$0xff] }
0x2073   :  { %v4884_v0 = vsel %vm2688_vm3, %v2690_v53, %v2686_v24  ;;  %v2673_v59 = vsel %vm2657_vm4, %v2654_v49, %v2672_v32  ;;  %v5119_v49 = vld [vmem:[#allocation41_spill] sm:$0xff]  ;;  %v5123_v24 = vld [vmem:[#allocation38_spill] sm:$0xff] }
0x2074   :  { %v2744_v56 = vmul.f32 %v2742_v28, %v4884_v0  ;;  %3367 = vmatmul.msk.f32.vlgmr.msrb.gmra.mxu3 %vm1224_vm1, %v2673_v59  ;;  %v2944_v7 = vsub.f32 %v5119_v49, %v3448_v46  ;;  %v5122_v28 = vld [vmem:[#allocation37_spill] sm:$0xff] }
0x2076   :  { %2746 = vrot.lane.b32.xlu0 %v2744_v56, %s3768_s5  ;;  %v2945_v35 = vmul.f32 %v2944_v7, %v2944_v7  ;;  %v3626_v7 = vpop.eup %3625 }
0x207c   :  { %3383 = vmatmul.msk.f32.vlgmr.msra.gmra.mxu3 %vm276_vm6, %v3037_v25 }
0x207e   :  { %2957 = vrot.lane.b32.xlu0 %v2956_v58, %s3770_s21 }
0x2086   :  { %1332 = vrot.lane.b32.xlu0 %v4420_v37, %s3771_s9 }
0x208e   :  { %1562 = vrot.lane.b32.xlu0 %v4483_v61, %s3771_s9 }
0x2096   :  { %1568 = vrot.lane.b32.xlu0 %v3620_v52, %s3768_s5 }
0x209e   :  { %1799 = vrot.lane.b32.xlu0 %v3622_v20, %s3768_s5 }
0x20a6   :  { %2024 = vrot.lane.b32.xlu0 %v4657_v30, %s3771_s9 }
0x20ae   :  { %2255 = vrot.lane.b32.xlu0 %v4774_v45, %s3771_s9 }
0x20b6   :  { %2492 = vrot.lane.b32.xlu0 %v3624_v33, %s3768_s5 }
0x20be   :  { %2947 = vrot.lane.b32.xlu0 %v2945_v35, %s3770_s21  ;;  %s1807_s21 = smul.f32 0.5, %s4542_s30  ;;  %s3773_s30 = smov [#allocation8]  }
0x20e8   :  { %v2747_v62 = vpop.permute.xlu0 %2746 }
0x20f0   :  { %v4914_v60 = vpop.permute.xlu0 %2957 }
0x20f7   :  { %v2713_v39 = vpop.f32.mrf.mxu3 }
0x20f8   :  { %v4918_v14 = vadd.f32 %v4771_v3, %v2713_v39  ;;  %v4920_v42 = vpop.permute.xlu0 %1332 }
0x20fa   :  { %v2736_v17 = vmul.f32 %v2735_v22, %v4918_v14 }
0x20fc   :  { %v2737_v9 = vadd.f32 %v2736_v17, %v4857_v13 }
0x20fe   :  { %v2749_v51 = vadd.f32 %v2747_v62, %v2737_v9 }
0x20ff   :  { %v3066_v57 = vpop.f32.mrf.mxu3 }
0x2100   :  { %2751 = vst.msk [vmem:[#allocation3 + $0xe] sm:$0x3] %vm1124_vm12, %v2749_v51  ;;  %v3067_v1 = vadd.f32 %v3449_v55, %v3066_v57  ;;  %v1563_v15 = vpop.permute.xlu0 %1562  ;;  %v3628_v57 = vpop.eup %3627 }
0x2101   :  { %v1565_v47 = vsub.f32 %v4483_v61, %v1563_v15 }
0x2102   :  { %vm3069_vm1 = vcmp.gt.f32.partialorder %v3067_v1, 0.0  ;;  %v3070_v27 = vmul.f32 0.01, %v3067_v1 }
0x2104   :  { %v3071_v18 = vsel %vm3069_vm1, %v3067_v1, %v3070_v27 }
0x2105   :  { %3384 = vmatmul.msk.f32.vlgmr.msrb.gmra.mxu1 %vm276_vm6, %v3071_v18  ;;  %v3630_v18 = vpop.eup %3629 }
0x2107   :  { %v2759_v3 = vld [vmem:[#allocation3 + $0xe] sm:$0x3] }
0x2108   :  { %2786 = vst [vmem:[#allocation1 + $0x23] ss:$4 sm:$0xff] %v2759_v3  ;;  %v1569_v16 = vpop.permute.xlu0 %1568 }
0x2109   :  { %v4928_v19 = vmul.f32 %v1569_v16, %v1565_v47 }
0x210f   :  { %v2788_v13 = vld.sshfl [vmem:[#allocation1 + $0x20] sm:$0xff pattern:$0x73625140] }
0x2110   :  { %2797 = vst [vmem:[#allocation1 + $0x20] ss:$4 sm:$0xff] %v4811_v5  ;;  %3371 = vmatmul.msk.f32.gmra.mxu2 %vm1136_vm13, %v2788_v13 }
0x2111   :  { %2799 = vst [vmem:[#allocation1 + $0x21] ss:$4 sm:$0xff] %v4811_v5 }
0x2112   :  { %2801 = vst [vmem:[#allocation1 + $0x22] ss:$4 sm:$0xff] %v4811_v5 }
0x2113   :  { %2803 = vst [vmem:[#allocation1 + $0x23] ss:$4 sm:$0xff] %v4811_v5 }
0x211a   :  { %v2805_v8 = vld.sshfl [vmem:[#allocation1 + $0x20] sm:$0xff pattern:$0x73625140] }
0x2182   :  { %v3100_v4 = vpop.f32.mrf.mxu1 }
0x2183   :  { %v4936_v61 = vadd.f32 %v3450_v40, %v3100_v4 }
0x2185   :  { %v3103_v6 = vsel %vm1124_vm12, %v4936_v61, 0.0 }
0x2186   :  { %3104 = vadd.xlane.f32.xlu2 %v3103_v6 }
0x2193   :  { %v2835_v38 = vpop.f32.mrf.mxu2 }
0x2194   :  { %v2836_v23 = vadd.f32 %v2835_v38, %v2805_v8  ;;  %v1800_v8 = vpop.permute.xlu0 %1799 }
0x2196   :  { %v2843_v26 = vrot.slane %v2836_v23, 2  ;;  %2857 = vst.msk [vmem:[%s3958_s20 + $0x8] sm:$0x3] %vm2852_vm11, %v2836_v23  ;;  %v2865_v53 = vsub.f32 %v5122_v28, %v2836_v23  ;;  %v2844_v32 = vrot.slane %v2836_v23, 4  ;;  %v2845_v5 = vrot.slane %v2836_v23, 6 }
0x2198   :  { %2858 = vst.msk [vmem:[%s3958_s20 + $0xa] sm:$0x3] %vm2852_vm11, %v2843_v26  ;;  %v2866_v31 = vsub.f32 %v5123_v24, %v2843_v26  ;;  %v2867_v59 = vsub.f32 %v5124_v54, %v2844_v32  ;;  %v2873_v56 = vmul.f32 10.0, %v2865_v53  ;;  %v2868_v48 = vsub.f32 %v5125_v63, %v2845_v5 }
0x2199   :  { %2859 = vst.msk [vmem:[%s3958_s20 + $0xc] sm:$0x3] %vm2852_vm11, %v2844_v32  ;;  %v1335_v26 = vsub.f32 %v4420_v37, %v4920_v42  ;;  %v1572_v42 = vmul.f32 %v4928_v19, %v4928_v19 }
0x219a   :  { %2860 = vst.msk [vmem:[%s3958_s20 + $0xe] sm:$0x3] %vm2852_vm11, %v2845_v5  ;;  %v2874_v58 = vmul.f32 10.0, %v2866_v31  ;;  %v2875_v25 = vmul.f32 10.0, %v2867_v59  ;;  %v2881_v52 = vmul.f32 -0.5, %v2873_v56  ;;  %v2876_v20 = vmul.f32 10.0, %v2868_v48 }
0x219b   :  { %s5126_s20 = sld [smem:[#allocation28_spill]] }
0x219c   :  { %v2882_v46 = vmul.f32 -0.5, %v2874_v58  ;;  %v2883_v43 = vmul.f32 -0.5, %v2875_v25  ;;  %v2889_v33 = vmul.f32 %v2881_v52, %v2873_v56  ;;  %v2884_v35 = vmul.f32 -0.5, %v2876_v20  ;;  %v2025_v24 = vpop.permute.xlu0 %2024 }
0x219d   :  { %v2027_v54 = vsub.f32 %v4657_v30, %v2025_v24  ;;  %v1573_v52 = vsel %vm1124_vm12, %v1572_v42, 0.0 }
0x219e   :  { %1338 = vrot.lane.b32.xlu2 %v3626_v7, %s3768_s5  ;;  %v2890_v10 = vmul.f32 %v2882_v46, %v2874_v58  ;;  %v2891_v21 = vmul.f32 %v2883_v43, %v2875_v25  ;;  %v2892_v50 = vmul.f32 %v2884_v35, %v2876_v20  ;;  %v3376_v62 = vadd.f32 1.3836466, %v2889_v33 }
0x21a0   :  { %v3377_v11 = vadd.f32 1.3836466, %v2890_v10  ;;  %v3378_v39 = vadd.f32 1.3836466, %v2891_v21  ;;  %v2908_v22 = vsel %vm2852_vm11, %v3376_v62, 0.0 }
0x21a1   :  { %v2909_v17 = vadd.f32 %v2908_v22, %v4839_v34  ;;  %v3379_v55 = vadd.f32 1.3836466, %v2892_v50  ;;  %v3772_v34 = vmov 4.0   ;;  %v3143_v46 = vld [vmem:[%s5126_s20] sm:$0xf] }
0x21a2   :  { %v2910_v9 = vsel %vm2852_vm11, %v3377_v11, 0.0  ;;  %v2912_v1 = vsel %vm2852_vm11, %v3378_v39, 0.0  ;;  %3631 = vrcp.f32 %v3772_v34  ;;  %3385 = vmatpush.msk.msrb.mxu2 %vm1140_vm8, %v3143_v46  ;;  %v3451_v62 = vld [vmem:[%s5127_s11] ss:$0 sm:$0xff]  ;;  %vm2965_vm8 = vweird.f32 %v4914_v60 }
0x21a3   :  { %v2911_v51 = vadd.f32 %v2910_v9, %v2909_v17  ;;  %v2914_v12 = vsel %vm2852_vm11, %v3379_v55, 0.0  ;;  %3633 = vrcp.f32 %v4884_v0  ;;  %v3452_v39 = vld [vmem:[%s5128_s15] ss:$0 sm:$0xff] }
0x21a4   :  { %v2256_v30 = vpop.permute.xlu0 %2255 }
0x21a5   :  { %v2913_v15 = vadd.f32 %v2912_v1, %v2911_v51  ;;  %v2258_v58 = vsub.f32 %v4774_v45, %v2256_v30 }
0x21a6   :  { %2030 = vrot.lane.b32.xlu2 %v3628_v57, %s3768_s5 }
0x21a7   :  { %v4962_v27 = vadd.f32 %v2914_v12, %v2913_v15 }
0x21a8   :  { %v3632_v3 = vpop.eup %3631 }
0x21a9   :  { %v3107_v47 = vmul.f32 4.0, %v3632_v3  ;;  %vm3111_vm7 = vweird.f32 %v3632_v3  ;;  %v3634_v37 = vpop.eup %3633 }
0x21ab   :  { %v3108_v16 = vsub.f32 1.0, %v3107_v47 }
0x21ac   :  { %v2493_v47 = vpop.permute.xlu0 %2492 }
0x21ad   :  { %v3109_v13 = vmul.f32 %v3632_v3, %v3108_v16 }
0x21ae   :  { %2261 = vrot.lane.b32.xlu2 %v3630_v18, %s3768_s5 }
0x21af   :  { %v3110_v40 = vadd.f32 %v3632_v3, %v3109_v13 }
0x21b1   :  { %v3112_v4 = vsel %vm3111_vm7, %v3632_v3, %v3110_v40 }
0x21b6   :  { %2717 = vrot.lane.b32.xlu2 %v4918_v14, %s3771_s9 }
0x21f9   :  { %v3105_v2 = vpop.xlane.xlu2 %3104 }
0x21fa   :  { %v3113_v6 = vmul.f32 %v3112_v4, %v3105_v2 }
0x21fc   :  { %v3114_v38 = vsub.f32 %v4936_v61, %v3113_v6 }
0x21fe   :  { %v3115_v23 = vmul.f32 %v3114_v38, %v3114_v38 }
0x2200   :  { %v3116_v28 = vsel %vm1124_vm12, %v3115_v23, 0.0 }
0x2201   :  { %3117 = vadd.xlane.f32.xlu1 %v3116_v28  ;;  %v1339_v53 = vpop.permute.xlu2 %1338 }
0x2202   :  { %v1341_v32 = vmul.f32 %v1339_v53, %v1335_v26  ;;  %v2969_v53 = vand.u32 2147483647, %v4914_v60 }
0x2204   :  { %v1342_v5 = vmul.f32 %v1341_v32, %v1341_v32  ;;  %vm2970_vm15 = vcmp.eq.f32.partialorder %v2969_v53, 8.507059e+37 }
0x2206   :  { %v1343_v31 = vsel %vm1124_vm12, %v1342_v5, 0.0  ;;  %v2948_v5 = vpop.permute.xlu0 %2947 }
0x2207   :  { %1344 = vadd.xlane.f32.xlu2 %v1343_v31 }
0x2209   :  { %v2031_v59 = vpop.permute.xlu2 %2030 }
0x220a   :  { %v2033_v56 = vmul.f32 %v2031_v59, %v2027_v54 }
0x220c   :  { %v2034_v63 = vmul.f32 %v2033_v56, %v2033_v56 }
0x220e   :  { %v2035_v61 = vsel %vm1124_vm12, %v2034_v63, 0.0  ;;  %v3180_v63 = vld [vmem:[%s5129_s0 + $0x18] sm:$0xff] }
0x220f   :  { %2036 = vadd.xlane.f32.xlu2 %v2035_v61  ;;  %3200 = vmatpush.msrb.mxu3 %v3180_v63  ;;  %v3178_v61 = vld [vmem:[%s5129_s0 + $0x8] sm:$0xff] }
0x2211   :  { %v2262_v48 = vpop.permute.xlu2 %2261 }
0x2212   :  { %v2264_v25 = vmul.f32 %v2262_v48, %v2258_v58  ;;  %v1347_v48 = vstv %s1346_s17  ;;  %v1808_v58 = vstv %s1807_s21 }
0x2214   :  { %v2265_v20 = vmul.f32 %v2264_v25, %v2264_v25 }
0x2216   :  { %v2266_v0 = vsel %vm1124_vm12, %v2265_v20, 0.0 }
0x2219   :  { %v2718_v13 = vpop.permute.xlu2 %2717 }
0x221a   :  { %1793 = vrot.lane.b32.xlu1 %v4546_v29, %s3771_s9 }
0x2222   :  { %2486 = vrot.lane.b32.xlu1 %v4853_v36, %s3771_s9 }
0x2227   :  { %2934 = vrot.lane.b32.xlu2 %v5119_v49, %s3771_s9 }
0x222a   :  { %2723 = vrot.lane.b32.xlu1 %v3634_v37, %s3768_s5  ;;  %v3177_v37 = vld [vmem:[%s5129_s0] sm:$0xff]  ;;  %s1576_s5 = smul.f32 0.5, %s4479_s24 }
0x2254   :  { %1574 = vadd.xlane.f32.xlu1 %v1573_v52 }
0x225c   :  { %2267 = vadd.xlane.f32.xlu1 %v2266_v0 }
0x2274   :  { %v3118_v43 = vpop.xlane.xlu1 %3117 }
0x2275   :  { %v3119_v33 = vmul.f32 %v3118_v43, %v3112_v4  ;;  %v2938_v4 = vmul.f32 2.0, %v5119_v49  ;;  %v2971_v49 = vand.u32 2147483648, %v4914_v60 }
0x2277   :  { %v3120_v7 = vadd.f32 1e-05, %v3119_v33  ;;  %v2939_v23 = vmul.f32 1.442695, %v2938_v4  ;;  %v2972_v32 = vor.u32 1.1754944e-38, %v2971_v49 }
0x2279   :  { %3635 = vrsqrt.f32 %v3120_v7  ;;  %vm3127_vm9 = vweird.f32 %v3120_v7 }
0x227a   :  { %3637 = vrcp.f32 %v4914_v60  ;;  %v1345_v30 = vpop.xlane.xlu2 %1344 }
0x227b   :  { %3639 = vpow2.f32 %v2939_v23  ;;  %v1348_v20 = vmul.f32 %v1347_v48, %v1345_v30 }
0x227f   :  { %v3636_v19 = vpop.eup %3635 }
0x2280   :  { %v3122_v35 = vmul.f32 %v3636_v19, %v3120_v7  ;;  %vm3128_vm11 = vweird.f32 %v3636_v19  ;;  %v3638_v34 = vpop.eup %3637 }
0x2281   :  { %vm3129_vm10 = vmor %vm3127_vm9, %vm3128_vm11  ;;  %v3640_v31 = vpop.eup %3639 }
0x2282   :  { %v3123_v45 = vmul.f32 %v3636_v19, %v3122_v35  ;;  %v2950_v54 = vadd.f32 %v3640_v31, %v2948_v5  ;;  %v2037_v33 = vpop.xlane.xlu2 %2036 }
0x2284   :  { %v3124_v10 = vmul.f32 0.5, %v3123_v45  ;;  %v2270_v45 = vstv %s2269_s29 }
0x2286   :  { %v3125_v21 = vsub.f32 1.5, %v3124_v10  ;;  %v2501_v10 = vstv %s2500_s3 }
0x2288   :  { %v3126_v50 = vmul.f32 %v3636_v19, %v3125_v21 }
0x228a   :  { %v3130_v11 = vsel %vm3129_vm10, %v3636_v19, %v3126_v50 }
0x228b   :  { %v3131_v22 = vmul.f32 %v3130_v11, %v3114_v38 }
0x228c   :  { %v1794_v17 = vpop.permute.xlu1 %1793 }
0x228d   :  { %v3136_v9 = vmul.f32 %v3451_v62, %v3131_v22  ;;  %v1796_v55 = vsub.f32 %v4546_v29, %v1794_v17  ;;  %v2961_v29 = vmul.f32 %v3638_v34, %v4914_v60  ;;  %v3179_v60 = vld [vmem:[%s5129_s0 + $0x10] sm:$0xff]  ;;  %v3453_v22 = vld [vmem:[%s5130_s25] ss:$0 sm:$0xff] }
0x228e   :  { %3201 = vmatpush.msrb.mxu3 %v3179_v60 }
0x228f   :  { %v3141_v51 = vadd.f32 %v3452_v39, %v3136_v9  ;;  %v1802_v57 = vmul.f32 %v1800_v8, %v1796_v55  ;;  %v2962_v6 = vsub.f32 1.0, %v2961_v29  ;;  %v2732_v39 = vstv %s2731_s8 }
0x2290   :  { %3202 = vmatpush.msrb.mxu3 %v3178_v61 }
0x2291   :  { %v3142_v1 = vadd.f32 %v3141_v51, %v4205_v44  ;;  %v1803_v15 = vmul.f32 %v1802_v57, %v1802_v57  ;;  %v2720_v44 = vsub.f32 %v4918_v14, %v2718_v13  ;;  %v2963_v28 = vmul.f32 %v3638_v34, %v2962_v6 }
0x2292   :  { %3203 = vmatpush.msrb.mxu3 %v3177_v37 }
0x2293   :  { %3386 = vmatmul.msk.f32.vlgmr.msrb.gmra.mxu2 %vm1136_vm13, %v3142_v1  ;;  %v1804_v12 = vsel %vm1124_vm12, %v1803_v15, 0.0  ;;  %vm2966_vm13 = vweird.f32 %v3638_v34  ;;  %v2964_v14 = vadd.f32 %v3638_v34, %v2963_v28 }
0x2294   :  { %1805 = vadd.xlane.f32.xlu0 %v1804_v12  ;;  %v2487_v18 = vpop.permute.xlu1 %2486  ;;  %vm2967_vm14 = vmor %vm2965_vm8, %vm2966_vm13 }
0x2295   :  { %v2489_v3 = vsub.f32 %v4853_v36, %v2487_v18  ;;  %v2968_v24 = vsel %vm2967_vm14, %v3638_v34, %v2964_v14 }
0x2296   :  { %v2973_v59 = vsel %vm2970_vm15, %v2972_v32, %v2968_v24  ;;  %v3454_v32 = vld [vmem:[%s5131_s14] ss:$0 sm:$0xff] }
0x2297   :  { %v2495_v16 = vmul.f32 %v2493_v47, %v2489_v3  ;;  %v2974_v56 = vmul.f32 %v2973_v59, %v2950_v54  ;;  %v2931_v3 = vperm.slane %v4880_v41, 0 }
0x2299   :  { %v2496_v40 = vmul.f32 %v2495_v16, %v2495_v16  ;;  %v2935_v16 = vpop.permute.xlu2 %2934 }
0x229b   :  { %v2497_v2 = vsel %vm1124_vm12, %v2496_v40, 0.0  ;;  %v2937_v40 = vsub.f32 %v2931_v3, %v2935_v16 }
0x229c   :  { %2498 = vadd.xlane.f32.xlu0 %v2497_v2  ;;  %v2724_v8 = vpop.permute.xlu1 %2723 }
0x229d   :  { %v2726_v38 = vmul.f32 %v2724_v8, %v2720_v44 }
0x229f   :  { %v2727_v26 = vmul.f32 %v2726_v38, %v2726_v38 }
0x22a1   :  { %v2728_v36 = vsel %vm1124_vm12, %v2727_v26, 0.0 }
0x22a2   :  { %2729 = vadd.xlane.f32.xlu1 %v2728_v36 }
0x22aa   :  { %2916 = vadd.xlane.f32.xlu1 %v4962_v27  ;;  %v1577_v27 = vstv %s1576_s5 }
0x22b0   :  { %2976 = vrot.lane.b32.xlu0 %v2974_v56, %s3771_s9  ;;  %s2038_s9 = smul.f32 0.5, %s4653_s6  ;;  %s3217_s6 = sshll.u32 %s3773_s30, 4  ;;  %s3218_s6 = int_to_ptr.vmem [resolvable:$true] %s3217_s6 }
0x22b2   :  { %v2039_v43 = vstv %s2038_s9 }
0x22b3   :  { %v2040_v35 = vmul.f32 %v2039_v43, %v2037_v33 }
0x22c7   :  { %v1575_v42 = vpop.xlane.xlu1 %1574 }
0x22c8   :  { %v1578_v25 = vmul.f32 %v1577_v27, %v1575_v42 }
0x22ca   :  { %v1579_v46 = vadd.f32 %v1578_v25, %v1348_v20 }
0x22cf   :  { %v2268_v19 = vpop.xlane.xlu1 %2267 }
0x22d0   :  { %v2271_v62 = vmul.f32 %v2270_v45, %v2268_v19 }
0x2307   :  { %v1806_v52 = vpop.xlane.xlu0 %1805 }
0x2308   :  { %v1809_v0 = vmul.f32 %v1808_v58, %v1806_v52 }
0x230a   :  { %v1810_v7 = vadd.f32 %v1809_v0, %v1579_v46 }
0x230c   :  { %v2041_v50 = vadd.f32 %v2040_v35, %v1810_v7 }
0x230e   :  { %v2272_v17 = vadd.f32 %v2271_v62, %v2041_v50 }
0x230f   :  { %v2499_v21 = vpop.xlane.xlu0 %2498 }
0x2310   :  { %v2502_v11 = vmul.f32 %v2501_v10, %v2499_v21 }
0x2312   :  { %v2503_v55 = vadd.f32 %v2502_v11, %v2272_v17 }
0x2315   :  { %v2730_v9 = vpop.xlane.xlu1 %2729 }
0x2316   :  { %v2733_v51 = vmul.f32 %v2732_v39, %v2730_v9  ;;  %v3171_v57 = vpop.f32.mrf.mxu2 }
0x2317   :  { %v3172_v1 = vadd.f32 %v3453_v22, %v3171_v57 }
0x2318   :  { %v2734_v15 = vadd.f32 %v2733_v51, %v2503_v55 }
0x2319   :  { %vm3174_vm2 = vcmp.gt.f32.partialorder %v3172_v1, 0.0  ;;  %v3175_v12 = vmul.f32 0.01, %v3172_v1 }
0x231a   :  { %v2993_v18 = vsel %vm2992_vm0, %v2734_v15, 0.0 }
0x231b   :  { %v3176_v34 = vsel %vm3174_vm2, %v3172_v1, %v3175_v12  ;;  %2994 = vadd.xlane.f32.xlu2 %v2993_v18 }
0x231c   :  { %3387 = vmatmul.msk.f32.vlgmr.msrb.gmra.mxu3 %vm276_vm6, %v3176_v34  ;;  %vm3208_vm6 = vcmask 33792  }
0x231d   :  { %v2917_v47 = vpop.xlane.xlu1 %2916 }
0x231e   :  { %v2918_v29 = vrot.slane %v2917_v47, 4 }
0x2320   :  { %v2919_v13 = vadd.f32 %v2918_v29, %v2917_v47 }
0x2322   :  { %v2920_v4 = vrot.slane %v2919_v13, 2  ;;  %v2977_v44 = vpop.permute.xlu0 %2976 }
0x2323   :  { %v2979_v2 = vadd.f32 %v2977_v44, %v2937_v40 }
0x2324   :  { %v2921_v6 = vadd.f32 %v2920_v4, %v2919_v13 }
0x2325   :  { %v3380_v8 = vadd.f32 -0.5, %v2979_v2 }
0x2326   :  { %v2922_v38 = vrot.slane %v2921_v6, 1 }
0x2327   :  { %v2981_v23 = vsel %vm1124_vm12, %v3380_v8, 0.0 }
0x2328   :  { %2982 = vadd.xlane.f32.xlu1 %v2981_v23  ;;  %v2923_v26 = vadd.f32 %v2922_v38, %v2921_v6 }
0x232a   :  { %3388 = vpush %v2923_v26 }
0x235b   :  { %s3389_s19 = spop %3388 }
0x235c   :  { %s2925_s24 = smul.f32 0.020833334, %s3389_s19 }
0x235e   :  { %2927 = sst [smem:[#allocation9]] %s2925_s24 }
0x238e   :  { %v2995_v41 = vpop.xlane.xlu2 %2994 }
0x238f   :  { %v2996_v28 = vrot.slane %v2995_v41, 4 }
0x2391   :  { %v2997_v36 = vadd.f32 %v2996_v28, %v2995_v41 }
0x2393   :  { %v2998_v49 = vrot.slane %v2997_v36, 2 }
0x2395   :  { %v2999_v24 = vadd.f32 %v2998_v49, %v2997_v36 }
0x2397   :  { %v3000_v63 = vrot.slane %v2999_v24, 1 }
0x239b   :  { %v2983_v14 = vpop.xlane.xlu1 %2982 }
0x239c   :  { %v2984_v53 = vrot.slane %v2983_v14, 4 }
0x239e   :  { %v2985_v5 = vadd.f32 %v2984_v53, %v2983_v14 }
0x239f   :  { %v3205_v31 = vpop.f32.mrf.mxu3 }
0x23a0   :  { %v2986_v54 = vrot.slane %v2985_v5, 2  ;;  %v3206_v59 = vadd.f32 %v3454_v32, %v3205_v31 }
0x23a2   :  { %v2987_v56 = vadd.f32 %v2986_v54, %v2985_v5  ;;  %3209 = vst.msk [vmem:[#allocation8] sm:$0x3] %vm3208_vm6, %v3206_v59 }
0x23a3   :  { %3710 = shalt.err (!%p3707_p9)
}
0x23a4   :  { %3222 = dma.vmem_to_hbm [thread:$0]  %s3218_s6, 32, %s3220_s12, [#allocation5]   ;;  %v2988_v60 = vrot.slane %v2987_v56, 1  ;;  %v3001_v37 = vadd.f32 %v3000_v63, %v2999_v24 }
0x23a5   :  { %s3228_s26 = sshll.u32 %s3968_s4, 4  ;;  %s3715_s10 = scalar_lea.vmem %s3968_s4, 1  ;;  %s3229_s26 = int_to_ptr.vmem [resolvable:$true] %s3228_s26 }
0x23a6   :  { %v2989_v61 = vadd.f32 %v2988_v60, %v2987_v56  ;;  %s3711_s2 = sshra.s32 %s3229_s26, 4  ;;  %s3712_s2 = int_to_ptr.vmem [resolvable:$true] %s3711_s2 }
0x23a7   :  { %s3713_s7 = scalar_lea.vmem %s3712_s2, 1  ;;  %p3716_p11 = scmp.lt.s32.totalorder %s3712_s2, %s3968_s4 }
0x23a8   :  { %3390 = vpush %v2989_v61  ;;  %p3714_p10 = scmp.ne.s32.totalorder %s3712_s2, %s3713_s7  ;;  %p3717_p12 = scmp.lt.s32.totalorder %s3715_s10, %s3713_s7 }
0x23a9   :  { %3392 = vpush %v3001_v37 }
0x23aa   :  { %p3718_p13 = por %p3717_p12, %p3716_p11 }
0x23ac   :  { %p3719_p0 = pnand %p3718_p13, %p3714_p10 }
0x23d9   :  { %s3391_s23 = spop %3390 }
0x23da   :  { %s2991_s28 = smul.f32 0.125, %s3391_s23  ;;  %s3393_s13 = spop %3392 }
0x23db   :  { %s3003_s1 = smul.f32 0.071428575, %s3393_s13 }
0x23dd   :  { %s3004_s27 = sadd.f32 %s3003_s1, %s2991_s28 }
0x23df   :  { %3006 = sst [smem:[#allocation9 + $0x1]] %s3004_s27 }
0x23e0   :  { %3722 = shalt.err (!%p3719_p0)
}
0x23e1   :  { %s3774_s20 = smov [#allocation9]  }
0x23e2   :  { %3231 = dma.smem_to_vmem %s3774_s20, 16, %s3229_s26, [#allocation7]  }
0x23e3   :  { %3725 = dma.done.wait [#allocation5], 32  }
0x23e4   :  { %3726 = vsyncadd [#allocation5], 4294967264 }
0x23e5   :  { %3727 = dma.done.wait [#allocation7], 16  }
0x23e6   :  { %3728 = vsyncadd [#allocation7], 4294967280 }
0x23e7   :  { %3242 = sfence }
0x23e8   :  { %3243 = vsyncpa [#allocation5], 1 }
0x23e9   :  { %3244 = vsyncpa [#allocation6], 1 }
0x23ea   :  { %3245 = vsyncpa [#allocation7], 1 }

</bundles_post_ra>
